<compile_context>
chip_gen: v7x
topology: tpu7x:2x2x1
jax: 0.10.0
libtpu: 0.0.40
codegen_flags: <defaults>
</compile_context>

<pallas_src>
import jax
import jax.numpy as jnp
from jax.experimental import pallas as pl
from jax.experimental.pallas import tpu as pltpu

EPS = 1e-5  # BatchNorm2d default eps


def _round_up(x, m):
    return ((x + m - 1) // m) * m


def _pick_row_tile(h2, preferred=8):
    """Row tile (conv-output rows) that divides 2H; multiple of 8 when possible."""
    if (preferred is not None and preferred % 8 == 0 and 0 < preferred <= h2
            and h2 % preferred == 0):
        return preferred
    t = (min(h2, 64) // 8) * 8
    while t >= 8:
        if h2 % t == 0:
            return t
        t -= 8
    return h2  # single-tile fallback (blocks equal the full dims -> still legal)


# --------------------- pass 1: 3x3 conv + BN partial stats ------------------ #
def _conv_stats_kernel(xm_ref, xh_ref, w_ref, b_ref, y_ref, st_ref,
                       xrow_ref, patch_ref):
    # xm_ref   : (1, TR, Wp, Cin)   bf16  padded-input rows [t*TR, t*TR+TR)
    # xh_ref   : (1, 1, 2, Wp, Cin) bf16  the 2 halo rows below this block
    # w_ref    : (9*Cin, Cp)        bf16  im2col-ordered weight, Cout padded to Cp
    # b_ref    : (1, Cp)            f32   conv bias (zero-padded)
    # y_ref    : (1, TR*Wout, Cp)   f32   conv+bias tile (lane-dense)
    # st_ref   : (1, 1, 2, Cp)      f32   per-tile [sum, sum(x^2)] per channel
    # xrow_ref : (TR+2, Wp, Cin)    bf16  scratch: block rows + halo
    # patch_ref: (TR, Wout, 9*Cin)  bf16  scratch: im2col patches
    _, tr, wp, cin = xm_ref.shape
    wout = wp - 2

    # Assemble the (TR+2)-row window needed by the 3x3 conv.
    xrow_ref[0:tr, :, :] = xm_ref[0]
    xrow_ref[tr:tr + 2, :, :] = xh_ref[0, 0]

    # im2col: pack the 9 taps along the lane axis -> K = 9*Cin.
    for dy in range(3):
        for dx in range(3):
            k = dy * 3 + dx
            patch_ref[:, :, k * cin:(k + 1) * cin] = \
                xrow_ref[dy:dy + tr, dx:dx + wout, :]

    # Single MXU matmul: (TR*Wout, 9*Cin) x (9*Cin, Cp), bf16 -> f32 accumulate.
    patches = patch_ref[...].reshape(tr * wout, 9 * cin)
    acc = jnp.dot(patches, w_ref[...], preferred_element_type=jnp.float32)
    acc = acc + b_ref[...]

    y_ref[...] = acc[None]

    # BatchNorm partial statistics (reduced across tiles in the wrapper).
    st_ref[0, 0, 0:1, :] = jnp.sum(acc, axis=0, keepdims=True)
    st_ref[0, 0, 1:2, :] = jnp.sum(acc * acc, axis=0, keepdims=True)


# ------------------------ pass 2: BN apply + PReLU -------------------------- #
def _bn_prelu_kernel(y_ref, scale_ref, shift_ref, alpha_ref, o_ref):
    # y_ref     : (1, TR*Wout, Cp) f32
    # scale_ref : (1, 1, Cp) f32   gamma * rsqrt(var + eps)
    # shift_ref : (1, 1, Cp) f32   beta - mean * scale
    # alpha_ref : (1,) f32 in SMEM (shared PReLU parameter)
    # o_ref     : (1, TR*Wout, Cp) f32
    z = y_ref[...] * scale_ref[...] + shift_ref[...]
    alpha = alpha_ref[0]
    o_ref[...] = jnp.where(z >= 0.0, z, alpha * z)


# ------------------------------ JAX glue ------------------------------------ #
def _coords_padded(L):
    """Source indices/weights for 2x bilinear (align_corners=False), producing
    the output directly in its zero-padded form (length 2L + 2)."""
    jp = jnp.arange(2 * L + 2, dtype=jnp.float32) - 1.0   # padded coord -1 .. 2L
    valid = (jp >= 0.0) & (jp <= 2.0 * L - 1.0)
    src = jnp.maximum((jp + 0.5) / 2.0 - 0.5, 0.0)        # PyTorch clamps at 0
    i0 = jnp.minimum(jnp.floor(src).astype(jnp.int32), L - 1)
    i1 = jnp.minimum(i0 + 1, L - 1)
    lam = src - i0.astype(jnp.float32)
    w0 = jnp.where(valid, 1.0 - lam, 0.0)                 # border ring -> zeros
    w1 = jnp.where(valid, lam, 0.0)
    i0 = jnp.clip(i0, 0, L - 1)
    return i0, i1, w0, w1


def _upsample2x_padded(x_nhwc):
    """(N,H,W,C) -> (N,2H+2,2W+2,C): 2x bilinear upsample with the conv's
    zero-pad ring built in (single HBM intermediate)."""
    h0, h1, wh0, wh1 = _coords_padded(x_nhwc.shape[1])
    w0, w1, ww0, ww1 = _coords_padded(x_nhwc.shape[2])
    xr = (x_nhwc[:, h0] * wh0[None, :, None, None]
          + x_nhwc[:, h1] * wh1[None, :, None, None])
    out = (xr[:, :, w0] * ww0[None, None, :, None]
           + xr[:, :, w1] * ww1[None, None, :, None])
    return out


def init_params(key, in_channels, out_channels):
    k1, k2, k3, k4 = jax.random.split(key, 4)
    return dict(
        w=0.1 * jax.random.normal(k1, (3, 3, in_channels, out_channels),
                                  jnp.float32),            # HWIO
        b=0.1 * jax.random.normal(k2, (out_channels,), jnp.float32),
        gamma=1.0 + 0.1 * jax.random.normal(k3, (out_channels,), jnp.float32),
        beta=0.1 * jax.random.normal(k4, (out_channels,), jnp.float32),
        alpha=jnp.full((1,), 0.25, jnp.float32),            # PReLU default init
    )


def psp_upsample_forward(x_nchw, params, row_tile=8):
    """x_nchw: (N, Cin, H, W) -> (N, Cout, 2H, 2W) (PyTorch NCHW interface)."""
    N, Cin, H, W = x_nchw.shape
    Cout = params["w"].shape[-1]
    H2, W2 = 2 * H, 2 * W
    Wp = W2 + 2
    Cp = _round_up(Cout, 128)          # lane-dense channel padding

    TR = _pick_row_tile(H2, row_tile)  # conv-output rows per tile
    T = H2 // TR
    RT = TR * W2                       # flattened rows per output tile
    R = H2 * W2

    # NCHW -> NHWC (kept at the boundary to preserve the PyTorch interface).
    x = jnp.transpose(x_nchw.astype(jnp.float32), (0, 2, 3, 1))
    xpad = _upsample2x_padded(x).astype(jnp.bfloat16)       # (N, H2+2, Wp, Cin)

    # Two halo rows per row tile (rows (t+1)*TR, (t+1)*TR+1 of the padded array).
    hal_rows = (jnp.arange(T)[:, None] + 1) * TR + jnp.arange(2)[None, :]
    xhalo = xpad[:, hal_rows]                               # (N, T, 2, Wp, Cin)

    # im2col weight: (dy, dx, ci) flattened -> K = 9*Cin; Cout padded to Cp.
    w2d = params["w"].reshape(9 * Cin, Cout)
    w2d = jnp.pad(w2d, ((0, 0), (0, Cp - Cout))).astype(jnp.bfloat16)
    bias = jnp.pad(params["b"].reshape(1, Cout).astype(jnp.float32),
                   ((0, 0), (0, Cp - Cout)))

    y2, stats = pl.pallas_call(
        _conv_stats_kernel,
        out_shape=(jax.ShapeDtypeStruct((N, R, Cp), jnp.float32),
                   jax.ShapeDtypeStruct((N, T, 2, Cp), jnp.float32)),
        grid=(N, T),
        in_specs=[
            pl.BlockSpec((1, TR, Wp, Cin), lambda n, t: (n, t, 0, 0)),
            pl.BlockSpec((1, 1, 2, Wp, Cin), lambda n, t: (n, t, 0, 0, 0)),
            pl.BlockSpec((9 * Cin, Cp), lambda n, t: (0, 0)),
            pl.BlockSpec((1, Cp), lambda n, t: (0, 0)),
        ],
        out_specs=(
            pl.BlockSpec((1, RT, Cp), lambda n, t: (n, t, 0)),
            pl.BlockSpec((1, 1, 2, Cp), lambda n, t: (n, t, 0, 0)),
        ),
        scratch_shapes=[
            pltpu.VMEM((TR + 2, Wp, Cin), jnp.bfloat16),
            pltpu.VMEM((TR, W2, 9 * Cin), jnp.bfloat16),
        ],
        compiler_params=pltpu.CompilerParams(
            dimension_semantics=("parallel", "parallel"),
            vmem_limit_bytes=32 * 1024 * 1024),
    )(xpad, xhalo, w2d, bias)

    # Global training-mode BN statistics (over N, 2H, 2W), folded to one FMA.
    cnt = float(N * H2 * W2)
    s = jnp.sum(stats[:, :, 0, :], axis=(0, 1))
    ss = jnp.sum(stats[:, :, 1, :], axis=(0, 1))
    mean = s / cnt
    var = jnp.maximum(ss / cnt - mean * mean, 0.0)
    gamma = jnp.pad(params["gamma"].astype(jnp.float32), (0, Cp - Cout))
    beta = jnp.pad(params["beta"].astype(jnp.float32), (0, Cp - Cout))
    scale = gamma * jax.lax.rsqrt(var + EPS)
    shift = beta - mean * scale
    scale = scale.reshape(1, 1, Cp)
    shift = shift.reshape(1, 1, Cp)
    alpha = params["alpha"].reshape(1).astype(jnp.float32)

    yout = pl.pallas_call(
        _bn_prelu_kernel,
        out_shape=jax.ShapeDtypeStruct((N, R, Cp), jnp.float32),
        grid=(N, T),
        in_specs=[
            pl.BlockSpec((1, RT, Cp), lambda n, t: (n, t, 0)),
            pl.BlockSpec((1, 1, Cp), lambda n, t: (0, 0, 0)),
            pl.BlockSpec((1, 1, Cp), lambda n, t: (0, 0, 0)),
            pl.BlockSpec(memory_space=pltpu.MemorySpace.SMEM),
        ],
        out_specs=pl.BlockSpec((1, RT, Cp), lambda n, t: (n, t, 0)),
        compiler_params=pltpu.CompilerParams(
            dimension_semantics=("parallel", "parallel"),
            vmem_limit_bytes=32 * 1024 * 1024),
    )(y2, scale, shift, alpha)

    y = yout.reshape(N, H2, W2, Cp)[..., :Cout]
    return jnp.transpose(y, (0, 3, 1, 2))                   # NHWC -> NCHW


# --------------------------- pure-JAX reference ----------------------------- #
def _reference_forward(x_nchw, params):
    x = jnp.transpose(x_nchw.astype(jnp.float32), (0, 2, 3, 1))
    up = _upsample2x_padded(x)[:, 1:-1, 1:-1, :]            # (N, 2H, 2W, Cin)
    y = jax.lax.conv_general_dilated(
        up, params["w"].astype(jnp.float32), window_strides=(1, 1),
        padding="SAME", dimension_numbers=("NHWC", "HWIO", "NHWC"))
    y = y + params["b"].reshape(1, 1, 1, -1)
    mean = jnp.mean(y, axis=(0, 1, 2))
    var = jnp.var(y, axis=(0, 1, 2))
    yn = (y - mean) * jax.lax.rsqrt(var + EPS) * params["gamma"] + params["beta"]
    alpha = params["alpha"].reshape(())
    out = jnp.where(yn >= 0, yn, alpha * yn)
    return jnp.transpose(out, (0, 3, 1, 2))


# --------------------------------- main -------------------------------------- #
if __name__ == "__main__":
    key = jax.random.PRNGKey(0)
    k_x, k_p = jax.random.split(key)

    N, Cin, H, W = 2, 4, 16, 16
    Cout = 8
    x = jax.random.normal(k_x, (N, Cin, H, W), jnp.float32)
    params = init_params(k_p, Cin, Cout)

    fwd = jax.jit(psp_upsample_forward)
    out = jax.block_until_ready(fwd(x, params))
    assert out.shape == (N, Cout, 2 * H, 2 * W), out.shape

    # Cross-check against an f32 XLA reference (tolerance covers the bf16 MXU path).
    ref = _reference_forward(x, params)
    err = float(jnp.max(jnp.abs(out - ref)))
    assert err < 0.1, f"max abs error vs reference: {err}"

    print("KERNEL_OK")
</pallas_src>

<mosaic_0001>
module attributes {stable_mosaic.version = 11 : i64} {
  func.func @_conv_stats_kernel(%arg0: i32, %arg1: i32, %arg2: memref<1x8x34x4xbf16, #tpu.memory_space<vmem>>, %arg3: memref<1x1x2x34x4xbf16, #tpu.memory_space<vmem>>, %arg4: memref<36x128xbf16, #tpu.memory_space<vmem>>, %arg5: memref<1x128xf32, #tpu.memory_space<vmem>>, %arg6: memref<1x256x128xf32, #tpu.memory_space<vmem>>, %arg7: memref<1x1x2x128xf32, #tpu.memory_space<vmem>>, %arg8: memref<10x34x4xbf16, #tpu.memory_space<vmem>>, %arg9: memref<8x32x36xbf16, #tpu.memory_space<vmem>>) attributes {dimension_semantics = [#tpu.dimension_semantics<parallel>, #tpu.dimension_semantics<parallel>], iteration_bounds = array<i64: 2, 4>, scalar_prefetch = 0 : i64, scratch_operands = 2 : i64, tpu.core_type = #tpu.core_type<tc>, window_params = [{transform_indices = @transform_0, window_bounds = array<i64: 1, 8, 34, 4>}, {transform_indices = @transform_1, window_bounds = array<i64: 1, 1, 2, 34, 4>}, {pipeline_mode = #tpu.pipeline_mode<synchronous>, transform_indices = @transform_2, window_bounds = array<i64: 36, 128>}, {pipeline_mode = #tpu.pipeline_mode<synchronous>, transform_indices = @transform_3, window_bounds = array<i64: 1, 128>}, {transform_indices = @transform_4, window_bounds = array<i64: 1, 256, 128>}, {transform_indices = @transform_5, window_bounds = array<i64: 1, 1, 2, 128>}]} {
    %c0 = arith.constant 0 : index
    %c0_0 = arith.constant 0 : index
    %c0_1 = arith.constant 0 : index
    %c0_2 = arith.constant 0 : index
    %0 = vector.load %arg2[%c0, %c0_0, %c0_1, %c0_2] : memref<1x8x34x4xbf16, #tpu.memory_space<vmem>>, vector<1x8x34x4xbf16>
    %1 = vector.shape_cast %0 : vector<1x8x34x4xbf16> to vector<8x34x4xbf16>
    %c0_3 = arith.constant 0 : index
    %c0_4 = arith.constant 0 : index
    %c0_5 = arith.constant 0 : index
    %2 = vector.load %arg8[%c0_3, %c0_4, %c0_5] : memref<10x34x4xbf16, #tpu.memory_space<vmem>>, vector<8x34x4xbf16>
    tpu.vector_store %arg8[%c0_3, %c0_4, %c0_5], %1 {strides = array<i32>} : memref<10x34x4xbf16, #tpu.memory_space<vmem>>, vector<8x34x4xbf16>,
    %c0_6 = arith.constant 0 : index
    %c0_7 = arith.constant 0 : index
    %c0_8 = arith.constant 0 : index
    %c0_9 = arith.constant 0 : index
    %c0_10 = arith.constant 0 : index
    %3 = vector.load %arg3[%c0_6, %c0_7, %c0_8, %c0_9, %c0_10] : memref<1x1x2x34x4xbf16, #tpu.memory_space<vmem>>, vector<1x1x2x34x4xbf16>
    %4 = vector.shape_cast %3 : vector<1x1x2x34x4xbf16> to vector<2x34x4xbf16>
    %c8 = arith.constant 8 : index
    %c0_11 = arith.constant 0 : index
    %c0_12 = arith.constant 0 : index
    %5 = vector.load %arg8[%c8, %c0_11, %c0_12] : memref<10x34x4xbf16, #tpu.memory_space<vmem>>, vector<2x34x4xbf16>
    tpu.vector_store %arg8[%c8, %c0_11, %c0_12], %4 {strides = array<i32>} : memref<10x34x4xbf16, #tpu.memory_space<vmem>>, vector<2x34x4xbf16>,
    %c0_13 = arith.constant 0 : index
    %c0_14 = arith.constant 0 : index
    %c0_15 = arith.constant 0 : index
    %6 = vector.load %arg8[%c0_13, %c0_14, %c0_15] : memref<10x34x4xbf16, #tpu.memory_space<vmem>>, vector<8x32x4xbf16>
    %c0_16 = arith.constant 0 : index
    %c0_17 = arith.constant 0 : index
    %c0_18 = arith.constant 0 : index
    %7 = vector.load %arg9[%c0_16, %c0_17, %c0_18] : memref<8x32x36xbf16, #tpu.memory_space<vmem>>, vector<8x32x4xbf16>
    tpu.vector_store %arg9[%c0_16, %c0_17, %c0_18], %6 {strides = array<i32>} : memref<8x32x36xbf16, #tpu.memory_space<vmem>>, vector<8x32x4xbf16>,
    %c0_19 = arith.constant 0 : index
    %c1 = arith.constant 1 : index
    %c0_20 = arith.constant 0 : index
    %8 = vector.load %arg8[%c0_19, %c1, %c0_20] : memref<10x34x4xbf16, #tpu.memory_space<vmem>>, vector<8x32x4xbf16>
    %c0_21 = arith.constant 0 : index
    %c0_22 = arith.constant 0 : index
    %c4 = arith.constant 4 : index
    %9 = vector.load %arg9[%c0_21, %c0_22, %c4] : memref<8x32x36xbf16, #tpu.memory_space<vmem>>, vector<8x32x4xbf16>
    tpu.vector_store %arg9[%c0_21, %c0_22, %c4], %8 {strides = array<i32>} : memref<8x32x36xbf16, #tpu.memory_space<vmem>>, vector<8x32x4xbf16>,
    %c0_23 = arith.constant 0 : index
    %c2 = arith.constant 2 : index
    %c0_24 = arith.constant 0 : index
    %10 = vector.load %arg8[%c0_23, %c2, %c0_24] : memref<10x34x4xbf16, #tpu.memory_space<vmem>>, vector<8x32x4xbf16>
    %c0_25 = arith.constant 0 : index
    %c0_26 = arith.constant 0 : index
    %c8_27 = arith.constant 8 : index
    %11 = vector.load %arg9[%c0_25, %c0_26, %c8_27] : memref<8x32x36xbf16, #tpu.memory_space<vmem>>, vector<8x32x4xbf16>
    tpu.vector_store %arg9[%c0_25, %c0_26, %c8_27], %10 {strides = array<i32>} : memref<8x32x36xbf16, #tpu.memory_space<vmem>>, vector<8x32x4xbf16>,
    %c1_28 = arith.constant 1 : index
    %c0_29 = arith.constant 0 : index
    %c0_30 = arith.constant 0 : index
    %12 = vector.load %arg8[%c1_28, %c0_29, %c0_30] : memref<10x34x4xbf16, #tpu.memory_space<vmem>>, vector<8x32x4xbf16>
    %c0_31 = arith.constant 0 : index
    %c0_32 = arith.constant 0 : index
    %c12 = arith.constant 12 : index
    %13 = vector.load %arg9[%c0_31, %c0_32, %c12] : memref<8x32x36xbf16, #tpu.memory_space<vmem>>, vector<8x32x4xbf16>
    tpu.vector_store %arg9[%c0_31, %c0_32, %c12], %12 {strides = array<i32>} : memref<8x32x36xbf16, #tpu.memory_space<vmem>>, vector<8x32x4xbf16>,
    %c1_33 = arith.constant 1 : index
    %c1_34 = arith.constant 1 : index
    %c0_35 = arith.constant 0 : index
    %14 = vector.load %arg8[%c1_33, %c1_34, %c0_35] : memref<10x34x4xbf16, #tpu.memory_space<vmem>>, vector<8x32x4xbf16>
    %c0_36 = arith.constant 0 : index
    %c0_37 = arith.constant 0 : index
    %c16 = arith.constant 16 : index
    %15 = vector.load %arg9[%c0_36, %c0_37, %c16] : memref<8x32x36xbf16, #tpu.memory_space<vmem>>, vector<8x32x4xbf16>
    tpu.vector_store %arg9[%c0_36, %c0_37, %c16], %14 {strides = array<i32>} : memref<8x32x36xbf16, #tpu.memory_space<vmem>>, vector<8x32x4xbf16>,
    %c1_38 = arith.constant 1 : index
    %c2_39 = arith.constant 2 : index
    %c0_40 = arith.constant 0 : index
    %16 = vector.load %arg8[%c1_38, %c2_39, %c0_40] : memref<10x34x4xbf16, #tpu.memory_space<vmem>>, vector<8x32x4xbf16>
    %c0_41 = arith.constant 0 : index
    %c0_42 = arith.constant 0 : index
    %c20 = arith.constant 20 : index
    %17 = vector.load %arg9[%c0_41, %c0_42, %c20] : memref<8x32x36xbf16, #tpu.memory_space<vmem>>, vector<8x32x4xbf16>
    tpu.vector_store %arg9[%c0_41, %c0_42, %c20], %16 {strides = array<i32>} : memref<8x32x36xbf16, #tpu.memory_space<vmem>>, vector<8x32x4xbf16>,
    %c2_43 = arith.constant 2 : index
    %c0_44 = arith.constant 0 : index
    %c0_45 = arith.constant 0 : index
    %18 = vector.load %arg8[%c2_43, %c0_44, %c0_45] : memref<10x34x4xbf16, #tpu.memory_space<vmem>>, vector<8x32x4xbf16>
    %c0_46 = arith.constant 0 : index
    %c0_47 = arith.constant 0 : index
    %c24 = arith.constant 24 : index
    %19 = vector.load %arg9[%c0_46, %c0_47, %c24] : memref<8x32x36xbf16, #tpu.memory_space<vmem>>, vector<8x32x4xbf16>
    tpu.vector_store %arg9[%c0_46, %c0_47, %c24], %18 {strides = array<i32>} : memref<8x32x36xbf16, #tpu.memory_space<vmem>>, vector<8x32x4xbf16>,
    %c2_48 = arith.constant 2 : index
    %c1_49 = arith.constant 1 : index
    %c0_50 = arith.constant 0 : index
    %20 = vector.load %arg8[%c2_48, %c1_49, %c0_50] : memref<10x34x4xbf16, #tpu.memory_space<vmem>>, vector<8x32x4xbf16>
    %c0_51 = arith.constant 0 : index
    %c0_52 = arith.constant 0 : index
    %c28 = arith.constant 28 : index
    %21 = vector.load %arg9[%c0_51, %c0_52, %c28] : memref<8x32x36xbf16, #tpu.memory_space<vmem>>, vector<8x32x4xbf16>
    tpu.vector_store %arg9[%c0_51, %c0_52, %c28], %20 {strides = array<i32>} : memref<8x32x36xbf16, #tpu.memory_space<vmem>>, vector<8x32x4xbf16>,
    %c2_53 = arith.constant 2 : index
    %c2_54 = arith.constant 2 : index
    %c0_55 = arith.constant 0 : index
    %22 = vector.load %arg8[%c2_53, %c2_54, %c0_55] : memref<10x34x4xbf16, #tpu.memory_space<vmem>>, vector<8x32x4xbf16>
    %c0_56 = arith.constant 0 : index
    %c0_57 = arith.constant 0 : index
    %c32 = arith.constant 32 : index
    %23 = vector.load %arg9[%c0_56, %c0_57, %c32] : memref<8x32x36xbf16, #tpu.memory_space<vmem>>, vector<8x32x4xbf16>
    tpu.vector_store %arg9[%c0_56, %c0_57, %c32], %22 {strides = array<i32>} : memref<8x32x36xbf16, #tpu.memory_space<vmem>>, vector<8x32x4xbf16>,
    %c0_58 = arith.constant 0 : index
    %c0_59 = arith.constant 0 : index
    %c0_60 = arith.constant 0 : index
    %24 = vector.load %arg9[%c0_58, %c0_59, %c0_60] : memref<8x32x36xbf16, #tpu.memory_space<vmem>>, vector<8x32x36xbf16>
    %25 = vector.shape_cast %24 : vector<8x32x36xbf16> to vector<256x36xbf16>
    %c0_61 = arith.constant 0 : index
    %c0_62 = arith.constant 0 : index
    %26 = vector.load %arg4[%c0_61, %c0_62] : memref<36x128xbf16, #tpu.memory_space<vmem>>, vector<36x128xbf16>
    %cst = arith.constant dense<0.000000e+00> : vector<256x128xf32>
    %27 = tpu.matmul %25, %26, %cst {dimension_numbers = #tpu.dot_dimension_numbers<[1], [0], [0], [1], [0, 0, 1, 1], [], []>} : vector<256x36xbf16>, vector<36x128xbf16>, vector<256x128xf32> -> vector<256x128xf32>
    %c0_63 = arith.constant 0 : index
    %c0_64 = arith.constant 0 : index
    %28 = vector.load %arg5[%c0_63, %c0_64] : memref<1x128xf32, #tpu.memory_space<vmem>>, vector<1x128xf32>
    %29 = vector.broadcast %28 : vector<1x128xf32> to vector<256x128xf32>
    %30 = arith.addf %27, %29 : vector<256x128xf32>
    %31 = vector.shape_cast %30 : vector<256x128xf32> to vector<1x256x128xf32>
    %c0_65 = arith.constant 0 : index
    %c0_66 = arith.constant 0 : index
    %c0_67 = arith.constant 0 : index
    %32 = vector.load %arg6[%c0_65, %c0_66, %c0_67] : memref<1x256x128xf32, #tpu.memory_space<vmem>>, vector<1x256x128xf32>
    tpu.vector_store %arg6[%c0_65, %c0_66, %c0_67], %31 {strides = array<i32>} : memref<1x256x128xf32, #tpu.memory_space<vmem>>, vector<1x256x128xf32>,
    %cst_68 = arith.constant dense<0.000000e+00> : vector<128xf32>
    %33 = vector.multi_reduction <add>, %30, %cst_68 [0] : vector<256x128xf32> to vector<128xf32>
    %34 = vector.shape_cast %33 : vector<128xf32> to vector<1x128xf32>
    %c0_69 = arith.constant 0 : index
    %c0_70 = arith.constant 0 : index
    %c0_71 = arith.constant 0 : index
    %c0_72 = arith.constant 0 : index
    %35 = vector.load %arg7[%c0_69, %c0_70, %c0_71, %c0_72] : memref<1x1x2x128xf32, #tpu.memory_space<vmem>>, vector<1x1x1x128xf32>
    %36 = vector.shape_cast %35 : vector<1x1x1x128xf32> to vector<1x128xf32>
    %37 = vector.shape_cast %34 : vector<1x128xf32> to vector<1x1x1x128xf32>
    tpu.vector_store %arg7[%c0_69, %c0_70, %c0_71, %c0_72], %37 {strides = array<i32>} : memref<1x1x2x128xf32, #tpu.memory_space<vmem>>, vector<1x1x1x128xf32>,
    %38 = arith.mulf %30, %30 : vector<256x128xf32>
    %cst_73 = arith.constant dense<0.000000e+00> : vector<128xf32>
    %39 = vector.multi_reduction <add>, %38, %cst_73 [0] : vector<256x128xf32> to vector<128xf32>
    %40 = vector.shape_cast %39 : vector<128xf32> to vector<1x128xf32>
    %c0_74 = arith.constant 0 : index
    %c0_75 = arith.constant 0 : index
    %c1_76 = arith.constant 1 : index
    %c0_77 = arith.constant 0 : index
    %41 = vector.load %arg7[%c0_74, %c0_75, %c1_76, %c0_77] : memref<1x1x2x128xf32, #tpu.memory_space<vmem>>, vector<1x1x1x128xf32>
    %42 = vector.shape_cast %41 : vector<1x1x1x128xf32> to vector<1x128xf32>
    %43 = vector.shape_cast %40 : vector<1x128xf32> to vector<1x1x1x128xf32>
    tpu.vector_store %arg7[%c0_74, %c0_75, %c1_76, %c0_77], %43 {strides = array<i32>} : memref<1x1x2x128xf32, #tpu.memory_space<vmem>>, vector<1x1x1x128xf32>,
    return
  }
  func.func @transform_0(%arg0: i32, %arg1: i32) -> (i32, i32, i32, i32) {
    %c0_i32 = arith.constant 0 : i32
    %c0_i32_0 = arith.constant 0 : i32
    %c0_i32_1 = arith.constant 0 : i32
    return %arg0, %arg1, %c0_i32, %c0_i32_0 : i32, i32, i32, i32
  }
  func.func @transform_1(%arg0: i32, %arg1: i32) -> (i32, i32, i32, i32, i32) {
    %c0_i32 = arith.constant 0 : i32
    %c0_i32_0 = arith.constant 0 : i32
    %c0_i32_1 = arith.constant 0 : i32
    %c0_i32_2 = arith.constant 0 : i32
    return %arg0, %arg1, %c0_i32, %c0_i32_0, %c0_i32_1 : i32, i32, i32, i32, i32
  }
  func.func @transform_2(%arg0: i32, %arg1: i32) -> (i32, i32) {
    %c0_i32 = arith.constant 0 : i32
    %c0_i32_0 = arith.constant 0 : i32
    %c0_i32_1 = arith.constant 0 : i32
    return %c0_i32, %c0_i32_0 : i32, i32
  }
  func.func @transform_3(%arg0: i32, %arg1: i32) -> (i32, i32) {
    %c0_i32 = arith.constant 0 : i32
    %c0_i32_0 = arith.constant 0 : i32
    %c0_i32_1 = arith.constant 0 : i32
    return %c0_i32, %c0_i32_0 : i32, i32
  }
  func.func @transform_4(%arg0: i32, %arg1: i32) -> (i32, i32, i32) {
    %c0_i32 = arith.constant 0 : i32
    %c0_i32_0 = arith.constant 0 : i32
    return %arg0, %arg1, %c0_i32 : i32, i32, i32
  }
  func.func @transform_5(%arg0: i32, %arg1: i32) -> (i32, i32, i32, i32) {
    %c0_i32 = arith.constant 0 : i32
    %c0_i32_0 = arith.constant 0 : i32
    %c0_i32_1 = arith.constant 0 : i32
    return %arg0, %arg1, %c0_i32, %c0_i32_0 : i32, i32, i32, i32
  }
}

module attributes {stable_mosaic.version = 11 : i64} {
  func.func @_bn_prelu_kernel(%arg0: i32, %arg1: i32, %arg2: memref<1x256x128xf32, #tpu.memory_space<vmem>>, %arg3: memref<1x1x128xf32, #tpu.memory_space<vmem>>, %arg4: memref<1x1x128xf32, #tpu.memory_space<vmem>>, %arg5: memref<1xf32, #tpu.memory_space<smem>>, %arg6: memref<1x256x128xf32, #tpu.memory_space<vmem>>) attributes {dimension_semantics = [#tpu.dimension_semantics<parallel>, #tpu.dimension_semantics<parallel>], iteration_bounds = array<i64: 2, 4>, scalar_prefetch = 0 : i64, scratch_operands = 0 : i64, tpu.core_type = #tpu.core_type<tc>, window_params = [{transform_indices = @transform_0, window_bounds = array<i64: 1, 256, 128>}, {pipeline_mode = #tpu.pipeline_mode<synchronous>, transform_indices = @transform_1, window_bounds = array<i64: 1, 1, 128>}, {pipeline_mode = #tpu.pipeline_mode<synchronous>, transform_indices = @transform_2, window_bounds = array<i64: 1, 1, 128>}, {transform_indices = @transform_3, window_bounds = array<i64: 1>}, {transform_indices = @transform_4, window_bounds = array<i64: 1, 256, 128>}]} {
    %c0 = arith.constant 0 : index
    %c0_0 = arith.constant 0 : index
    %c0_1 = arith.constant 0 : index
    %0 = vector.load %arg2[%c0, %c0_0, %c0_1] : memref<1x256x128xf32, #tpu.memory_space<vmem>>, vector<1x256x128xf32>
    %c0_2 = arith.constant 0 : index
    %c0_3 = arith.constant 0 : index
    %c0_4 = arith.constant 0 : index
    %1 = vector.load %arg3[%c0_2, %c0_3, %c0_4] : memref<1x1x128xf32, #tpu.memory_space<vmem>>, vector<1x1x128xf32>
    %2 = vector.broadcast %1 : vector<1x1x128xf32> to vector<1x256x128xf32>
    %3 = arith.mulf %0, %2 : vector<1x256x128xf32>
    %c0_5 = arith.constant 0 : index
    %c0_6 = arith.constant 0 : index
    %c0_7 = arith.constant 0 : index
    %4 = vector.load %arg4[%c0_5, %c0_6, %c0_7] : memref<1x1x128xf32, #tpu.memory_space<vmem>>, vector<1x1x128xf32>
    %5 = vector.broadcast %4 : vector<1x1x128xf32> to vector<1x256x128xf32>
    %6 = arith.addf %3, %5 : vector<1x256x128xf32>
    %c0_8 = arith.constant 0 : index
    %7 = memref.load %arg5[%c0_8] : memref<1xf32, #tpu.memory_space<smem>>
    %cst = arith.constant 0.000000e+00 : f32
    %8 = vector.broadcast %cst : f32 to vector<1x256x128xf32>
    %9 = arith.cmpf oge, %6, %8 : vector<1x256x128xf32>
    %10 = vector.broadcast %7 : f32 to vector<1x256x128xf32>
    %11 = arith.mulf %10, %6 : vector<1x256x128xf32>
    %12 = arith.select %9, %6, %11 : vector<1x256x128xi1>, vector<1x256x128xf32>
    %c0_9 = arith.constant 0 : index
    %c0_10 = arith.constant 0 : index
    %c0_11 = arith.constant 0 : index
    %13 = vector.load %arg6[%c0_9, %c0_10, %c0_11] : memref<1x256x128xf32, #tpu.memory_space<vmem>>, vector<1x256x128xf32>
    tpu.vector_store %arg6[%c0_9, %c0_10, %c0_11], %12 {strides = array<i32>} : memref<1x256x128xf32, #tpu.memory_space<vmem>>, vector<1x256x128xf32>,
    return
  }
  func.func @transform_0(%arg0: i32, %arg1: i32) -> (i32, i32, i32) {
    %c0_i32 = arith.constant 0 : i32
    %c0_i32_0 = arith.constant 0 : i32
    return %arg0, %arg1, %c0_i32 : i32, i32, i32
  }
  func.func @transform_1(%arg0: i32, %arg1: i32) -> (i32, i32, i32) {
    %c0_i32 = arith.constant 0 : i32
    %c0_i32_0 = arith.constant 0 : i32
    %c0_i32_1 = arith.constant 0 : i32
    %c0_i32_2 = arith.constant 0 : i32
    return %c0_i32, %c0_i32_0, %c0_i32_1 : i32, i32, i32
  }
  func.func @transform_2(%arg0: i32, %arg1: i32) -> (i32, i32, i32) {
    %c0_i32 = arith.constant 0 : i32
    %c0_i32_0 = arith.constant 0 : i32
    %c0_i32_1 = arith.constant 0 : i32
    %c0_i32_2 = arith.constant 0 : i32
    return %c0_i32, %c0_i32_0, %c0_i32_1 : i32, i32, i32
  }
  func.func @transform_3(%arg0: i32, %arg1: i32) -> i32 {
    %c0_i32 = arith.constant 0 : i32
    %c0_i32_0 = arith.constant 0 : i32
    return %c0_i32 : i32
  }
  func.func @transform_4(%arg0: i32, %arg1: i32) -> (i32, i32, i32) {
    %c0_i32 = arith.constant 0 : i32
    %c0_i32_0 = arith.constant 0 : i32
    return %arg0, %arg1, %c0_i32 : i32, i32, i32
  }
}

</mosaic_0001>

<bundles_post_ra>
// kernel: psp_upsample_forward.3
= control target key start
LH: loop header
LB: loop body
LE: loop exit
PB: predicated region body
PF: predicated region fallthrough
CT: control target
= control target key end

     0   :  { %s691_s17 = smov 0   ;;  %s693_s18 = smov 0   ;;  %s921_s0 = inlined_call_operand.vmem [shape: f32[2,1024,128], index: 0, kind: input, shape index: {}]   ;;  %s922_s1 = inlined_call_operand.vmem [shape: f32[1,1,128], index: 1, kind: input, shape index: {}]   ;;  %s923_s2 = inlined_call_operand.vmem [shape: f32[1,1,128], index: 2, kind: input, shape index: {}]   ;;  %s924_s3 = inlined_call_operand.<no memory space> [shape: f32[1], index: 3, kind: input, shape index: {}]   ;;  %s925_s4 = inlined_call_operand.vmem [shape: f32[2,1024,128], index: 4, kind: output, shape index: {}]  }
   0x1   :  { %9 = sst [smem:[#allocation2]] %s924_s3  ;;  %s695_s19 = smov 0  }
   0x2   :  { %s697_s20 = smov 0   ;;  %s699_s21 = smov 0  }
   0x3 LB: > { %s24_s3 = sadd.s32 1, %s653_s19  ;;  %s27_s22 = sadd.s32 1, %s657_s20  ;;  %s661_s21 = sphi %s699_s21, %s15_s21   ;;  %s657_s20 = sphi %s697_s20, %s929_s20   ;;  %s653_s19 = sphi %s695_s19, %s928_s19   ;;  %s649_s18 = sphi %s693_s18, %s927_s18   ;;  %s645_s17 = sphi %s691_s17, %s926_s17  }
   0x4   : > { %p25_p0 = scmp.ge.s32.totalorder %s24_s3, 4  ;;  %p572_p1 = scmp.ge.s32.totalorder %s661_s21, 1 }
   0x5   : > { %p184_p2 = scmp.lt.s32.totalorder %s661_s21, 9 }
   0x6   : > { %s931_s3 = smov (%p25_p0, %s24_s3), 0  ;;  %s933_s22 = smov (!%p25_p0, %s27_s22), %s657_s20 }
   0x7   : > { %p185_p3 = pnand %p572_p1, %p184_p2  ;;  %p29_p4 = scmp.ge.s32.totalorder %s933_s22, 2 }
   0x8   : > { %s573_s23 = sshll.u32 (!%p185_p3), %s645_s17, 5  ;;  %p219_p5 = scmp.lt.s32.totalorder (!%p185_p3), %s649_s18, 1  ;;  %v727_v0 = vld [vmem:[%s922_s1] ss:$0 sm:$0xff] (!%p185_p3) }
   0x9   : > { %s935_s22 = smov (%p29_p4, %s933_s22), 0  ;;  %188 = sbr.rel (%p185_p3) target bundleno = 67 (0x43), region = 36 }
   0xa   : > { %p221_p6 = scmp.lt.s32.totalorder (!%p185_p3), %s573_s23, 127  ;;  %s348_s24 = sld [smem:[#allocation2]] (!%p185_p3)  ;;  %v737_v1 = vld [vmem:[%s923_s2] ss:$0 sm:$0xff] (!%p185_p3) }
  0x10   : > { %s937_s18 = smov (!%p219_p5, %s649_s18), 1  ;;  %s939_s23 = smov (!%p221_p6, %s573_s23), 127  ;;  %v748_v11 = vstv %s348_s24 }
  0x11   : > { %s574_s25 = sshll.u32 %s937_s18, 7 }
  0x12   : > { %s721_s26 = sadd.s32 %s574_s25, %s939_s23 }
  0x13   : > { %s575_s27 = sshll.u32 %s721_s26, 3 }
  0x14   : > { %s732_s6 = scalar_lea.vmem %s921_s0, %s575_s27  ;;  %s766_s11 = scalar_lea.vmem %s925_s4, %s575_s27 }
  0x15   : > { %v238_v2 = vld [vmem:[%s732_s6] sm:$0xff]  ;;  %v239_v3 = vld [vmem:[%s732_s6 + $0x8] sm:$0xff]  ;;  %v240_v4 = vld [vmem:[%s732_s6 + $0x10] sm:$0xff] }
  0x16   : > { %v277_v5 = vmul.f32 %v727_v0, %v238_v2  ;;  %v278_v6 = vmul.f32 %v727_v0, %v239_v3  ;;  %v279_v7 = vmul.f32 %v727_v0, %v240_v4  ;;  %v241_v8 = vld [vmem:[%s732_s6 + $0x18] sm:$0xff]  ;;  %v242_v9 = vld [vmem:[%s732_s6 + $0x20] sm:$0xff]  ;;  %v243_v10 = vld [vmem:[%s732_s6 + $0x28] sm:$0xff] }
  0x17   : > { %v280_v12 = vmul.f32 %v727_v0, %v241_v8  ;;  %v281_v13 = vmul.f32 %v727_v0, %v242_v9  ;;  %v282_v14 = vmul.f32 %v727_v0, %v243_v10  ;;  %v244_v15 = vld [vmem:[%s732_s6 + $0x30] sm:$0xff]  ;;  %v245_v16 = vld [vmem:[%s732_s6 + $0x38] sm:$0xff]  ;;  %v246_v29 = vld [vmem:[%s732_s6 + $0x40] sm:$0xff] }
  0x18   : > { %v316_v17 = vadd.f32 %v737_v1, %v277_v5  ;;  %v317_v18 = vadd.f32 %v737_v1, %v278_v6  ;;  %v318_v19 = vadd.f32 %v737_v1, %v279_v7  ;;  %v283_v20 = vmul.f32 %v727_v0, %v244_v15  ;;  %v247_v33 = vld [vmem:[%s732_s6 + $0x48] sm:$0xff]  ;;  %v248_v34 = vld [vmem:[%s732_s6 + $0x50] sm:$0xff]  ;;  %v249_v35 = vld [vmem:[%s732_s6 + $0x58] sm:$0xff] }
  0x19   : > { %v319_v21 = vadd.f32 %v737_v1, %v280_v12  ;;  %v320_v22 = vadd.f32 %v737_v1, %v281_v13  ;;  %v321_v23 = vadd.f32 %v737_v1, %v282_v14  ;;  %v284_v24 = vmul.f32 %v727_v0, %v245_v16  ;;  %v250_v47 = vld [vmem:[%s732_s6 + $0x60] sm:$0xff]  ;;  %v251_v48 = vld [vmem:[%s732_s6 + $0x68] sm:$0xff]  ;;  %v252_v61 = vld [vmem:[%s732_s6 + $0x70] sm:$0xff] }
  0x1a   : > { %vm349_vm0 = vcmp.ge.f32.partialorder %v316_v17, 0.0  ;;  %v382_v25 = vmul.f32 %v748_v11, %v316_v17  ;;  %vm350_vm1 = vcmp.ge.f32.partialorder %v317_v18, 0.0  ;;  %v383_v26 = vmul.f32 %v748_v11, %v317_v18  ;;  %v253_v62 = vld [vmem:[%s732_s6 + $0x78] sm:$0xff]  ;;  %v254_v7 = vld [vmem:[%s732_s6 + $0x80] sm:$0xff]  ;;  %v255_v8 = vld [vmem:[%s732_s6 + $0x88] sm:$0xff] }
  0x1b   : > { %vm351_vm2 = vcmp.ge.f32.partialorder %v318_v19, 0.0  ;;  %v384_v27 = vmul.f32 %v748_v11, %v318_v19  ;;  %vm352_vm3 = vcmp.ge.f32.partialorder %v319_v21, 0.0  ;;  %v385_v28 = vmul.f32 %v748_v11, %v319_v21  ;;  %v256_v14 = vld [vmem:[%s732_s6 + $0x90] sm:$0xff]  ;;  %v257_v15 = vld [vmem:[%s732_s6 + $0x98] sm:$0xff] }
  0x1c   : > { %v414_v30 = vsel %vm349_vm0, %v316_v17, %v382_v25  ;;  %v415_v31 = vsel %vm350_vm1, %v317_v18, %v383_v26  ;;  %vm353_vm4 = vcmp.ge.f32.partialorder %v320_v22, 0.0  ;;  %v386_v32 = vmul.f32 %v748_v11, %v320_v22  ;;  %v258_v26 = vld [vmem:[%s732_s6 + $0xa0] sm:$0xff] }
  0x1d   : > { %446 = vst [vmem:[%s766_s11] sm:$0xff] %v414_v30  ;;  %447 = vst [vmem:[%s766_s11 + $0x8] sm:$0xff] %v415_v31  ;;  %v416_v36 = vsel %vm351_vm2, %v318_v19, %v384_v27  ;;  %v417_v37 = vsel %vm352_vm3, %v319_v21, %v385_v28  ;;  %vm354_vm5 = vcmp.ge.f32.partialorder %v321_v23, 0.0  ;;  %v387_v38 = vmul.f32 %v748_v11, %v321_v23  ;;  %v259_v27 = vld [vmem:[%s732_s6 + $0xa8] sm:$0xff] }
  0x1e   : > { %448 = vst [vmem:[%s766_s11 + $0x10] sm:$0xff] %v416_v36  ;;  %449 = vst [vmem:[%s766_s11 + $0x18] sm:$0xff] %v417_v37  ;;  %v418_v39 = vsel %vm353_vm4, %v320_v22, %v386_v32  ;;  %v322_v40 = vadd.f32 %v737_v1, %v283_v20  ;;  %v323_v41 = vadd.f32 %v737_v1, %v284_v24 }
  0x1f   : > { %v285_v42 = vmul.f32 %v727_v0, %v246_v29  ;;  %450 = vst [vmem:[%s766_s11 + $0x20] sm:$0xff] %v418_v39  ;;  %v419_v43 = vsel %vm354_vm5, %v321_v23, %v387_v38  ;;  %v286_v44 = vmul.f32 %v727_v0, %v247_v33  ;;  %v287_v45 = vmul.f32 %v727_v0, %v248_v34 }
  0x20   : > { %v288_v46 = vmul.f32 %v727_v0, %v249_v35  ;;  %451 = vst [vmem:[%s766_s11 + $0x28] sm:$0xff] %v419_v43  ;;  %vm355_vm6 = vcmp.ge.f32.partialorder %v322_v40, 0.0  ;;  %v388_v49 = vmul.f32 %v748_v11, %v322_v40  ;;  %vm356_vm7 = vcmp.ge.f32.partialorder %v323_v41, 0.0 }
  0x21   : > { %v389_v50 = vmul.f32 %v748_v11, %v323_v41  ;;  %v324_v51 = vadd.f32 %v737_v1, %v285_v42  ;;  %v325_v52 = vadd.f32 %v737_v1, %v286_v44  ;;  %v326_v53 = vadd.f32 %v737_v1, %v287_v45 }
  0x22   : > { %v327_v54 = vadd.f32 %v737_v1, %v288_v46  ;;  %v420_v55 = vsel %vm355_vm6, %v322_v40, %v388_v49  ;;  %v289_v57 = vmul.f32 %v727_v0, %v250_v47  ;;  %v290_v58 = vmul.f32 %v727_v0, %v251_v48  ;;  %v260_v40 = vld [vmem:[%s732_s6 + $0xb0] sm:$0xff]  ;;  %v262_v48 = vld [vmem:[%s732_s6 + $0xc0] sm:$0xff]  ;;  %v263_v49 = vld [vmem:[%s732_s6 + $0xc8] sm:$0xff] }
  0x23   : > { %v421_v56 = vsel %vm356_vm7, %v323_v41, %v389_v50  ;;  %452 = vst [vmem:[%s766_s11 + $0x30] sm:$0xff] %v420_v55  ;;  %vm357_vm8 = vcmp.ge.f32.partialorder %v324_v51, 0.0  ;;  %v390_v59 = vmul.f32 %v748_v11, %v324_v51  ;;  %vm358_vm9 = vcmp.ge.f32.partialorder %v325_v52, 0.0  ;;  %v261_v41 = vld [vmem:[%s732_s6 + $0xb8] sm:$0xff] }
  0x24   : > { %453 = vst [vmem:[%s766_s11 + $0x38] sm:$0xff] %v421_v56  ;;  %v391_v60 = vmul.f32 %v748_v11, %v325_v52  ;;  %vm359_vm10 = vcmp.ge.f32.partialorder %v326_v53, 0.0  ;;  %v392_v63 = vmul.f32 %v748_v11, %v326_v53  ;;  %vm360_vm11 = vcmp.ge.f32.partialorder %v327_v54, 0.0  ;;  %v265_v55 = vld [vmem:[%s732_s6 + $0xd8] sm:$0xff] }
  0x25   : > { %v393_v2 = vmul.f32 %v748_v11, %v327_v54  ;;  %v422_v3 = vsel %vm357_vm8, %v324_v51, %v390_v59  ;;  %v328_v5 = vadd.f32 %v737_v1, %v289_v57  ;;  %v329_v6 = vadd.f32 %v737_v1, %v290_v58 }
  0x26   : > { %v423_v4 = vsel %vm358_vm9, %v325_v52, %v391_v60  ;;  %454 = vst [vmem:[%s766_s11 + $0x40] sm:$0xff] %v422_v3  ;;  %v424_v9 = vsel %vm359_vm10, %v326_v53, %v392_v63  ;;  %v291_v12 = vmul.f32 %v727_v0, %v252_v61  ;;  %v292_v13 = vmul.f32 %v727_v0, %v253_v62 }
  0x27   : > { %455 = vst [vmem:[%s766_s11 + $0x48] sm:$0xff] %v423_v4  ;;  %v425_v10 = vsel %vm360_vm11, %v327_v54, %v393_v2  ;;  %456 = vst [vmem:[%s766_s11 + $0x50] sm:$0xff] %v424_v9  ;;  %vm361_vm12 = vcmp.ge.f32.partialorder %v328_v5, 0.0  ;;  %v394_v16 = vmul.f32 %v748_v11, %v328_v5  ;;  %vm362_vm13 = vcmp.ge.f32.partialorder %v329_v6, 0.0  ;;  %v264_v54 = vld [vmem:[%s732_s6 + $0xd0] sm:$0xff]  ;;  %v266_v4 = vld [vmem:[%s732_s6 + $0xe0] sm:$0xff] }
  0x28   : > { %457 = vst [vmem:[%s766_s11 + $0x58] sm:$0xff] %v425_v10  ;;  %v395_v17 = vmul.f32 %v748_v11, %v329_v6  ;;  %v330_v18 = vadd.f32 %v737_v1, %v291_v12  ;;  %v331_v19 = vadd.f32 %v737_v1, %v292_v13  ;;  %v293_v20 = vmul.f32 %v727_v0, %v254_v7 }
  0x29   : > { %v294_v21 = vmul.f32 %v727_v0, %v255_v8  ;;  %v426_v22 = vsel %vm361_vm12, %v328_v5, %v394_v16  ;;  %v295_v24 = vmul.f32 %v727_v0, %v256_v14  ;;  %v296_v25 = vmul.f32 %v727_v0, %v257_v15  ;;  %v267_v5 = vld [vmem:[%s732_s6 + $0xe8] sm:$0xff] }
  0x2a   : > { %v427_v23 = vsel %vm362_vm13, %v329_v6, %v395_v17  ;;  %458 = vst [vmem:[%s766_s11 + $0x60] sm:$0xff] %v426_v22  ;;  %vm363_vm14 = vcmp.ge.f32.partialorder %v330_v18, 0.0  ;;  %v396_v28 = vmul.f32 %v748_v11, %v330_v18  ;;  %vm364_vm15 = vcmp.ge.f32.partialorder %v331_v19, 0.0 }
  0x2b   : > { %459 = vst [vmem:[%s766_s11 + $0x68] sm:$0xff] %v427_v23  ;;  %v397_v29 = vmul.f32 %v748_v11, %v331_v19  ;;  %v332_v30 = vadd.f32 %v737_v1, %v293_v20  ;;  %v333_v31 = vadd.f32 %v737_v1, %v294_v21  ;;  %v334_v32 = vadd.f32 %v737_v1, %v295_v24  ;;  %v269_v20 = vld [vmem:[%s732_s6 + $0xf8] sm:$0xff] }
  0x2c   : > { %v335_v33 = vadd.f32 %v737_v1, %v296_v25  ;;  %v428_v34 = vsel %vm363_vm14, %v330_v18, %v396_v28  ;;  %v297_v36 = vmul.f32 %v727_v0, %v258_v26  ;;  %v298_v37 = vmul.f32 %v727_v0, %v259_v27 }
  0x2d   : > { %v429_v35 = vsel %vm364_vm15, %v331_v19, %v397_v29  ;;  %460 = vst [vmem:[%s766_s11 + $0x70] sm:$0xff] %v428_v34  ;;  %vm365_vm0 = vcmp.ge.f32.partialorder %v332_v30, 0.0  ;;  %v398_v38 = vmul.f32 %v748_v11, %v332_v30  ;;  %vm366_vm1 = vcmp.ge.f32.partialorder %v333_v31, 0.0  ;;  %v268_v19 = vld [vmem:[%s732_s6 + $0xf0] sm:$0xff] }
  0x2e   : > { %461 = vst [vmem:[%s766_s11 + $0x78] sm:$0xff] %v429_v35  ;;  %v399_v39 = vmul.f32 %v748_v11, %v333_v31  ;;  %vm367_vm2 = vcmp.ge.f32.partialorder %v334_v32, 0.0  ;;  %v400_v42 = vmul.f32 %v748_v11, %v334_v32  ;;  %vm368_vm3 = vcmp.ge.f32.partialorder %v335_v33, 0.0 }
  0x2f   : > { %v401_v43 = vmul.f32 %v748_v11, %v335_v33  ;;  %v430_v44 = vsel %vm365_vm0, %v332_v30, %v398_v38  ;;  %v336_v46 = vadd.f32 %v737_v1, %v297_v36  ;;  %v337_v47 = vadd.f32 %v737_v1, %v298_v37 }
  0x30   : > { %v431_v45 = vsel %vm366_vm1, %v333_v31, %v399_v39  ;;  %462 = vst [vmem:[%s766_s11 + $0x80] sm:$0xff] %v430_v44  ;;  %v432_v50 = vsel %vm367_vm2, %v334_v32, %v400_v42  ;;  %v299_v52 = vmul.f32 %v727_v0, %v260_v40  ;;  %v300_v53 = vmul.f32 %v727_v0, %v261_v41 }
  0x31   : > { %463 = vst [vmem:[%s766_s11 + $0x88] sm:$0xff] %v431_v45  ;;  %v433_v51 = vsel %vm368_vm3, %v335_v33, %v401_v43  ;;  %464 = vst [vmem:[%s766_s11 + $0x90] sm:$0xff] %v432_v50  ;;  %vm369_vm4 = vcmp.ge.f32.partialorder %v336_v46, 0.0  ;;  %v402_v56 = vmul.f32 %v748_v11, %v336_v46  ;;  %vm370_vm5 = vcmp.ge.f32.partialorder %v337_v47, 0.0 }
  0x32   : > { %465 = vst [vmem:[%s766_s11 + $0x98] sm:$0xff] %v433_v51  ;;  %v403_v57 = vmul.f32 %v748_v11, %v337_v47  ;;  %v338_v58 = vadd.f32 %v737_v1, %v299_v52  ;;  %v339_v59 = vadd.f32 %v737_v1, %v300_v53  ;;  %v301_v60 = vmul.f32 %v727_v0, %v262_v48 }
  0x33   : > { %v302_v61 = vmul.f32 %v727_v0, %v263_v49  ;;  %v434_v62 = vsel %vm369_vm4, %v336_v46, %v402_v56  ;;  %v303_v2 = vmul.f32 %v727_v0, %v264_v54  ;;  %v304_v3 = vmul.f32 %v727_v0, %v265_v55 }
  0x34   : > { %v435_v63 = vsel %vm370_vm5, %v337_v47, %v403_v57  ;;  %466 = vst [vmem:[%s766_s11 + $0xa0] sm:$0xff] %v434_v62  ;;  %vm371_vm6 = vcmp.ge.f32.partialorder %v338_v58, 0.0  ;;  %v404_v6 = vmul.f32 %v748_v11, %v338_v58  ;;  %vm372_vm7 = vcmp.ge.f32.partialorder %v339_v59, 0.0 }
  0x35   : > { %467 = vst [vmem:[%s766_s11 + $0xa8] sm:$0xff] %v435_v63  ;;  %v405_v7 = vmul.f32 %v748_v11, %v339_v59  ;;  %v340_v8 = vadd.f32 %v737_v1, %v301_v60  ;;  %v341_v9 = vadd.f32 %v737_v1, %v302_v61  ;;  %v342_v10 = vadd.f32 %v737_v1, %v303_v2 }
  0x36   : > { %v343_v12 = vadd.f32 %v737_v1, %v304_v3  ;;  %v436_v13 = vsel %vm371_vm6, %v338_v58, %v404_v6  ;;  %v305_v15 = vmul.f32 %v727_v0, %v266_v4  ;;  %v306_v16 = vmul.f32 %v727_v0, %v267_v5 }
  0x37   : > { %v437_v14 = vsel %vm372_vm7, %v339_v59, %v405_v7  ;;  %468 = vst [vmem:[%s766_s11 + $0xb0] sm:$0xff] %v436_v13  ;;  %vm373_vm8 = vcmp.ge.f32.partialorder %v340_v8, 0.0  ;;  %v406_v17 = vmul.f32 %v748_v11, %v340_v8  ;;  %vm374_vm9 = vcmp.ge.f32.partialorder %v341_v9, 0.0 }
  0x38   : > { %469 = vst [vmem:[%s766_s11 + $0xb8] sm:$0xff] %v437_v14  ;;  %v407_v18 = vmul.f32 %v748_v11, %v341_v9  ;;  %vm375_vm10 = vcmp.ge.f32.partialorder %v342_v10, 0.0  ;;  %v408_v21 = vmul.f32 %v748_v11, %v342_v10  ;;  %vm376_vm11 = vcmp.ge.f32.partialorder %v343_v12, 0.0 }
  0x39   : > { %v409_v22 = vmul.f32 %v748_v11, %v343_v12  ;;  %v438_v23 = vsel %vm373_vm8, %v340_v8, %v406_v17  ;;  %v344_v25 = vadd.f32 %v737_v1, %v305_v15  ;;  %v345_v26 = vadd.f32 %v737_v1, %v306_v16 }
  0x3a   : > { %v439_v24 = vsel %vm374_vm9, %v341_v9, %v407_v18  ;;  %470 = vst [vmem:[%s766_s11 + $0xc0] sm:$0xff] %v438_v23  ;;  %v440_v27 = vsel %vm375_vm10, %v342_v10, %v408_v21  ;;  %v307_v29 = vmul.f32 %v727_v0, %v268_v19  ;;  %v308_v30 = vmul.f32 %v727_v0, %v269_v20 }
  0x3b   : > { %471 = vst [vmem:[%s766_s11 + $0xc8] sm:$0xff] %v439_v24  ;;  %v441_v28 = vsel %vm376_vm11, %v343_v12, %v409_v22  ;;  %472 = vst [vmem:[%s766_s11 + $0xd0] sm:$0xff] %v440_v27  ;;  %vm377_vm12 = vcmp.ge.f32.partialorder %v344_v25, 0.0  ;;  %v410_v31 = vmul.f32 %v748_v11, %v344_v25  ;;  %vm378_vm13 = vcmp.ge.f32.partialorder %v345_v26, 0.0 }
  0x3c   : > { %473 = vst [vmem:[%s766_s11 + $0xd8] sm:$0xff] %v441_v28  ;;  %v411_v32 = vmul.f32 %v748_v11, %v345_v26  ;;  %v346_v33 = vadd.f32 %v737_v1, %v307_v29  ;;  %v347_v34 = vadd.f32 %v737_v1, %v308_v30 }
  0x3d   : > { %v442_v35 = vsel %vm377_vm12, %v344_v25, %v410_v31 }
  0x3e   : > { %v443_v36 = vsel %vm378_vm13, %v345_v26, %v411_v32  ;;  %474 = vst [vmem:[%s766_s11 + $0xe0] sm:$0xff] %v442_v35  ;;  %vm379_vm14 = vcmp.ge.f32.partialorder %v346_v33, 0.0  ;;  %v412_v0 = vmul.f32 %v748_v11, %v346_v33  ;;  %vm380_vm15 = vcmp.ge.f32.partialorder %v347_v34, 0.0 }
  0x3f   : > { %475 = vst [vmem:[%s766_s11 + $0xe8] sm:$0xff] %v443_v36  ;;  %v413_v37 = vmul.f32 %v748_v11, %v347_v34 }
  0x40   : > { %v444_v38 = vsel %vm379_vm14, %v346_v33, %v412_v0 }
  0x41   : > { %v445_v39 = vsel %vm380_vm15, %v347_v34, %v413_v37  ;;  %476 = vst [vmem:[%s766_s11 + $0xf0] sm:$0xff] %v444_v38 }
  0x42   : > { %477 = vst [vmem:[%s766_s11 + $0xf8] sm:$0xff] %v445_v39 }
  0x43 PF: > { %s15_s21 = sadd.s32 1, %s661_s21   ;;  %s926_s17 = smov %s653_s19 }
  0x44   : > { %p12_p7 = scmp.ge.s32.totalorder %s15_s21, 10   ;;  %s927_s18 = smov %s657_s20 }
  0x45   : > { %s928_s19 = smov %s931_s3  ;;  %s929_s20 = smov %s935_s22 }
  0x46   :  { %14 = sbr.rel (!%p12_p7) target bundleno = 3 (0x3), region = 66 }

// kernel: psp_upsample_forward.2
= control target key start
LH: loop header
LB: loop body
LE: loop exit
PB: predicated region body
PF: predicated region fallthrough
CT: control target
= control target key end

     0   :  { %s3983_s18 = smov 0   ;;  %s3985_s19 = smov 0   ;;  %s4716_s0 = inlined_call_operand.vmem [shape: bf16[2,34,34,4], index: 0, kind: input, shape index: {}]   ;;  %s4717_s1 = inlined_call_operand.vmem [shape: bf16[2,4,2,34,4], index: 1, kind: input, shape index: {}]   ;;  %s4718_s2 = inlined_call_operand.vmem [shape: bf16[36,128], index: 2, kind: input, shape index: {}]   ;;  %s4719_s3 = inlined_call_operand.vmem [shape: f32[1,128], index: 3, kind: input, shape index: {}]   ;;  %s4720_s4 = inlined_call_operand.vmem [shape: f32[2,1024,128], index: 4, kind: output, shape index: {0}]   ;;  %s4721_s5 = inlined_call_operand.vmem [shape: f32[2,4,2,128], index: 5, kind: output, shape index: {1}]  }
   0x1   :  { %s3987_s20 = smov 0   ;;  %s3989_s21 = smov 0  }
   0x2   :  { %s3991_s22 = smov 0  }
   0x3 LB: > { %s25_s23 = sadd.s32 1, %s3935_s20  ;;  %s28_s24 = sadd.s32 1, %s3939_s21  ;;  %s3943_s22 = sphi %s3991_s22, %s16_s22   ;;  %s3939_s21 = sphi %s3989_s21, %s4725_s21   ;;  %s3935_s20 = sphi %s3987_s20, %s4724_s20   ;;  %s3931_s19 = sphi %s3985_s19, %s4723_s19   ;;  %s3927_s18 = sphi %s3983_s18, %s4722_s18  }
   0x4   : > { %p26_p0 = scmp.ge.s32.totalorder %s25_s23, 4  ;;  %p3370_p1 = scmp.ge.s32.totalorder %s3943_s22, 1 }
   0x5   : > { %p240_p2 = scmp.lt.s32.totalorder %s3943_s22, 9 }
   0x6   : > { %s4727_s23 = smov (%p26_p0, %s25_s23), 0  ;;  %s4729_s24 = smov (!%p26_p0, %s28_s24), %s3939_s21 }
   0x7   : > { %p241_p3 = pnand %p3370_p1, %p240_p2  ;;  %p30_p4 = scmp.ge.s32.totalorder %s4729_s24, 2 }
   0x8   : > { %s3371_s25 = sshll.u32 (!%p241_p3), %s3927_s18, 3  ;;  %p305_p5 = scmp.lt.s32.totalorder (!%p241_p3), %s3931_s19, 1  ;;  %vm388_vm0 = vcmask (!%p241_p3), 27648   ;;  %vm393_vm1 = vcmask (!%p241_p3), 24576   ;;  %vm1110_vm2 = vcmask (!%p241_p3), 1046528   ;;  %vm579_vm4 = vcmask (!%p241_p3), 31744  }
   0x9   : > { %s4731_s24 = smov (%p30_p4, %s4729_s24), 0  ;;  %244 = sbr.rel (%p241_p3) target bundleno = 653 (0x28d), region = 36 }
   0xa   : > { %p307_p6 = scmp.lt.s32.totalorder (!%p241_p3), %s3371_s25, 33  ;;  %s3945_s8 = smov (!%p241_p3), 12   ;;  %vm740_vm3 = vsmask.f32 (!%p241_p3), 7424  ;;  %vm2900_vm5 = vcmask (!%p241_p3), 1041408   ;;  %vm949_vm6 = vcmask (!%p241_p3), 64544  }
   0xb   : > { %s3946_s9 = smov (!%p241_p3), 24   ;;  %s3947_s10 = smov (!%p241_p3), 20   ;;  %vm1199_vm7 = vcmask (!%p241_p3), 97344   ;;  %vm1377_vm8 = vcmask (!%p241_p3), 130144   ;;  %vm1746_vm9 = vcmask (!%p241_p3), 162944   ;;  %vm1995_vm10 = vcmask (!%p241_p3), 195744  }
   0xc   : > { %s3948_s11 = smov (!%p241_p3), 8   ;;  %s3949_s12 = smov (!%p241_p3), 32   ;;  %vm2173_vm11 = vcmask (!%p241_p3), 228544   ;;  %vm2542_vm12 = vcmask (!%p241_p3), 261344   ;;  %vm2791_vm13 = vcmask (!%p241_p3), 294144   ;;  %vm2851_vm14 = vcmask (!%p241_p3), 293888  }
   0xd   : > { %s3950_s13 = smov (!%p241_p3), 4   ;;  %s3951_s14 = smov (!%p241_p3), 16  }
   0xe   : > { %s3952_s15 = smov (!%p241_p3), 28   ;;  %p322_p7 = scmp.lt.s32.totalorder (!%p241_p3), %s3927_s18, 3 }
  0x10   : > { %s4733_s19 = smov (!%p305_p5, %s3931_s19), 1  ;;  %s4735_s25 = smov (!%p307_p6, %s3371_s25), 33 }
  0x11   : > { %s3659_s26 = smul.u32 170, %s4733_s19 }
  0x12   : > { %s3658_s27 = smul.u32 5, %s4735_s25 }
  0x13   : > { %s3661_s6 = smul.u32 40, %s4733_s19 }
  0x14   : > { %s311_s28 = sadd.s32 %s3659_s26, %s3658_s27  ;;  %s3377_s27 = sshll.u32 %s4733_s19, 2 }
  0x15   : > { %s3372_s29 = sshll.u32 %s311_s28, 2 }
  0x16   : > { %s4022_s7 = scalar_lea.vmem %s4716_s0, %s3372_s29 }
  0x17   : > { %v353_v0 = vld [vmem:[%s4022_s7 + $0x14] sm:$0xf]  ;;  %v354_v1 = vld [vmem:[%s4022_s7 + $0x18] sm:$0xf]  ;;  %v355_v2 = vld [vmem:[%s4022_s7 + $0x1c] sm:$0xf] }
  0x18   : > { %395 = vst.msk [vmem:[#allocation2 + $0x14] sm:$0xf] %vm388_vm0, %v353_v0  ;;  %396 = vst.msk [vmem:[#allocation2 + $0x18] sm:$0xf] %vm388_vm0, %v354_v1  ;;  %v356_v3 = vld [vmem:[%s4022_s7 + $0x20] sm:$0xf] }
  0x19   : > { %397 = vst.msk [vmem:[#allocation2 + $0x1c] sm:$0xf] %vm388_vm0, %v355_v2  ;;  %v358_v4 = vld [vmem:[%s4022_s7 + $0x28] sm:$0xf]  ;;  %v359_v5 = vld [vmem:[%s4022_s7 + $0x2c] sm:$0xf] }
  0x1a   : > { %398 = vst.msk [vmem:[#allocation2 + $0x20] sm:$0xf] %vm388_vm0, %v356_v3  ;;  %400 = vst.msk [vmem:[#allocation2 + $0x28] sm:$0xf] %vm388_vm0, %v358_v4  ;;  %v360_v6 = vld [vmem:[%s4022_s7 + $0x30] sm:$0xf] }
  0x1b   : > { %401 = vst.msk [vmem:[#allocation2 + $0x2c] sm:$0xf] %vm388_vm0, %v359_v5  ;;  %v361_v7 = vld [vmem:[%s4022_s7 + $0x34] sm:$0xf]  ;;  %v348_v8 = vld [vmem:[%s4022_s7] sm:$0xf] }
  0x1c   : > { %402 = vst.msk [vmem:[#allocation2 + $0x30] sm:$0xf] %vm388_vm0, %v360_v6  ;;  %403 = vst.msk [vmem:[#allocation2 + $0x34] sm:$0xf] %vm388_vm0, %v361_v7  ;;  %v349_v9 = vld [vmem:[%s4022_s7 + $0x4] sm:$0xf] }
  0x1d   : > { %v350_v10 = vld [vmem:[%s4022_s7 + $0x8] sm:$0xf]  ;;  %v351_v11 = vld [vmem:[%s4022_s7 + $0xc] sm:$0xf]  ;;  %389 = vst.msk [vmem:[#allocation2] sm:$0xf] %vm388_vm0, %v348_v8 }
  0x1e   : > { %390 = vst.msk [vmem:[#allocation2 + $0x4] sm:$0xf] %vm388_vm0, %v349_v9  ;;  %391 = vst.msk [vmem:[#allocation2 + $0x8] sm:$0xf] %vm388_vm0, %v350_v10  ;;  %v352_v12 = vld [vmem:[%s4022_s7 + $0x10] sm:$0x1] }
  0x1f   : > { %392 = vst.msk [vmem:[#allocation2 + $0xc] sm:$0xf] %vm388_vm0, %v351_v11  ;;  %v357_v13 = vld [vmem:[%s4022_s7 + $0x24] sm:$0x1]  ;;  %v362_v14 = vld [vmem:[%s4022_s7 + $0x38] sm:$0x1] }
  0x20   : > { %394 = vst.msk [vmem:[#allocation2 + $0x10] sm:$0x1] %vm393_vm1, %v352_v12  ;;  %399 = vst.msk [vmem:[#allocation2 + $0x24] sm:$0x1] %vm393_vm1, %v357_v13  ;;  %v363_v15 = vld [vmem:[%s4022_s7 + $0x3c] sm:$0xf] }
  0x21   : > { %404 = vst.msk [vmem:[#allocation2 + $0x38] sm:$0x1] %vm393_vm1, %v362_v14  ;;  %v364_v16 = vld [vmem:[%s4022_s7 + $0x40] sm:$0xf]  ;;  %v365_v17 = vld [vmem:[%s4022_s7 + $0x44] sm:$0xf] }
  0x22   : > { %405 = vst.msk [vmem:[#allocation2 + $0x3c] sm:$0xf] %vm388_vm0, %v363_v15  ;;  %406 = vst.msk [vmem:[#allocation2 + $0x40] sm:$0xf] %vm388_vm0, %v364_v16  ;;  %v366_v18 = vld [vmem:[%s4022_s7 + $0x48] sm:$0xf] }
  0x23   : > { %407 = vst.msk [vmem:[#allocation2 + $0x44] sm:$0xf] %vm388_vm0, %v365_v17  ;;  %v367_v19 = vld [vmem:[%s4022_s7 + $0x4c] sm:$0x1]  ;;  %v368_v20 = vld [vmem:[%s4022_s7 + $0x50] sm:$0xf] }
  0x24   : > { %408 = vst.msk [vmem:[#allocation2 + $0x48] sm:$0xf] %vm388_vm0, %v366_v18  ;;  %v369_v21 = vld [vmem:[%s4022_s7 + $0x54] sm:$0xf]  ;;  %410 = vst.msk [vmem:[#allocation2 + $0x50] sm:$0xf] %vm388_vm0, %v368_v20 }
  0x25   : > { %409 = vst.msk [vmem:[#allocation2 + $0x4c] sm:$0x1] %vm393_vm1, %v367_v19  ;;  %v370_v22 = vld [vmem:[%s4022_s7 + $0x58] sm:$0xf]  ;;  %v371_v23 = vld [vmem:[%s4022_s7 + $0x5c] sm:$0xf] }
  0x26   : > { %v3710_v24 = vld [vmem:[#allocation2 + $0x14] sm:$0xff]   ;;  %411 = vst.msk [vmem:[#allocation2 + $0x54] sm:$0xf] %vm388_vm0, %v369_v21  ;;  %412 = vst.msk [vmem:[#allocation2 + $0x58] sm:$0xf] %vm388_vm0, %v370_v22  ;;  %v3711_v25 = vld [vmem:[#allocation2 + $0x1c] sm:$0xff]  }
  0x27   : > { %413 = vst.msk [vmem:[#allocation2 + $0x5c] sm:$0xf] %vm388_vm0, %v371_v23  ;;  %1329 = vrot.lane.b32.xlu0 %v3710_v24, %s3945_s8  ;;  %v3712_v26 = vld [vmem:[#allocation2 + $0x28] sm:$0xff]   ;;  %1331 = vrot.lane.b32.xlu1 %v3711_v25, %s3945_s8  ;;  %v3713_v27 = vld [vmem:[#allocation2 + $0x30] sm:$0xff]   ;;  %v3715_v29 = vld [vmem:[#allocation2 + $0x1c] sm:$0xff]   ;;  %s4353_s29 = scalar_select %p322_p7, %s3927_s18, 3 }
  0x28   : > { %v3714_v28 = vld [vmem:[#allocation2 + $0x14] sm:$0xfe]   ;;  %v1908_v31 = vrot.slane %v3715_v29, 1  ;;  %v3716_v32 = vld [vmem:[#allocation2] sm:$0xfe]   ;;  %v3717_v33 = vld [vmem:[#allocation2 + $0x8] sm:$0xff]  }
  0x29   : > { %v1907_v30 = vrot.slane %v3714_v28, 1  ;;  %v1111_v35 = vrot.slane %v3716_v32, 1  ;;  %v4077_v36 = vld [vmem:[#allocation2 + $0x30] sm:$0xff]   ;;  %v1112_v37 = vrot.slane %v3717_v33, 1  ;;  %v3718_v38 = vld [vmem:[#allocation2 + $0x28] sm:$0xfe]   ;;  %s344_s28 = sadd.s32 %s3377_s27, %s4353_s29 }
  0x2a   : > { %v3721_v39 = vld [vmem:[#allocation2] sm:$0xff]   ;;  %v2704_v40 = vrot.slane %v4077_v36, 1  ;;  %v3720_v41 = vld [vmem:[#allocation2 + $0x10] ss:$0 sps:$4 sm:$0x11]   ;;  %v2703_v43 = vrot.slane %v3718_v38, 1 }
  0x2b   : > { %2125 = vrot.lane.b32.xlu0 %v3712_v26, %s3946_s9  ;;  %2127 = vrot.lane.b32.xlu1 %v3713_v27, %s3946_s9  ;;  %v1909_v34 = vsel %vm1110_vm2, %v1907_v30, %v1908_v31  ;;  %v1113_v42 = vsel %vm1110_vm2, %v1111_v35, %v1112_v37  ;;  %v3722_v44 = vld [vmem:[#allocation2 + $0x8] sm:$0xff]   ;;  %v1114_v45 = vrot.slane %v3720_v41, 1  ;;  %v742_v46 = vshrl.u32 %v3721_v39, 16  ;;  %v3725_v48 = vld [vmem:[#allocation2 + $0x1c] sm:$0xff]   ;;  %v3727_v4 = vld [vmem:[#allocation2 + $0x14] sm:$0xff]   ;;  %s3660_s30 = smul.u32 10, %s4353_s29 }
  0x2c   : > { %v744_v47 = vshll.u32 %v3721_v39, 16  ;;  %v2705_v49 = vsel %vm1110_vm2, %v2703_v43, %v2704_v40  ;;  %v749_v50 = vshll.u32 %v3722_v44, 16  ;;  %v3723_v51 = vld [vmem:[#allocation2 + $0x24] ss:$0 sps:$4 sm:$0x11]   ;;  %v753_v57 = vshrl.u32 %v3722_v44, 16 }
  0x2d   : > { %v1115_v52 = vsel %vm1110_vm2, %v1112_v37, %v1114_v45  ;;  %v3724_v54 = vld [vmem:[#allocation2 + $0x10] ss:$0 sps:$4 sm:$0x11]   ;;  %v1910_v56 = vrot.slane %v3723_v51, 1  ;;  %v1546_v58 = vshll.u32 %v3725_v48, 16  ;;  %v1550_v61 = vshrl.u32 %v3725_v48, 16 }
  0x2e   : > { %v746_v53 = vrot.slane %v744_v47, 1  ;;  %v751_v55 = vrot.slane %v749_v50, 1  ;;  %v757_v60 = vshll.u32 %v3724_v54, 16  ;;  %v3726_v0 = vld [vmem:[#allocation2 + $0x24] ss:$0 sps:$4 sm:$0x11]  }
  0x2f   : > { %1947 = vrot.lane.b32.xlu0 %v1909_v34, %s3947_s10  ;;  %1151 = vrot.lane.b32.xlu1 %v1113_v42, %s3948_s11  ;;  %v1911_v62 = vsel %vm1110_vm2, %v1908_v31, %v1910_v56  ;;  %v1548_v1 = vrot.slane %v1546_v58, 1  ;;  %v1554_v6 = vshll.u32 %v3726_v0, 16  ;;  %v3728_v7 = vld [vmem:[#allocation2 + $0x30] sm:$0xff]   ;;  %v1539_v9 = vshrl.u32 %v3727_v4, 16  ;;  %v3730_v12 = vld [vmem:[#allocation2 + $0x28] sm:$0xff]   ;;  %v3732_v23 = vld [vmem:[#allocation2 + $0x1c] sm:$0xff]  }
  0x30   : > { %v747_v59 = vor.u32 %v746_v53, %v742_v46  ;;  %v755_v63 = vor.u32 %v753_v57, %v751_v55  ;;  %v759_v3 = vrot.slane %v757_v60, 1  ;;  %v1541_v10 = vshll.u32 %v3727_v4, 16  ;;  %v3729_v11 = vld [vmem:[#allocation2 + $0x38] ss:$0 sps:$4 sm:$0x11]   ;;  %v3736_v31 = vld [vmem:[#allocation2 + $0x1c] sm:$0xff]  }
  0x31   : > { %v1552_v5 = vor.u32 %v1550_v61, %v1548_v1  ;;  %v1556_v13 = vrot.slane %v1554_v6, 1  ;;  %v2342_v14 = vshll.u32 %v3728_v7, 16  ;;  %v2346_v15 = vshrl.u32 %v3728_v7, 16  ;;  %v3731_v16 = vld [vmem:[#allocation2 + $0x14] sm:$0xff]   ;;  %v3740_v54 = vld [vmem:[#allocation2 + $0x28] sm:$0xff]  }
  0x32   : > { %v752_v2 = vsel %vm740_vm3, %v747_v59, %v751_v55  ;;  %v760_v8 = vsel %vm740_vm3, %v755_v63, %v759_v3  ;;  %v1543_v17 = vrot.slane %v1541_v10, 1  ;;  %v2350_v18 = vshll.u32 %v3729_v11, 16  ;;  %v3733_v34 = vld [vmem:[#allocation2 + $0x38] ss:$0 sps:$4 sm:$0x11]   ;;  %v3741_v57 = vld [vmem:[#allocation2 + $0x30] sm:$0xff]  }
  0x33   : > { %2743 = vrot.lane.b32.xlu0 %v2705_v49, %s3949_s12  ;;  %1153 = vrot.lane.b32.xlu1 %v1115_v52, %s3948_s11  ;;  %v2335_v19 = vshrl.u32 %v3730_v12, 16  ;;  %v2337_v20 = vshll.u32 %v3730_v12, 16  ;;  %v1557_v21 = vsel %vm740_vm3, %v1552_v5, %v1556_v13  ;;  %v2344_v22 = vrot.slane %v2342_v14, 1  ;;  %v3734_v41 = vld [vmem:[#allocation2 + $0x24] ss:$0 sps:$4 sm:$0x11]  }
  0x34   : > { %v1544_v24 = vor.u32 %v1543_v17, %v1539_v9  ;;  %v2352_v25 = vrot.slane %v2350_v18, 1  ;;  %v762_v28 = vshrl.u32 %v3731_v16, 16  ;;  %v764_v29 = vshll.u32 %v3731_v16, 16  ;;  %v3735_v48 = vld [vmem:[#allocation2 + $0x14] sm:$0xfe]   ;;  %v3748_v10 = vld [vmem:[#allocation2 + $0x3c] sm:$0xff]  }
  0x35   : > { %v2339_v26 = vrot.slane %v2337_v20, 1  ;;  %v2348_v27 = vor.u32 %v2346_v15, %v2344_v22  ;;  %v769_v30 = vshll.u32 %v3732_v23, 16  ;;  %v773_v35 = vshrl.u32 %v3732_v23, 16  ;;  %v3737_v51 = vld [vmem:[#allocation2 + $0x24] ss:$0 sps:$4 sm:$0x11]  }
  0x36   : > { %v1549_v32 = vsel %vm740_vm3, %v1544_v24, %v1548_v1  ;;  %v766_v38 = vrot.slane %v764_v29, 1  ;;  %v2706_v43 = vrot.slane %v3733_v34, 1  ;;  %v777_v46 = vshll.u32 %v3734_v41, 16  ;;  %v3742_v61 = vld [vmem:[#allocation2 + $0x38] ss:$0 sps:$4 sm:$0x11]  }
  0x37   : > { %901 = vrot.lane.b32.xlu0 %v752_v2, %s3950_s13  ;;  %1949 = vrot.lane.b32.xlu1 %v1911_v62, %s3947_s10  ;;  %v2340_v33 = vor.u32 %v2339_v26, %v2335_v19  ;;  %v2353_v37 = vsel %vm740_vm3, %v2348_v27, %v2352_v25  ;;  %v771_v39 = vrot.slane %v769_v30, 1  ;;  %v1117_v47 = vrot.slane %v3736_v31, 1  ;;  %v3738_v2 = vld [vmem:[#allocation2 + $0x28] sm:$0xff]   ;;  %v3739_v3 = vld [vmem:[#allocation2 + $0x30] sm:$0xff]  }
  0x38   : > { %v767_v44 = vor.u32 %v766_v38, %v762_v28  ;;  %v779_v50 = vrot.slane %v777_v46, 1  ;;  %v2707_v52 = vsel %vm1110_vm2, %v2704_v40, %v2706_v43  ;;  %v1116_v53 = vrot.slane %v3735_v48, 1  ;;  %v3743_v4 = vld [vmem:[#allocation2 + $0x28] sm:$0xfe]   ;;  %v3744_v6 = vld [vmem:[#allocation2 + $0x30] sm:$0xff]   ;;  %v3746_v28 = vld [vmem:[#allocation2 + $0x3c] sm:$0xff]  }
  0x39   : > { %v2345_v42 = vsel %vm740_vm3, %v2340_v33, %v2344_v22  ;;  %v775_v45 = vor.u32 %v773_v35, %v771_v39  ;;  %v1119_v56 = vrot.slane %v3737_v51, 1  ;;  %v1559_v58 = vshrl.u32 %v3740_v54, 16  ;;  %v3745_v7 = vld [vmem:[#allocation2 + $0x38] ss:$0 sps:$4 sm:$0x11]   ;;  %v3749_v12 = vld [vmem:[#allocation2 + $0x44] sm:$0xff]  }
  0x3a   : > { %v772_v49 = vsel %vm740_vm3, %v767_v44, %v771_v39  ;;  %v1561_v59 = vshll.u32 %v3740_v54, 16  ;;  %v1566_v60 = vshll.u32 %v3741_v57, 16  ;;  %v1118_v62 = vsel %vm1110_vm2, %v1116_v53, %v1117_v47  ;;  %v3750_v16 = vld [vmem:[#allocation2 + $0x4c] ss:$0 sps:$4 sm:$0x11]   ;;  %v3754_v26 = vld [vmem:[#allocation2 + $0x30] sm:$0xff]  }
  0x3b   : > { %903 = vrot.lane.b32.xlu0 %v760_v8, %s3950_s13  ;;  %1700 = vrot.lane.b32.xlu1 %v1557_v21, %s3951_s14  ;;  %v780_v55 = vsel %vm740_vm3, %v775_v45, %v779_v50  ;;  %v1570_v36 = vshrl.u32 %v3741_v57, 16  ;;  %v1120_v40 = vsel %vm1110_vm2, %v1117_v47, %v1119_v56  ;;  %v1574_v1 = vshll.u32 %v3742_v61, 16  ;;  %v3753_v20 = vld [vmem:[#allocation2 + $0x28] sm:$0xff]   ;;  %v3756_v34 = vld [vmem:[#allocation2 + $0x38] ss:$0 sps:$4 sm:$0x11]  }
  0x3c   : > { %v1563_v63 = vrot.slane %v1561_v59, 1  ;;  %v1568_v0 = vrot.slane %v1566_v60, 1  ;;  %v1912_v11 = vrot.slane %v3743_v4, 1  ;;  %v2357_v13 = vshll.u32 %v3748_v10, 16  ;;  %v3747_v31 = vld [vmem:[#allocation2 + $0x44] sm:$0xff]   ;;  %v3762_v54 = vld [vmem:[#allocation2 + $0x3c] sm:$0xff]  }
  0x3d   : > { %v1576_v9 = vrot.slane %v1574_v1, 1  ;;  %v1913_v15 = vrot.slane %v3744_v6, 1  ;;  %v1915_v18 = vrot.slane %v3745_v7, 1  ;;  %v2362_v19 = vshll.u32 %v3749_v12, 16  ;;  %v3752_v33 = vld [vmem:[#allocation2 + $0x44] sm:$0xff]  }
  0x3e   : > { %v1564_v5 = vor.u32 %v1563_v63, %v1559_v58  ;;  %v1572_v8 = vor.u32 %v1570_v36, %v1568_v0  ;;  %v2355_v21 = vshrl.u32 %v3748_v10, 16  ;;  %v2359_v22 = vrot.slane %v2357_v13, 1  ;;  %v3755_v45 = vld [vmem:[#allocation2 + $0x4c] ss:$0 sps:$4 sm:$0x11]   ;;  %v3763_v57 = vld [vmem:[#allocation2 + $0x44] sm:$0xff]  }
  0x3f   : > { %1698 = vrot.lane.b32.xlu0 %v1549_v32, %s3951_s14  ;;  %2496 = vrot.lane.b32.xlu1 %v2353_v37, %s3952_s15  ;;  %v2366_v23 = vshrl.u32 %v3749_v12, 16  ;;  %v1914_v24 = vsel %vm1110_vm2, %v1912_v11, %v1913_v15  ;;  %v2370_v25 = vshll.u32 %v3750_v16, 16  ;;  %v1916_v27 = vsel %vm1110_vm2, %v1913_v15, %v1915_v18  ;;  %v3751_v32 = vld [vmem:[#allocation2 + $0x3c] sm:$0xfe]   ;;  %v3757_v53 = vld [vmem:[#allocation2 + $0x28] sm:$0xfe]  }
  0x40   : > { %v1569_v14 = vsel %vm740_vm3, %v1564_v5, %v1568_v0  ;;  %v1577_v17 = vsel %vm740_vm3, %v1572_v8, %v1576_v9  ;;  %v2364_v29 = vrot.slane %v2362_v19, 1  ;;  %v784_v30 = vshll.u32 %v3753_v20, 16  ;;  %v3759_v61 = vld [vmem:[#allocation2 + $0x38] ss:$0 sps:$4 sm:$0x11]   ;;  %v3766_v10 = vld [vmem:[#allocation2 + $0x44] sm:$0xff]  }
  0x41   : > { %v2360_v35 = vor.u32 %v2359_v22, %v2355_v21  ;;  %v782_v37 = vshrl.u32 %v3753_v20, 16  ;;  %v789_v38 = vshll.u32 %v3754_v26, 16  ;;  %v2372_v41 = vrot.slane %v2370_v25, 1  ;;  %v3764_v1 = vld [vmem:[#allocation2 + $0x4c] ss:$0 sps:$4 sm:$0x11]  }
  0x42   : > { %v2368_v39 = vor.u32 %v2366_v23, %v2364_v29  ;;  %v2708_v43 = vrot.slane %v3751_v32, 1  ;;  %v2709_v44 = vrot.slane %v3752_v33, 1  ;;  %v793_v48 = vshrl.u32 %v3754_v26, 16  ;;  %v372_v11 = vld [vmem:[%s4022_s7 + $0x60] sm:$0x1]  ;;  %v3770_v15 = vld [vmem:[#allocation2 + $0x50] sm:$0xff]  }
  0x43   : > { %2494 = vrot.lane.b32.xlu0 %v2345_v42, %s3952_s15  ;;  %905 = vrot.lane.b32.xlu1 %v772_v49, %s3950_s13  ;;  %v786_v42 = vrot.slane %v784_v30, 1  ;;  %v2365_v46 = vsel %vm740_vm3, %v2360_v35, %v2364_v29  ;;  %v791_v47 = vrot.slane %v789_v38, 1  ;;  %v797_v51 = vshll.u32 %v3756_v34, 16  ;;  %v3760_v13 = vld [vmem:[#allocation2 + $0x3c] sm:$0xff]   ;;  %414 = vst.msk [vmem:[#allocation2 + $0x60] sm:$0x1] %vm393_vm1, %v372_v11 }
  0x44   : > { %v2373_v49 = vsel %vm740_vm3, %v2368_v39, %v2372_v41  ;;  %v2711_v56 = vrot.slane %v3755_v45, 1  ;;  %v1581_v36 = vshll.u32 %v3762_v54, 16  ;;  %v1586_v0 = vshll.u32 %v3763_v57, 16  ;;  %v3767_v16 = vld [vmem:[#allocation2 + $0x4c] ss:$0 sps:$4 sm:$0x11]  }
  0x45   : > { %v787_v50 = vor.u32 %v786_v42, %v782_v37  ;;  %v795_v59 = vor.u32 %v793_v48, %v791_v47  ;;  %v799_v60 = vrot.slane %v797_v51, 1  ;;  %v1579_v4 = vshrl.u32 %v3762_v54, 16  ;;  %v3761_v18 = vld [vmem:[#allocation2 + $0x44] sm:$0xff]   ;;  %v3768_v42 = vld [vmem:[#allocation2 + $0x50] sm:$0xff]   ;;  %v3774_v45 = vld [vmem:[#allocation2 + $0x58] sm:$0xff]  }
  0x46   : > { %v1583_v6 = vrot.slane %v1581_v36, 1  ;;  %v1588_v7 = vrot.slane %v1586_v0, 1  ;;  %v1590_v8 = vshrl.u32 %v3763_v57, 16  ;;  %v1594_v9 = vshll.u32 %v3764_v1, 16  ;;  %v3776_v34 = vld [vmem:[#allocation2 + $0x44] sm:$0xff]   ;;  %v3784_v1 = vld [vmem:[#allocation2 + $0x50] sm:$0xff]  }
  0x47   : > { %2745 = vrot.lane.b32.xlu0 %v2707_v52, %s3949_s12  ;;  %907 = vrot.lane.b32.xlu1 %v780_v55, %s3950_s13  ;;  %v3758_v52 = vld [vmem:[#allocation2 + $0x30] sm:$0xff]   ;;  %v2710_v55 = vsel %vm1110_vm2, %v2708_v43, %v2709_v44  ;;  %v792_v58 = vsel %vm740_vm3, %v787_v50, %v791_v47  ;;  %v1918_v23 = vrot.slane %v3766_v10, 1  ;;  %v1920_v30 = vrot.slane %v3767_v16, 1  ;;  %v3769_v47 = vld [vmem:[#allocation2 + $0x58] sm:$0xff]   ;;  %v373_v36 = vld [vmem:[%s4022_s7 + $0x64] sm:$0xf] }
  0x48   : > { %v1122_v63 = vrot.slane %v3758_v52, 1  ;;  %v1584_v19 = vor.u32 %v1583_v6, %v1579_v4  ;;  %v1592_v20 = vor.u32 %v1590_v8, %v1588_v7  ;;  %v1596_v21 = vrot.slane %v1594_v9, 1  ;;  %v3773_v43 = vld [vmem:[#allocation2 + $0x50] sm:$0xfe]   ;;  %415 = vst.msk [vmem:[#allocation2 + $0x64] sm:$0xf] %vm388_vm0, %v373_v36 }
  0x49   : > { %v1921_v41 = vsel %vm1110_vm2, %v1918_v23, %v1920_v30  ;;  %v2713_v54 = vrot.slane %v3773_v43, 1  ;;  %v813_v57 = vshrl.u32 %v3776_v34, 16  ;;  %v377_v4 = vld [vmem:[%s4022_s7 + $0x74] sm:$0x1]  ;;  %v3785_v11 = vld [vmem:[#allocation2 + $0x58] sm:$0xff]  }
  0x4a   : > { %v1589_v26 = vsel %vm740_vm3, %v1584_v19, %v1588_v7  ;;  %v1597_v29 = vsel %vm740_vm3, %v1592_v20, %v1596_v21  ;;  %419 = vst.msk [vmem:[#allocation2 + $0x74] sm:$0x1] %vm393_vm1, %v377_v4  ;;  %v3781_v10 = vld [vmem:[#allocation2 + $0x4c] ss:$0 sps:$4 sm:$0x11]   ;;  %v1606_v19 = vshll.u32 %v3785_v11, 16 }
  0x4b   : > { %1155 = vrot.lane.b32.xlu0 %v1118_v62, %s3948_s11  ;;  %1157 = vrot.lane.b32.xlu1 %v1120_v40, %s3948_s11  ;;  %v1121_v62 = vrot.slane %v3757_v53, 1  ;;  %v2712_v40 = vsel %vm1110_vm2, %v2709_v44, %v2711_v56  ;;  %v3778_v44 = vld [vmem:[#allocation2 + $0x4c] ss:$0 sps:$4 sm:$0x11]   ;;  %v3780_v53 = vld [vmem:[#allocation2 + $0x44] sm:$0xff]   ;;  %v1599_v21 = vshrl.u32 %v3784_v1, 16 }
  0x4c   : > { %v1127_v0 = vrot.slane %v3780_v53, 1  ;;  %v3787_v30 = vld [vmem:[#allocation2 + $0x50] sm:$0xfe]  }
  0x4d   : > { %v1123_v5 = vsel %vm1110_vm2, %v1121_v62, %v1122_v63 }
  0x4f   : > { %1333 = vrot.lane.b32.xlu0 %v3738_v2, %s3945_s8  ;;  %1335 = vrot.lane.b32.xlu1 %v3739_v3, %s3945_s8  ;;  %v800_v2 = vsel %vm740_vm3, %v795_v59, %v799_v60  ;;  %v1124_v3 = vrot.slane %v3759_v61, 1  ;;  %v3777_v59 = vld [vmem:[#allocation2 + $0x60] ss:$0 sps:$4 sm:$0x11]   ;;  %v817_v60 = vshll.u32 %v3778_v44, 16  ;;  %v1922_v44 = vrot.slane %v3787_v30, 1 }
  0x50   : > { %v2716_v6 = vrot.slane %v3777_v59, 1 }
  0x51   : > { %v1125_v12 = vsel %vm1110_vm2, %v1122_v63, %v1124_v3  ;;  %v3779_v63 = vld [vmem:[#allocation2 + $0x3c] sm:$0xfe]   ;;  %v376_v3 = vld [vmem:[%s4022_s7 + $0x70] sm:$0xf]  ;;  %v819_v7 = vrot.slane %v817_v60, 1 }
  0x52   : > { %418 = vst.msk [vmem:[#allocation2 + $0x70] sm:$0xf] %vm388_vm0, %v376_v3  ;;  %v3811_v60 = vld [vmem:[%s4718_s2] sm:$0xff]  }
  0x53   : > { %1702 = vrot.lane.b32.xlu0 %v1569_v14, %s3951_s14  ;;  %1704 = vrot.lane.b32.xlu1 %v1577_v17, %s3951_s14  ;;  %v3765_v14 = vld [vmem:[#allocation2 + $0x3c] sm:$0xfe]  }
  0x54   : > { %v3771_v17 = vld [vmem:[#allocation2 + $0x58] sm:$0xff]   ;;  %v1917_v22 = vrot.slane %v3765_v14, 1  ;;  %v3786_v14 = vld [vmem:[#allocation2 + $0x60] ss:$0 sps:$4 sm:$0x11]   ;;  %3612 = vmatprep.subr.bf16.mxu0 %v3811_v60  ;;  %3650 = vmatprep.subr.bf16.mxu1 %v3811_v60 }
  0x55   : > { %v2382_v25 = vshll.u32 %v3771_v17, 16  ;;  %v2386_v33 = vshrl.u32 %v3771_v17, 16  ;;  %3613 = vmatpush3.bf16.msra.mxu0 %v3811_v60  ;;  %3653 = vmatpush3.bf16.msra.mxu1 %v3811_v60  ;;  %v3815_v60 = vld [vmem:[#allocation2 + $0x74] ss:$0 sps:$4 sm:$0x11]  }
  0x56   : > { %v1919_v32 = vsel %vm1110_vm2, %v1917_v22, %v1918_v23 }
  0x57   : > { %1951 = vrot.lane.b32.xlu0 %v1914_v24, %s3947_s10  ;;  %1953 = vrot.lane.b32.xlu1 %v1916_v27, %s3947_s10  ;;  %v2377_v24 = vshll.u32 %v3770_v15, 16  ;;  %v3772_v27 = vld [vmem:[#allocation2 + $0x60] ss:$0 sps:$4 sm:$0x11]   ;;  %v2384_v37 = vrot.slane %v2382_v25, 1  ;;  %v1608_v25 = vrot.slane %v1606_v19, 1 }
  0x58   : > { %v2390_v38 = vshll.u32 %v3772_v27, 16  ;;  %v1614_v27 = vshll.u32 %v3786_v14, 16  ;;  %v3817_v14 = vld [vmem:[#allocation2 + $0x1c] sm:$0xff]  }
  0x59   : > { %v2379_v35 = vrot.slane %v2377_v24, 1  ;;  %v3782_v24 = vld [vmem:[#allocation2 + $0x50] sm:$0xff]   ;;  %v379_v19 = vld [vmem:[%s4022_s7 + $0x7c] sm:$0xf]  ;;  %583 = vst.msk [vmem:[#allocation3 + $0x18] sm:$0xff] %vm579_vm4, %v3817_v14 }
  0x5a   : > { %v2392_v50 = vrot.slane %v2390_v38, 1  ;;  %v4184_v38 = vld [vmem:[#allocation2 + $0x50] sm:$0xff]   ;;  %421 = vst.msk [vmem:[#allocation2 + $0x7c] sm:$0xf] %vm388_vm0, %v379_v19 }
  0x5b   : > { %2129 = vrot.lane.b32.xlu0 %v3746_v28, %s3946_s9  ;;  %2131 = vrot.lane.b32.xlu1 %v3747_v31, %s3946_s9  ;;  %v3775_v28 = vld [vmem:[#allocation2 + $0x3c] sm:$0xff]   ;;  %v2375_v31 = vshrl.u32 %v3770_v15, 16  ;;  %v824_v53 = vshll.u32 %v4184_v38, 16 }
  0x5c   : > { %v804_v39 = vshll.u32 %v3775_v28, 16  ;;  %v802_v51 = vshrl.u32 %v3775_v28, 16  ;;  %v3801_v15 = vld [vmem:[#allocation2] sm:$0xff]   ;;  %v3783_v28 = vld [vmem:[#allocation2 + $0x58] sm:$0xff]  }
  0x5d   : > { %v2380_v48 = vor.u32 %v2379_v35, %v2375_v31  ;;  %580 = vst.msk [vmem:[#allocation3] sm:$0xff] %vm579_vm4, %v3801_v15  ;;  %v1616_v35 = vrot.slane %v1614_v27, 1  ;;  %v3820_v27 = vld [vmem:[%s4718_s2 + $0x10] ss:$0 sps:$4 sm:$0x33]  }
  0x5e   : > { %v806_v52 = vrot.slane %v804_v39, 1  ;;  %v3805_v39 = vld [vmem:[#allocation2 + $0x8] sm:$0xff]  }
  0x5f   : > { %2498 = vrot.lane.b32.xlu0 %v2365_v46, %s3952_s15  ;;  %2500 = vrot.lane.b32.xlu1 %v2373_v49, %s3952_s15  ;;  %v809_v46 = vshll.u32 %v3776_v34, 16  ;;  %v2388_v49 = vor.u32 %v2386_v33, %v2384_v37  ;;  %581 = vst.msk [vmem:[#allocation3 + $0x8] sm:$0xff] %vm579_vm4, %v3805_v39 }
  0x60   : > { %v807_v62 = vor.u32 %v806_v52, %v802_v51 }
  0x61   : > { %v811_v56 = vrot.slane %v809_v46, 1  ;;  %v2393_v61 = vsel %vm740_vm3, %v2388_v49, %v2392_v50  ;;  %v4191_v49 = vld [vmem:[#allocation2 + $0x58] sm:$0xff]  }
  0x63   : > { %2747 = vrot.lane.b32.xlu0 %v2710_v55, %s3949_s12  ;;  %909 = vrot.lane.b32.xlu1 %v792_v58, %s3950_s13  ;;  %v2714_v55 = vrot.slane %v3774_v45, 1  ;;  %v2385_v58 = vsel %vm740_vm3, %v2380_v48, %v2384_v37  ;;  %v812_v8 = vsel %vm740_vm3, %v807_v62, %v811_v56  ;;  %v815_v9 = vor.u32 %v813_v57, %v811_v56 }
  0x65   : > { %v2717_v16 = vsel %vm1110_vm2, %v2714_v55, %v2716_v6  ;;  %v820_v17 = vsel %vm740_vm3, %v815_v9, %v819_v7  ;;  %v826_v6 = vrot.slane %v824_v53, 1  ;;  %v833_v7 = vshrl.u32 %v4191_v49, 16 }
  0x67   : > { %2749 = vrot.lane.b32.xlu0 %v2712_v40, %s3949_s12  ;;  %911 = vrot.lane.b32.xlu1 %v800_v2, %s3950_s13  ;;  %v374_v40 = vld [vmem:[%s4022_s7 + $0x68] sm:$0xf]  ;;  %v375_v2 = vld [vmem:[%s4022_s7 + $0x6c] sm:$0xf] }
  0x68   : > { %416 = vst.msk [vmem:[#allocation2 + $0x68] sm:$0xf] %vm388_vm0, %v374_v40  ;;  %417 = vst.msk [vmem:[#allocation2 + $0x6c] sm:$0xf] %vm388_vm0, %v375_v2  ;;  %v822_v40 = vshrl.u32 %v4184_v38, 16 }
  0x6b   : > { %1159 = vrot.lane.b32.xlu0 %v1123_v5, %s3948_s11  ;;  %1161 = vrot.lane.b32.xlu1 %v1125_v12, %s3948_s11  ;;  %v2715_v5 = vsel %vm1110_vm2, %v2713_v54, %v2714_v55  ;;  %v1126_v12 = vrot.slane %v3779_v63, 1  ;;  %v4197_v54 = vld [vmem:[#allocation2 + $0x60] ss:$0 sps:$4 sm:$0x11]   ;;  %v829_v63 = vshll.u32 %v4191_v49, 16 }
  0x6d   : > { %v1128_v20 = vsel %vm1110_vm2, %v1126_v12, %v1127_v0  ;;  %v831_v9 = vrot.slane %v829_v63, 1 }
  0x6f   : > { %1337 = vrot.lane.b32.xlu0 %v3760_v13, %s3945_s8  ;;  %1339 = vrot.lane.b32.xlu1 %v3761_v18, %s3945_s8  ;;  %v1601_v13 = vshll.u32 %v3784_v1, 16  ;;  %v1129_v18 = vrot.slane %v3781_v10, 1  ;;  %v3792_v33 = vld [vmem:[#allocation2 + $0x64] sm:$0xff]   ;;  %v3793_v37 = vld [vmem:[#allocation2 + $0x6c] sm:$0xff]   ;;  %v837_v10 = vshll.u32 %v4197_v54, 16 }
  0x70   : > { %v2397_v45 = vshll.u32 %v3792_v33, 16  ;;  %v2402_v48 = vshll.u32 %v3793_v37, 16  ;;  %v2395_v51 = vshrl.u32 %v3792_v33, 16  ;;  %v3790_v56 = vld [vmem:[#allocation2 + $0x64] sm:$0xff]   ;;  %v4203_v62 = vld [vmem:[#allocation2 + $0x6c] sm:$0xff]   ;;  %v2902_v33 = vsel %vm2900_vm5, %v3820_v27, 0 }
  0x71   : > { %v1603_v22 = vrot.slane %v1601_v13, 1  ;;  %v1130_v23 = vsel %vm1110_vm2, %v1127_v0, %v1129_v18  ;;  %v3812_v0 = vld [vmem:[#allocation2 + $0x14] sm:$0xff]   ;;  %v3795_v3 = vld [vmem:[#allocation2 + $0x64] sm:$0xfe]   ;;  %v3809_v38 = vld [vmem:[#allocation2 + $0x6c] sm:$0xff]  }
  0x72   : > { %v2399_v52 = vrot.slane %v2397_v45, 1  ;;  %v2404_v57 = vrot.slane %v2402_v48, 1  ;;  %582 = vst.msk [vmem:[#allocation3 + $0x10] sm:$0xff] %vm579_vm4, %v3812_v0  ;;  %v3799_v13 = vld [vmem:[#allocation2 + $0x74] ss:$0 sps:$4 sm:$0x11]  }
  0x73   : > { %1706 = vrot.lane.b32.xlu0 %v1589_v26, %s3951_s14  ;;  %1708 = vrot.lane.b32.xlu1 %v1597_v29, %s3951_s14  ;;  %v1610_v26 = vshrl.u32 %v3785_v11, 16  ;;  %v3788_v29 = vld [vmem:[#allocation2 + $0x58] sm:$0xff]   ;;  %v1604_v31 = vor.u32 %v1603_v22, %v1599_v21  ;;  %v3816_v11 = vld [vmem:[%s4718_s2 + $0x8] sm:$0xff]   ;;  %v827_v21 = vor.u32 %v826_v6, %v822_v40  ;;  %v380_v22 = vld [vmem:[%s4022_s7 + $0x80] sm:$0xf]  ;;  %v2721_v30 = vrot.slane %v3799_v13, 1 }
  0x74   : > { %v2400_v2 = vor.u32 %v2399_v52, %v2395_v51  ;;  %3614 = vmatprep.subr.bf16.mxu0 %v3816_v11  ;;  %v378_v18 = vld [vmem:[%s4022_s7 + $0x78] sm:$0xf]  ;;  %3651 = vmatprep.subr.bf16.mxu1 %v3816_v11  ;;  %422 = vst.msk [vmem:[#allocation2 + $0x80] sm:$0xf] %vm388_vm0, %v380_v22  ;;  %v1626_v49 = vshll.u32 %v3809_v38, 16  ;;  %v1630_v52 = vshrl.u32 %v3809_v38, 16 }
  0x75   : > { %v1612_v34 = vor.u32 %v1610_v26, %v1608_v25  ;;  %v1609_v43 = vsel %vm740_vm3, %v1604_v31, %v1608_v25  ;;  %3615 = vmatpush3.bf16.msra.mxu0 %v3816_v11  ;;  %420 = vst.msk [vmem:[#allocation2 + $0x78] sm:$0xf] %vm388_vm0, %v378_v18  ;;  %v3802_v25 = vld [vmem:[#allocation2 + $0x50] sm:$0xfe]   ;;  %v3803_v26 = vld [vmem:[#allocation2 + $0x58] sm:$0xff]   ;;  %3654 = vmatpush3.bf16.msra.mxu1 %v3816_v11  ;;  %v839_v31 = vrot.slane %v837_v10, 1 }
  0x76   : > { %3656 = vmatprep.subr.msk.bf16.mxu0 %vm2900_vm5, %v3820_v27  ;;  %3657 = vmatprep.subr.msk.bf16.mxu1 %vm2900_vm5, %v3820_v27  ;;  %v1131_v45 = vrot.slane %v3802_v25, 1  ;;  %v3806_v63 = vld [vmem:[#allocation2 + $0x64] sm:$0xff]   ;;  %v3807_v0 = vld [vmem:[#allocation2 + $0x6c] sm:$0xff]   ;;  %v1930_v10 = vrot.slane %v3815_v60, 1 }
  0x77   : > { %1955 = vrot.lane.b32.xlu0 %v1919_v32, %s3947_s10  ;;  %1957 = vrot.lane.b32.xlu1 %v1921_v41, %s3947_s10  ;;  %v3789_v32 = vld [vmem:[#allocation2 + $0x60] ss:$0 sps:$4 sm:$0x11]   ;;  %v1923_v41 = vrot.slane %v3788_v29, 1  ;;  %v1617_v46 = vsel %vm740_vm3, %v1612_v34, %v1616_v35  ;;  %v832_v34 = vsel %vm740_vm3, %v827_v21, %v831_v9  ;;  %v835_v35 = vor.u32 %v833_v7, %v831_v9  ;;  %v4273_v11 = vld [vmem:[#allocation2 + $0x64] sm:$0xff]   ;;  %v3842_v38 = vld [vmem:[#allocation2 + $0x30] sm:$0xff]  }
  0x78   : > { %v3838_v21 = vld [vmem:[#allocation2 + $0x28] sm:$0xff]   ;;  %585 = vst.msk [vmem:[#allocation3 + $0x28] sm:$0xff] %vm579_vm4, %v3842_v38 }
  0x79   : > { %v1924_v50 = vsel %vm1110_vm2, %v1922_v44, %v1923_v41  ;;  %3617 = vmatpush3.bf16.msra.mxu0 %v2902_v33  ;;  %3655 = vmatpush3.bf16.msra.mxu1 %v2902_v33  ;;  %584 = vst.msk [vmem:[#allocation3 + $0x20] sm:$0xff] %vm579_vm4, %v3838_v21  ;;  %v3830_v60 = vld [vmem:[#allocation2 + $0x64] sm:$0xfe]  }
  0x7b   : > { %2133 = vrot.lane.b32.xlu0 %v3768_v42, %s3946_s9  ;;  %2135 = vrot.lane.b32.xlu1 %v3769_v47, %s3946_s9  ;;  %v3794_v42 = vld [vmem:[#allocation2 + $0x74] ss:$0 sps:$4 sm:$0x11]   ;;  %v1925_v47 = vrot.slane %v3789_v32, 1  ;;  %v3808_v32 = vld [vmem:[#allocation2 + $0x64] sm:$0xff]  }
  0x7c   : > { %v2410_v59 = vshll.u32 %v3794_v42, 16  ;;  %v3810_v42 = vld [vmem:[#allocation2 + $0x74] ss:$0 sps:$4 sm:$0x11]   ;;  %v1619_v51 = vshrl.u32 %v3808_v32, 16  ;;  %v4264_v40 = vld [vmem:[#allocation2 + $0x78] sm:$0xff]  }
  0x7d   : > { %v1926_v55 = vsel %vm1110_vm2, %v1923_v41, %v1925_v47  ;;  %v1132_v41 = vrot.slane %v3803_v26, 1  ;;  %v840_v47 = vsel %vm740_vm3, %v835_v35, %v839_v31  ;;  %v3818_v31 = vld [vmem:[#allocation2 + $0x78] sm:$0xff]   ;;  %v3829_v35 = vld [vmem:[#allocation2 + $0x74] ss:$0 sps:$4 sm:$0x11]  }
  0x7f   : > { %2502 = vrot.lane.b32.xlu0 %v2385_v58, %s3952_s15  ;;  %2504 = vrot.lane.b32.xlu1 %v2393_v61, %s3952_s15  ;;  %v2406_v58 = vshrl.u32 %v3793_v37, 16  ;;  %v3791_v61 = vld [vmem:[#allocation2 + $0x6c] sm:$0xff]   ;;  %v3804_v37 = vld [vmem:[#allocation2 + $0x60] ss:$0 sps:$4 sm:$0x11]   ;;  %v1133_v53 = vsel %vm1110_vm2, %v1131_v45, %v1132_v41 }
  0x80   : > { %v1134_v48 = vrot.slane %v3804_v37, 1 }
  0x81   : > { %v2408_v4 = vor.u32 %v2406_v58, %v2404_v57 }
  0x82   : > { %v1135_v58 = vsel %vm1110_vm2, %v1132_v41, %v1134_v48  ;;  %v3824_v41 = vld [vmem:[#allocation2 + $0x78] sm:$0xfe]  }
  0x83   : > { %2751 = vrot.lane.b32.xlu0 %v2715_v5, %s3949_s12  ;;  %913 = vrot.lane.b32.xlu1 %v812_v8, %s3950_s13  ;;  %v2412_v5 = vrot.slane %v2410_v59, 1  ;;  %v2719_v8 = vrot.slane %v4203_v62, 1  ;;  %v1628_v59 = vrot.slane %v1626_v49, 1  ;;  %v3814_v62 = vld [vmem:[#allocation2 + $0x6c] sm:$0xff]   ;;  %v385_v49 = vld [vmem:[%s4022_s7 + $0x94] sm:$0xf] }
  0x84   : > { %v1928_v9 = vrot.slane %v3814_v62, 1  ;;  %427 = vst.msk [vmem:[#allocation2 + $0x94] sm:$0xf] %vm388_vm0, %v385_v49 }
  0x85   : > { %v2722_v44 = vsel %vm1110_vm2, %v2719_v8, %v2721_v30 }
  0x86   : > { %v1931_v27 = vsel %vm1110_vm2, %v1928_v9, %v1930_v10 }
  0x87   : > { %2753 = vrot.lane.b32.xlu0 %v2717_v16, %s3949_s12  ;;  %915 = vrot.lane.b32.xlu1 %v820_v17, %s3950_s13  ;;  %v2405_v16 = vsel %vm740_vm3, %v2400_v2, %v2404_v57  ;;  %v2718_v17 = vrot.slane %v3795_v3, 1 }
  0x89   : > { %v2720_v29 = vsel %vm1110_vm2, %v2718_v17, %v2719_v8 }
  0x8b   : > { %1163 = vrot.lane.b32.xlu0 %v1128_v20, %s3948_s11  ;;  %1165 = vrot.lane.b32.xlu1 %v1130_v23, %s3948_s11  ;;  %v2413_v20 = vsel %vm740_vm3, %v2408_v4, %v2412_v5  ;;  %v381_v23 = vld [vmem:[%s4022_s7 + $0x84] sm:$0xf]  ;;  %v1632_v4 = vor.u32 %v1630_v52, %v1628_v59 }
  0x8c   : > { %423 = vst.msk [vmem:[#allocation2 + $0x84] sm:$0xf] %vm388_vm0, %v381_v23  ;;  %v844_v23 = vshll.u32 %v4273_v11, 16 }
  0x8f   : > { %1341 = vrot.lane.b32.xlu0 %v3782_v24, %s3945_s8  ;;  %1343 = vrot.lane.b32.xlu1 %v3783_v28, %s3945_s8  ;;  %v382_v24 = vld [vmem:[%s4022_s7 + $0x88] sm:$0x1] }
  0x90   : > { %424 = vst.msk [vmem:[#allocation2 + $0x88] sm:$0x1] %vm393_vm1, %v382_v24 }
  0x93   : > { %1710 = vrot.lane.b32.xlu0 %v1609_v43, %s3951_s14  ;;  %1712 = vrot.lane.b32.xlu1 %v1617_v46, %s3951_s14  ;;  %v1621_v46 = vshll.u32 %v3808_v32, 16  ;;  %v3822_v7 = vld [vmem:[#allocation2 + $0x80] sm:$0xff]  }
  0x94   : > { %v2422_v17 = vshll.u32 %v3822_v7, 16  ;;  %v4291_v22 = vld [vmem:[#allocation2 + $0x80] sm:$0xff]  }
  0x95   : > { %v1623_v54 = vrot.slane %v1621_v46, 1  ;;  %v3819_v33 = vld [vmem:[#allocation2 + $0x80] sm:$0xff]   ;;  %v2724_v45 = vrot.slane %v4291_v22, 1  ;;  %v383_v46 = vld [vmem:[%s4022_s7 + $0x8c] sm:$0xf] }
  0x96   : > { %425 = vst.msk [vmem:[#allocation2 + $0x8c] sm:$0xf] %vm388_vm0, %v383_v46  ;;  %v4364_v46 = vld [vmem:[#allocation2 + $0x78] sm:$0xff]  }
  0x97   : > { %1959 = vrot.lane.b32.xlu0 %v1924_v50, %s3947_s10  ;;  %1961 = vrot.lane.b32.xlu1 %v1926_v55, %s3947_s10  ;;  %v1634_v55 = vshll.u32 %v3810_v42, 16  ;;  %v1624_v2 = vor.u32 %v1623_v54, %v1619_v51  ;;  %v3823_v18 = vld [vmem:[#allocation2 + $0x88] ss:$0 sps:$4 sm:$0x11]   ;;  %v387_v51 = vld [vmem:[%s4022_s7 + $0x9c] sm:$0x1] }
  0x98   : > { %429 = vst.msk [vmem:[#allocation2 + $0x9c] sm:$0x1] %vm393_vm1, %v387_v51  ;;  %v3828_v54 = vld [vmem:[#allocation2 + $0x88] ss:$0 sps:$4 sm:$0x11]  }
  0x99   : > { %v4207_v36 = vpop.permute.xlu0 %1329  ;;  %v4211_v1 = vpop.permute.xlu1 %1331  ;;  %v1636_v5 = vrot.slane %v1634_v55, 1  ;;  %v1629_v13 = vsel %vm740_vm3, %v1624_v2, %v1628_v59  ;;  %v857_v59 = vshll.u32 %v3829_v35, 16  ;;  %v3835_v2 = vld [vmem:[#allocation2 + $0x78] sm:$0xff]  }
  0x9b   : > { %2137 = vrot.lane.b32.xlu0 %v3790_v56, %s3946_s9  ;;  %2139 = vrot.lane.b32.xlu1 %v3791_v61, %s3946_s9  ;;  %v3813_v56 = vld [vmem:[#allocation2 + $0x64] sm:$0xfe]   ;;  %v859_v10 = vrot.slane %v857_v59, 1 }
  0x9c   : > { %v1927_v6 = vrot.slane %v3813_v56, 1 }
  0x9d   : > { %v4221_v12 = vpop.permute.xlu0 %2125  ;;  %v4224_v15 = vpop.permute.xlu1 %2127 }
  0x9e   : > { %v1929_v24 = vsel %vm1110_vm2, %v1927_v6, %v1928_v9 }
  0x9f   : > { %2506 = vrot.lane.b32.xlu0 %v2405_v16, %s3952_s15  ;;  %2508 = vrot.lane.b32.xlu1 %v2413_v20, %s3952_s15  ;;  %v1637_v16 = vsel %vm740_vm3, %v1632_v4, %v1636_v5  ;;  %v4283_v20 = vld [vmem:[#allocation2 + $0x6c] sm:$0xff]   ;;  %v2726_v4 = vrot.slane %v3828_v54, 1  ;;  %v3836_v5 = vld [vmem:[#allocation2 + $0x80] sm:$0xff]  }
  0xa0   : > { %v849_v32 = vshll.u32 %v4283_v20, 16  ;;  %v853_v37 = vshrl.u32 %v4283_v20, 16  ;;  %v1646_v21 = vshll.u32 %v3836_v5, 16 }
  0xa1   : > { %v4243_v28 = vpop.permute.xlu0 %1947  ;;  %v1152_v39 = vpop.permute.xlu1 %1151 }
  0xa3   : > { %2755 = vrot.lane.b32.xlu0 %v2720_v29, %s3949_s12  ;;  %917 = vrot.lane.b32.xlu1 %v832_v34, %s3950_s13  ;;  %v2430_v29 = vshll.u32 %v3823_v18, 16  ;;  %v846_v34 = vrot.slane %v844_v23, 1  ;;  %v1639_v23 = vshrl.u32 %v3835_v2, 16 }
  0xa5   : > { %v4253_v43 = vpop.permute.xlu0 %2743  ;;  %v1154_v50 = vpop.permute.xlu1 %1153 }
  0xa7   : > { %2757 = vrot.lane.b32.xlu0 %v2722_v44, %s3949_s12  ;;  %919 = vrot.lane.b32.xlu1 %v840_v47, %s3950_s13  ;;  %v2432_v44 = vrot.slane %v2430_v29, 1  ;;  %v384_v47 = vld [vmem:[%s4022_s7 + $0x90] sm:$0xf]  ;;  %v1650_v29 = vshrl.u32 %v3836_v5, 16  ;;  %v862_v5 = vshrl.u32 %v4364_v46, 16 }
  0xa8   : > { %426 = vst.msk [vmem:[#allocation2 + $0x90] sm:$0xf] %vm388_vm0, %v384_v47 }
  0xa9   : > { %v902_v57 = vpop.permute.xlu0 %901  ;;  %v1950_v61 = vpop.permute.xlu1 %1949 }
  0xaa   : > { %950 = vst.msk [vmem:[#allocation3] sm:$0xff] %vm949_vm6, %v902_v57 }
  0xab   : > { %1200 = vst.msk [vmem:[#allocation3] sm:$0xff] %vm1199_vm7, %v1152_v39  ;;  %1167 = vrot.lane.b32.xlu0 %v1133_v53, %s3948_s11  ;;  %1169 = vrot.lane.b32.xlu1 %v1135_v58, %s3948_s11  ;;  %v2723_v53 = vrot.slane %v3824_v41, 1  ;;  %v851_v58 = vrot.slane %v849_v32, 1  ;;  %v3839_v32 = vld [vmem:[#allocation2 + $0x78] sm:$0xfe]  }
  0xac   : > { %1378 = vst.msk [vmem:[#allocation3] sm:$0xff] %vm1377_vm8, %v4207_v36  ;;  %v2417_v36 = vshll.u32 %v4264_v40, 16 }
  0xad   : > { %v904_v3 = vpop.permute.xlu0 %903  ;;  %v1701_v8 = vpop.permute.xlu1 %1700  ;;  %v855_v9 = vor.u32 %v853_v37, %v851_v58 }
  0xae   : > { %951 = vst.msk [vmem:[#allocation3 + $0x8] sm:$0xff] %vm949_vm6, %v904_v3  ;;  %v2419_v25 = vrot.slane %v2417_v36, 1  ;;  %v2725_v3 = vsel %vm1110_vm2, %v2723_v53, %v2724_v45 }
  0xaf   : > { %1201 = vst.msk [vmem:[#allocation3 + $0x8] sm:$0xff] %vm1199_vm7, %v1154_v50  ;;  %1345 = vrot.lane.b32.xlu0 %v3806_v63, %s3945_s8  ;;  %1347 = vrot.lane.b32.xlu1 %v3807_v0, %s3945_s8  ;;  %v386_v50 = vld [vmem:[%s4022_s7 + $0x98] sm:$0xf]  ;;  %v3831_v63 = vld [vmem:[#allocation2 + $0x6c] sm:$0xff]   ;;  %s326_s7 = sadd.s32 %s3661_s6, %s3660_s30  ;;  %s3378_s30 = sshll.u32 %s344_s28, 1 }
  0xb0   : > { %1379 = vst.msk [vmem:[#allocation3 + $0x8] sm:$0xff] %vm1377_vm8, %v4211_v1  ;;  %v2415_v1 = vshrl.u32 %v4264_v40, 16  ;;  %v3862_v40 = vld [vmem:[#allocation2 + $0x3c] sm:$0xff]   ;;  %v3832_v0 = vld [vmem:[#allocation2 + $0x74] ss:$0 sps:$4 sm:$0x11]  }
  0xb1   : > { %1748 = vst.msk [vmem:[#allocation3 + $0x8] sm:$0xff] %vm1746_vm9, %v1701_v8  ;;  %v1699_v14 = vpop.permute.xlu0 %1698  ;;  %v2497_v19 = vpop.permute.xlu1 %2496  ;;  %v1139_v20 = vrot.slane %v3832_v0, 1  ;;  %v3866_v0 = vld [vmem:[#allocation2 + $0x44] sm:$0xff]   ;;  %s3373_s16 = sshll.u32 %s326_s7, 2 }
  0xb2   : > { %1997 = vst.msk [vmem:[#allocation3 + $0x8] sm:$0xff] %vm1995_vm10, %v1950_v61  ;;  %v2420_v39 = vor.u32 %v2419_v25, %v2415_v1  ;;  %s4385_s26 = scalar_lea.vmem %s4717_s1, %s3373_s16  ;;  %s346_s16 = scalar_lea.vmem %s4721_s5, %s3378_s30 }
  0xb3   : > { %1747 = vst.msk [vmem:[#allocation3] sm:$0xff] %vm1746_vm9, %v1699_v14  ;;  %1714 = vrot.lane.b32.xlu0 %v1629_v13, %s3951_s14  ;;  %1716 = vrot.lane.b32.xlu1 %v1637_v16, %s3951_s14  ;;  %v1136_v13 = vrot.slane %v3830_v60, 1  ;;  %v2727_v14 = vsel %vm1110_vm2, %v2724_v45, %v2726_v4  ;;  %v1137_v16 = vrot.slane %v3831_v63, 1  ;;  %v3847_v45 = vld [vmem:[#allocation2 + $0x9c] ss:$0 sps:$4 sm:$0x11]  }
  0xb4   : > { %1996 = vst.msk [vmem:[#allocation3] sm:$0xff] %vm1995_vm10, %v4243_v28  ;;  %v2424_v28 = vrot.slane %v2422_v17, 1  ;;  %v1641_v17 = vshll.u32 %v3835_v2, 16 }
  0xb5   : > { %2175 = vst.msk [vmem:[#allocation3 + $0x8] sm:$0xff] %vm2173_vm11, %v4224_v15  ;;  %2174 = vst.msk [vmem:[#allocation3] sm:$0xff] %vm2173_vm11, %v4221_v12  ;;  %v2426_v15 = vshrl.u32 %v3822_v7, 16  ;;  %v2495_v26 = vpop.permute.xlu0 %2494  ;;  %v906_v30 = vpop.permute.xlu1 %905  ;;  %v842_v12 = vshrl.u32 %v4273_v11, 16  ;;  %v1138_v22 = vsel %vm1110_vm2, %v1136_v13, %v1137_v16  ;;  %v434_v13 = vld [vmem:[%s4385_s26 + $0x10] sm:$0x1] }
  0xb6   : > { %2544 = vst.msk [vmem:[#allocation3 + $0x8] sm:$0xff] %vm2542_vm12, %v2497_v19  ;;  %2543 = vst.msk [vmem:[#allocation3] sm:$0xff] %vm2542_vm12, %v2495_v26  ;;  %v2425_v52 = vsel %vm740_vm3, %v2420_v39, %v2424_v28  ;;  %v3837_v11 = vld [vmem:[#allocation2 + $0x88] ss:$0 sps:$4 sm:$0x11]   ;;  %v860_v19 = vsel %vm740_vm3, %v855_v9, %v859_v10  ;;  %v1140_v26 = vsel %vm1110_vm2, %v1137_v16, %v1139_v20 }
  0xb7   : > { %2792 = vst.msk [vmem:[#allocation3] sm:$0xff] %vm2791_vm13, %v4253_v43  ;;  %1963 = vrot.lane.b32.xlu0 %v1929_v24, %s3947_s10  ;;  %1965 = vrot.lane.b32.xlu1 %v1931_v27, %s3947_s10  ;;  %v2428_v43 = vor.u32 %v2426_v15, %v2424_v28  ;;  %v847_v57 = vor.u32 %v846_v34, %v842_v12  ;;  %v1643_v24 = vrot.slane %v1641_v17, 1  ;;  %v1654_v25 = vshll.u32 %v3837_v11, 16  ;;  %v3833_v27 = vld [vmem:[#allocation2 + $0x78] sm:$0xff]   ;;  %v3834_v12 = vld [vmem:[#allocation2 + $0x80] sm:$0xff]   ;;  %v3845_v34 = vld [vmem:[#allocation2 + $0x8c] sm:$0xff]  }
  0xb8   : > { %952 = vst.msk [vmem:[#allocation3 + $0x10] sm:$0xff] %vm949_vm6, %v906_v30  ;;  %v1648_v28 = vrot.slane %v1646_v21, 1  ;;  %v3840_v30 = vld [vmem:[#allocation2 + $0x80] sm:$0xff]   ;;  %v432_v9 = vld [vmem:[%s4385_s26 + $0x8] sm:$0xf] }
  0xb9   : > { %v2746_v42 = vpop.permute.xlu0 %2745  ;;  %v908_v48 = vpop.permute.xlu1 %907  ;;  %428 = vst.msk [vmem:[#allocation2 + $0x98] sm:$0xf] %vm388_vm0, %v386_v50  ;;  %v2433_v56 = vsel %vm740_vm3, %v2428_v43, %v2432_v44  ;;  %v852_v8 = vsel %vm740_vm3, %v847_v57, %v851_v58  ;;  %v1644_v35 = vor.u32 %v1643_v24, %v1639_v23  ;;  %v1656_v37 = vrot.slane %v1654_v25, 1  ;;  %v433_v11 = vld [vmem:[%s4385_s26 + $0xc] sm:$0xf] }
  0xba   : > { %2793 = vst.msk [vmem:[#allocation3 + $0x8] sm:$0xff] %vm2791_vm13, %v2746_v42  ;;  %v1652_v41 = vor.u32 %v1650_v29, %v1648_v28  ;;  %v1933_v42 = vrot.slane %v3840_v30, 1  ;;  %v1932_v44 = vrot.slane %v3839_v32, 1  ;;  %v864_v57 = vshll.u32 %v4364_v46, 16  ;;  %v3855_v30 = vld [vmem:[#allocation2 + $0x80] sm:$0xff]  }
  0xbb   : > { %953 = vst.msk [vmem:[#allocation3 + $0x18] sm:$0xff] %vm949_vm6, %v908_v48  ;;  %2141 = vrot.lane.b32.xlu0 %v3818_v31, %s3946_s9  ;;  %2143 = vrot.lane.b32.xlu1 %v3819_v33, %s3946_s9  ;;  %v3841_v33 = vld [vmem:[#allocation2 + $0x88] ss:$0 sps:$4 sm:$0x11]   ;;  %v1649_v47 = vsel %vm740_vm3, %v1644_v35, %v1648_v28  ;;  %v2437_v48 = vshll.u32 %v3845_v34, 16  ;;  %v1142_v46 = vrot.slane %v3855_v30, 1 }
  0xbc   : > { %586 = vst.msk [vmem:[#allocation3 + $0x30] sm:$0xff] %vm579_vm4, %v3862_v40  ;;  %v1657_v51 = vsel %vm740_vm3, %v1652_v41, %v1656_v37  ;;  %v1934_v54 = vsel %vm1110_vm2, %v1932_v44, %v1933_v42  ;;  %v3843_v40 = vld [vmem:[#allocation2 + $0x8c] sm:$0xff]   ;;  %587 = vst.msk [vmem:[#allocation3 + $0x38] sm:$0xff] %vm579_vm4, %v3866_v0  ;;  %v3852_v24 = vld [vmem:[#allocation2 + $0x9c] ss:$0 sps:$4 sm:$0x11]  }
  0xbd   : > { %v1156_v55 = vpop.permute.xlu0 %1155  ;;  %v1158_v61 = vpop.permute.xlu1 %1157  ;;  %v2439_v58 = vrot.slane %v2437_v48, 1  ;;  %443 = vst.msk [vmem:[#allocation2 + $0xa8] sm:$0xf] %vm388_vm0, %v432_v9  ;;  %444 = vst.msk [vmem:[#allocation2 + $0xac] sm:$0xf] %vm388_vm0, %v433_v11  ;;  %v2731_v37 = vrot.slane %v3852_v24, 1 }
  0xbe   : > { %1202 = vst.msk [vmem:[#allocation3 + $0x10] sm:$0xff] %vm1199_vm7, %v1156_v55  ;;  %v2808_v62 = vld [vmem:[#allocation3] sm:$0xff]  ;;  %1203 = vst.msk [vmem:[#allocation3 + $0x18] sm:$0xff] %vm1199_vm7, %v1158_v61  ;;  %v2435_v55 = vshrl.u32 %v3845_v34, 16  ;;  %v2450_v61 = vshll.u32 %v3847_v45, 16 }
  0xbf   : > { %2510 = vrot.lane.b32.xlu0 %v2425_v52, %s3952_s15  ;;  %3618 = vmatprep.mubr.msk.bf16.mxu0 %vm2851_vm14, %v2808_v62  ;;  %v1935_v52 = vrot.slane %v3841_v33, 1  ;;  %445 = vst.msk [vmem:[#allocation2 + $0xb0] sm:$0x1] %vm393_vm1, %v434_v13  ;;  %v3854_v32 = vld [vmem:[#allocation2 + $0x78] sm:$0xfe]   ;;  %v3859_v34 = vld [vmem:[#allocation2 + $0x8c] sm:$0xff]  }
  0xc0   : > { %2512 = vrot.lane.b32.xlu1 %v2433_v56, %s3952_s15  ;;  %v3846_v38 = vld [vmem:[#allocation2 + $0x94] sm:$0xff]   ;;  %v4373_v56 = vld [vmem:[#allocation2 + $0x80] sm:$0xff]   ;;  %v2440_v10 = vor.u32 %v2439_v58, %v2435_v55  ;;  %v2452_v17 = vrot.slane %v2450_v61, 1  ;;  %v3856_v33 = vld [vmem:[#allocation2 + $0x88] ss:$0 sps:$4 sm:$0x11]  }
  0xc1   : > { %v1334_v6 = vpop.permute.xlu0 %1333  ;;  %v2809_v7 = vld [vmem:[#allocation3 + $0x8] sm:$0xff]  ;;  %v1336_v36 = vpop.permute.xlu1 %1335  ;;  %v2442_v49 = vshll.u32 %v3846_v38, 16  ;;  %v2446_v60 = vshrl.u32 %v3846_v38, 16  ;;  %v1936_v63 = vsel %vm1110_vm2, %v1933_v42, %v1935_v52  ;;  %v3861_v48 = vld [vmem:[#allocation2 + $0x9c] ss:$0 sps:$4 sm:$0x11]  }
  0xc2   : > { %1380 = vst.msk [vmem:[#allocation3 + $0x10] sm:$0xff] %vm1377_vm8, %v1334_v6  ;;  %3619 = vmatmul.mubr.msk.bf16.vlgmr.msra.gmra.mrb[0].mxu0 %vm2851_vm14, %v2809_v7  ;;  %1381 = vst.msk [vmem:[#allocation3 + $0x18] sm:$0xff] %vm1377_vm8, %v1336_v36  ;;  %v4379_v4 = vld [vmem:[#allocation2 + $0x94] sm:$0xff]   ;;  %v3853_v6 = vld [vmem:[#allocation2 + $0x88] ss:$0 sps:$4 sm:$0x11]  }
  0xc3   : > { %2759 = vrot.lane.b32.xlu0 %v2725_v3, %s3949_s12  ;;  %v2444_v59 = vrot.slane %v2442_v49, 1  ;;  %v3844_v3 = vld [vmem:[#allocation2 + $0x94] sm:$0xff]   ;;  %v430_v7 = vld [vmem:[%s4385_s26] sm:$0xf]  ;;  %v3848_v36 = vld [vmem:[#allocation2 + $0x8c] sm:$0xfe]  }
  0xc4   : > { %921 = vrot.lane.b32.xlu1 %v852_v8, %s3950_s13  ;;  %v431_v8 = vld [vmem:[%s4385_s26 + $0x4] sm:$0xf]  ;;  %441 = vst.msk [vmem:[#allocation2 + $0xa0] sm:$0xf] %vm388_vm0, %v430_v7  ;;  %v2729_v21 = vrot.slane %v4379_v4, 1  ;;  %v2728_v23 = vrot.slane %v3848_v36, 1 }
  0xc5   : > { %v1703_v18 = vpop.permute.xlu0 %1702  ;;  %v1705_v1 = vpop.permute.xlu1 %1704  ;;  %442 = vst.msk [vmem:[#allocation2 + $0xa4] sm:$0xf] %vm388_vm0, %v431_v8  ;;  %v2448_v16 = vor.u32 %v2446_v60, %v2444_v59  ;;  %v877_v29 = vshll.u32 %v3853_v6, 16  ;;  %v3860_v38 = vld [vmem:[#allocation2 + $0x94] sm:$0xff]   ;;  %v1674_v61 = vshll.u32 %v3861_v48, 16  ;;  %v4436_v8 = vld [vmem:[#allocation2 + $0x8c] sm:$0xff]  }
  0xc6   : > { %1749 = vst.msk [vmem:[#allocation3 + $0x10] sm:$0xff] %vm1746_vm9, %v1703_v18  ;;  %1750 = vst.msk [vmem:[#allocation3 + $0x18] sm:$0xff] %vm1746_vm9, %v1705_v1  ;;  %v866_v18 = vrot.slane %v864_v57, 1  ;;  %v873_v1 = vshrl.u32 %v4373_v56, 16  ;;  %v2730_v35 = vsel %vm1110_vm2, %v2728_v23, %v2729_v21  ;;  %v2732_v49 = vsel %vm1110_vm2, %v2729_v21, %v2731_v37  ;;  %v3863_v0 = vld [vmem:[#allocation2 + $0x8c] sm:$0xfe]  }
  0xc7   : > { %2761 = vrot.lane.b32.xlu0 %v2727_v14, %s3949_s12  ;;  %v879_v44 = vrot.slane %v877_v29, 1  ;;  %v1670_v60 = vshrl.u32 %v3860_v38, 16  ;;  %v3858_v4 = vld [vmem:[#allocation2 + $0x94] sm:$0xff]   ;;  %v4439_v9 = vld [vmem:[#allocation2 + $0xa8] sm:$0xff]   ;;  %v1676_v11 = vrot.slane %v1674_v61, 1  ;;  %v884_v23 = vshll.u32 %v4436_v8, 16 }
  0xc8   : > { %923 = vrot.lane.b32.xlu1 %v860_v19, %s3950_s13  ;;  %v869_v19 = vshll.u32 %v4373_v56, 16  ;;  %v1659_v56 = vshrl.u32 %v3859_v34, 16  ;;  %v4441_v13 = vld [vmem:[#allocation2 + $0xb0] ss:$0 sps:$4 sm:$0x11]  }
  0xc9   : > { %v1952_v15 = vpop.permute.xlu0 %1951  ;;  %v1954_v31 = vpop.permute.xlu1 %1953  ;;  %v435_v29 = vld [vmem:[%s4385_s26 + $0x14] sm:$0xf]  ;;  %v436_v30 = vld [vmem:[%s4385_s26 + $0x18] sm:$0xf] }
  0xca   : > { %1998 = vst.msk [vmem:[#allocation3 + $0x10] sm:$0xff] %vm1995_vm10, %v1952_v15  ;;  %1999 = vst.msk [vmem:[#allocation3 + $0x18] sm:$0xff] %vm1995_vm10, %v1954_v31  ;;  %v871_v28 = vrot.slane %v869_v19, 1  ;;  %v3886_v31 = vld [vmem:[#allocation2 + $0x50] sm:$0xff]   ;;  %v1937_v19 = vrot.slane %v3863_v0, 1 }
  0xcb   : > { %1171 = vrot.lane.b32.xlu0 %v1138_v22, %s3948_s11  ;;  %v2445_v22 = vsel %vm740_vm3, %v2440_v10, %v2444_v59  ;;  %588 = vst.msk [vmem:[#allocation3 + $0x40] sm:$0xff] %vm579_vm4, %v3886_v31  ;;  %v3899_v31 = vld [vmem:[#allocation2 + $0x64] sm:$0xff]   ;;  %v3877_v48 = vld [vmem:[#allocation2 + $0x9c] ss:$0 sps:$4 sm:$0x11]  }
  0xcc   : > { %1173 = vrot.lane.b32.xlu1 %v1140_v26, %s3948_s11  ;;  %v2453_v26 = vsel %vm740_vm3, %v2448_v16, %v2452_v17  ;;  %v4432_v6 = vld [vmem:[#allocation2 + $0xa0] sm:$0xff]   ;;  %v3890_v17 = vld [vmem:[#allocation2 + $0x58] sm:$0xff]   ;;  %446 = vst.msk [vmem:[#allocation2 + $0xb4] sm:$0xf] %vm388_vm0, %v435_v29  ;;  %447 = vst.msk [vmem:[#allocation2 + $0xb8] sm:$0xf] %vm388_vm0, %v436_v30 }
  0xcd   : > { %v2130_v39 = vpop.permute.xlu0 %2129  ;;  %v2132_v43 = vpop.permute.xlu1 %2131  ;;  %v2457_v16 = vshll.u32 %v4432_v6, 16  ;;  %589 = vst.msk [vmem:[#allocation3 + $0x48] sm:$0xff] %vm579_vm4, %v3890_v17  ;;  %590 = vst.msk [vmem:[#allocation3 + $0x50] sm:$0xff] %vm579_vm4, %v3899_v31 }
  0xce   : > { %2176 = vst.msk [vmem:[#allocation3 + $0x10] sm:$0xff] %vm2173_vm11, %v2130_v39  ;;  %2177 = vst.msk [vmem:[#allocation3 + $0x18] sm:$0xff] %vm2173_vm11, %v2132_v43  ;;  %v875_v43 = vor.u32 %v873_v1, %v871_v28  ;;  %v2455_v1 = vshrl.u32 %v4432_v6, 16  ;;  %v897_v6 = vshll.u32 %v3877_v48, 16 }
  0xcf   : > { %1349 = vrot.lane.b32.xlu0 %v3833_v27, %s3945_s8  ;;  %v867_v27 = vor.u32 %v866_v18, %v862_v5  ;;  %v3865_v5 = vld [vmem:[#allocation2 + $0x9c] ss:$0 sps:$4 sm:$0x11]  }
  0xd0   : > { %1351 = vrot.lane.b32.xlu1 %v3834_v12, %s3945_s8  ;;  %v1940_v21 = vrot.slane %v3865_v5, 1 }
  0xd1   : > { %v2499_v50 = vpop.permute.xlu0 %2498  ;;  %v2501_v53 = vpop.permute.xlu1 %2500  ;;  %v872_v42 = vsel %vm740_vm3, %v867_v27, %v871_v28  ;;  %v2459_v28 = vrot.slane %v2457_v16, 1 }
  0xd2   : > { %2545 = vst.msk [vmem:[#allocation3 + $0x10] sm:$0xff] %vm2542_vm12, %v2499_v50  ;;  %2546 = vst.msk [vmem:[#allocation3 + $0x18] sm:$0xff] %vm2542_vm12, %v2501_v53  ;;  %v1141_v50 = vrot.slane %v3854_v32, 1  ;;  %v880_v53 = vsel %vm740_vm3, %v875_v43, %v879_v44  ;;  %v437_v32 = vld [vmem:[%s4385_s26 + $0x1c] sm:$0xf]  ;;  %v4475_v43 = vld [vmem:[#allocation2 + $0xa8] sm:$0xff]  }
  0xd3   : > { %1718 = vrot.lane.b32.xlu0 %v1649_v47, %s3951_s14  ;;  %v1661_v47 = vshll.u32 %v3859_v34, 16  ;;  %v439_v34 = vld [vmem:[%s4385_s26 + $0x24] sm:$0x1]  ;;  %448 = vst.msk [vmem:[#allocation2 + $0xbc] sm:$0xf] %vm388_vm0, %v437_v32  ;;  %v3900_v44 = vld [vmem:[#allocation2 + $0x6c] sm:$0xff]  }
  0xd4   : > { %1720 = vrot.lane.b32.xlu1 %v1657_v51, %s3951_s14  ;;  %v1666_v51 = vshll.u32 %v3860_v38, 16  ;;  %v1143_v58 = vsel %vm1110_vm2, %v1141_v50, %v1142_v46  ;;  %450 = vst.msk [vmem:[#allocation2 + $0xc4] sm:$0x1] %vm393_vm1, %v439_v34  ;;  %v2460_v50 = vor.u32 %v2459_v28, %v2455_v1  ;;  %v3885_v28 = vld [vmem:[#allocation2 + $0xb0] ss:$0 sps:$4 sm:$0x11]  }
  0xd5   : > { %v2748_v62 = vpop.permute.xlu0 %2747  ;;  %v910_v2 = vpop.permute.xlu1 %909  ;;  %v1663_v57 = vrot.slane %v1661_v47, 1  ;;  %v3901_v47 = vld [vmem:[#allocation2 + $0x78] sm:$0xff]   ;;  %591 = vst.msk [vmem:[#allocation3 + $0x58] sm:$0xff] %vm579_vm4, %v3900_v44  ;;  %v3888_v44 = vld [vmem:[#allocation2 + $0xa8] sm:$0xff]  }
  0xd6   : > { %2794 = vst.msk [vmem:[#allocation3 + $0x10] sm:$0xff] %vm2791_vm13, %v2748_v62  ;;  %v1668_v59 = vrot.slane %v1666_v51, 1  ;;  %v882_v51 = vshrl.u32 %v4436_v8, 16  ;;  %v3878_v8 = vld [vmem:[#allocation2 + $0x8c] sm:$0xfe]  }
  0xd7   : > { %954 = vst.msk [vmem:[#allocation3 + $0x20] sm:$0xff] %vm949_vm6, %v910_v2  ;;  %1967 = vrot.lane.b32.xlu0 %v1934_v54, %s3947_s10  ;;  %v1144_v54 = vrot.slane %v3856_v33, 1  ;;  %v3864_v2 = vld [vmem:[#allocation2 + $0x94] sm:$0xff]   ;;  %v1664_v7 = vor.u32 %v1663_v57, %v1659_v56  ;;  %v438_v33 = vld [vmem:[%s4385_s26 + $0x20] sm:$0xf]  ;;  %v886_v56 = vrot.slane %v884_v23, 1 }
  0xd8   : > { %1969 = vrot.lane.b32.xlu1 %v1936_v63, %s3947_s10  ;;  %v1672_v36 = vor.u32 %v1670_v60, %v1668_v59  ;;  %449 = vst.msk [vmem:[#allocation2 + $0xc0] sm:$0xf] %vm388_vm0, %v438_v33  ;;  %v3876_v60 = vld [vmem:[#allocation2 + $0xb0] ss:$0 sps:$4 sm:$0x11]  }
  0xd9   : > { %v2750_v14 = vpop.permute.xlu0 %2749  ;;  %v912_v20 = vpop.permute.xlu1 %911  ;;  %v1145_v63 = vsel %vm1110_vm2, %v1142_v46, %v1144_v54  ;;  %v1669_v18 = vsel %vm740_vm3, %v1664_v7, %v1668_v59  ;;  %v3868_v46 = vld [vmem:[#allocation2 + $0xa8] sm:$0xff]   ;;  %592 = vst.msk [vmem:[#allocation3 + $0x60] sm:$0xff] %vm579_vm4, %v3901_v47 }
  0xda   : > { %2795 = vst.msk [vmem:[#allocation3 + $0x18] sm:$0xff] %vm2791_vm13, %v2750_v14 }
  0xdb   : > { %955 = vst.msk [vmem:[#allocation3 + $0x28] sm:$0xff] %vm949_vm6, %v912_v20  ;;  %2145 = vrot.lane.b32.xlu0 %v3843_v40, %s3946_s9  ;;  %v3857_v40 = vld [vmem:[#allocation2 + $0x8c] sm:$0xff]   ;;  %v1938_v20 = vrot.slane %v3864_v2, 1 }
  0xdc   : > { %2147 = vrot.lane.b32.xlu1 %v3844_v3, %s3946_s9 }
  0xdd   : > { %v1160_v25 = vpop.permute.xlu0 %1159  ;;  %v2810_v15 = vld [vmem:[#allocation3 + $0x10] sm:$0xff]  ;;  %v1162_v12 = vpop.permute.xlu1 %1161  ;;  %v1941_v38 = vsel %vm1110_vm2, %v1938_v20, %v1940_v21 }
  0xde   : > { %1204 = vst.msk [vmem:[#allocation3 + $0x20] sm:$0xff] %vm1199_vm7, %v1160_v25  ;;  %3622 = vmatprep.mubr.msk.bf16.mxu0 %vm2851_vm14, %v2810_v15  ;;  %1205 = vst.msk [vmem:[#allocation3 + $0x28] sm:$0xff] %vm1199_vm7, %v1162_v12  ;;  %v1677_v25 = vsel %vm740_vm3, %v1672_v36, %v1676_v11  ;;  %v2466_v15 = vshrl.u32 %v4439_v9, 16  ;;  %v4461_v12 = vld [vmem:[#allocation2 + $0x94] sm:$0xff]   ;;  %v2736_v36 = vrot.slane %v3876_v60, 1 }
  0xdf   : > { %2514 = vrot.lane.b32.xlu0 %v2445_v22, %s3952_s15  ;;  %v2462_v22 = vshll.u32 %v4439_v9, 16  ;;  %v889_v57 = vshll.u32 %v4461_v12, 16  ;;  %v893_v61 = vshrl.u32 %v4461_v12, 16  ;;  %v3880_v9 = vld [vmem:[#allocation2 + $0x9c] ss:$0 sps:$4 sm:$0x11]  }
  0xe0   : > { %2516 = vrot.lane.b32.xlu1 %v2453_v26, %s3952_s15  ;;  %v2470_v26 = vshll.u32 %v4441_v13, 16  ;;  %v3879_v11 = vld [vmem:[#allocation2 + $0x94] sm:$0xff]   ;;  %v3883_v13 = vld [vmem:[#allocation2 + $0xa0] sm:$0xff]  }
  0xe1   : > { %v1338_v39 = vpop.permute.xlu0 %1337  ;;  %v2811_v41 = vld [vmem:[#allocation3 + $0x18] sm:$0xff]  ;;  %v1340_v45 = vpop.permute.xlu1 %1339  ;;  %v891_v5 = vrot.slane %v889_v57, 1  ;;  %v1147_v23 = vrot.slane %v3879_v11, 1  ;;  %v1679_v31 = vshrl.u32 %v3883_v13, 16 }
  0xe2   : > { %1382 = vst.msk [vmem:[#allocation3 + $0x20] sm:$0xff] %vm1377_vm8, %v1338_v39  ;;  %3623 = vmatmul.mubr.msk.bf16.gmra.mrb[4].mxu0 %vm2851_vm14, %v2811_v41  ;;  %1383 = vst.msk [vmem:[#allocation3 + $0x28] sm:$0xff] %vm1377_vm8, %v1340_v45  ;;  %v3867_v39 = vld [vmem:[#allocation2 + $0xa0] sm:$0xff]   ;;  %v2464_v41 = vrot.slane %v2462_v22, 1  ;;  %v1146_v22 = vrot.slane %v3878_v8, 1 }
  0xe3   : > { %2763 = vrot.lane.b32.xlu0 %v2730_v35, %s3949_s12  ;;  %v1939_v35 = vsel %vm1110_vm2, %v1937_v19, %v1938_v20  ;;  %v899_v19 = vrot.slane %v897_v6, 1  ;;  %v3884_v20 = vld [vmem:[#allocation2 + $0xa8] sm:$0xff]   ;;  %v3895_v60 = vld [vmem:[#allocation2 + $0xc4] ss:$0 sps:$4 sm:$0x11]   ;;  %v3892_v8 = vld [vmem:[#allocation2 + $0xbc] sm:$0xff]  }
  0xe4   : > { %925 = vrot.lane.b32.xlu1 %v872_v42, %s3950_s13  ;;  %v3872_v42 = vld [vmem:[#allocation2 + $0xa0] sm:$0xfe]   ;;  %v2468_v54 = vor.u32 %v2466_v15, %v2464_v41  ;;  %v1148_v30 = vsel %vm1110_vm2, %v1146_v22, %v1147_v23 }
  0xe5   : > { %v1707_v52 = vpop.permute.xlu0 %1706  ;;  %v1709_v55 = vpop.permute.xlu1 %1708 }
  0xe6   : > { %1751 = vst.msk [vmem:[#allocation3 + $0x20] sm:$0xff] %vm1746_vm9, %v1707_v52  ;;  %1752 = vst.msk [vmem:[#allocation3 + $0x28] sm:$0xff] %vm1746_vm9, %v1709_v55  ;;  %v3903_v52 = vld [vmem:[#allocation2 + $0x8c] sm:$0xff]   ;;  %v2472_v55 = vrot.slane %v2470_v26, 1  ;;  %v1149_v26 = vrot.slane %v3880_v9, 1 }
  0xe7   : > { %2765 = vrot.lane.b32.xlu0 %v2732_v49, %s3949_s12  ;;  %v3902_v49 = vld [vmem:[#allocation2 + $0x80] sm:$0xff]   ;;  %594 = vst.msk [vmem:[#allocation3 + $0x70] sm:$0xff] %vm579_vm4, %v3903_v52 }
  0xe8   : > { %927 = vrot.lane.b32.xlu1 %v880_v53, %s3950_s13  ;;  %593 = vst.msk [vmem:[#allocation3 + $0x68] sm:$0xff] %vm579_vm4, %v3902_v49  ;;  %v1150_v33 = vsel %vm1110_vm2, %v1147_v23, %v1149_v26  ;;  %v3889_v49 = vld [vmem:[#allocation2 + $0xb0] ss:$0 sps:$4 sm:$0x11]  }
  0xe9   : > { %v1956_v62 = vpop.permute.xlu0 %1955  ;;  %v1958_v3 = vpop.permute.xlu1 %1957 }
  0xea   : > { %2000 = vst.msk [vmem:[#allocation3 + $0x20] sm:$0xff] %vm1995_vm10, %v1956_v62  ;;  %2001 = vst.msk [vmem:[#allocation3 + $0x28] sm:$0xff] %vm1995_vm10, %v1958_v3  ;;  %v2733_v62 = vrot.slane %v3872_v42, 1  ;;  %v2473_v3 = vsel %vm740_vm3, %v2468_v54, %v2472_v55  ;;  %v1943_v54 = vrot.slane %v3888_v44, 1 }
  0xeb   : > { %1175 = vrot.lane.b32.xlu0 %v1143_v58, %s3948_s11  ;;  %v3904_v58 = vld [vmem:[#allocation2 + $0x94] sm:$0xff]  }
  0xec   : > { %1177 = vrot.lane.b32.xlu1 %v1145_v63, %s3948_s11  ;;  %v2734_v63 = vrot.slane %v4475_v43, 1  ;;  %595 = vst.msk [vmem:[#allocation3 + $0x78] sm:$0xff] %vm579_vm4, %v3904_v58  ;;  %v3887_v43 = vld [vmem:[#allocation2 + $0xa0] sm:$0xfe]   ;;  %v1945_v58 = vrot.slane %v3889_v49, 1 }
  0xed   : > { %v2134_v10 = vpop.permute.xlu0 %2133  ;;  %v2136_v14 = vpop.permute.xlu1 %2135 }
  0xee   : > { %2178 = vst.msk [vmem:[#allocation3 + $0x20] sm:$0xff] %vm2173_vm11, %v2134_v10  ;;  %2179 = vst.msk [vmem:[#allocation3 + $0x28] sm:$0xff] %vm2173_vm11, %v2136_v14  ;;  %v2735_v10 = vsel %vm1110_vm2, %v2733_v62, %v2734_v63  ;;  %v2737_v1 = vsel %vm1110_vm2, %v2734_v63, %v2736_v36  ;;  %v3897_v36 = vld [vmem:[#allocation2 + $0xbc] sm:$0xff]  }
  0xef   : > { %1353 = vrot.lane.b32.xlu0 %v3857_v40, %s3945_s8  ;;  %v2465_v40 = vsel %vm740_vm3, %v2460_v50, %v2464_v41  ;;  %v3882_v41 = vld [vmem:[#allocation2 + $0xa8] sm:$0xff]   ;;  %v3894_v50 = vld [vmem:[#allocation2 + $0xbc] sm:$0xff]  }
  0xf0   : > { %1355 = vrot.lane.b32.xlu1 %v3858_v4, %s3945_s8  ;;  %v887_v4 = vor.u32 %v886_v56, %v882_v51 }
  0xf1   : > { %v2503_v24 = vpop.permute.xlu0 %2502  ;;  %v2505_v27 = vpop.permute.xlu1 %2504 }
  0xf2   : > { %2547 = vst.msk [vmem:[#allocation3 + $0x20] sm:$0xff] %vm2542_vm12, %v2503_v24  ;;  %2548 = vst.msk [vmem:[#allocation3 + $0x28] sm:$0xff] %vm2542_vm12, %v2505_v27  ;;  %v892_v17 = vsel %vm740_vm3, %v887_v4, %v891_v5  ;;  %v1681_v24 = vshll.u32 %v3883_v13, 16  ;;  %v1686_v27 = vshll.u32 %v3884_v20, 16  ;;  %v2486_v4 = vshrl.u32 %v3894_v50, 16 }
  0xf3   : > { %1722 = vrot.lane.b32.xlu0 %v1669_v18, %s3951_s14  ;;  %v895_v18 = vor.u32 %v893_v61, %v891_v5  ;;  %v2490_v5 = vshll.u32 %v3895_v60, 16 }
  0xf4   : > { %1724 = vrot.lane.b32.xlu1 %v1677_v25, %s3951_s14  ;;  %v1683_v12 = vrot.slane %v1681_v24, 1  ;;  %v1688_v34 = vrot.slane %v1686_v27, 1 }
  0xf5   : > { %v2752_v37 = vpop.permute.xlu0 %2751  ;;  %v914_v45 = vpop.permute.xlu1 %913  ;;  %v900_v15 = vsel %vm740_vm3, %v895_v18, %v899_v19 }
  0xf6   : > { %2796 = vst.msk [vmem:[#allocation3 + $0x20] sm:$0xff] %vm2791_vm13, %v2752_v37  ;;  %v1694_v37 = vshll.u32 %v3885_v28, 16  ;;  %v1684_v42 = vor.u32 %v1683_v12, %v1679_v31 }
  0xf7   : > { %956 = vst.msk [vmem:[#allocation3 + $0x30] sm:$0xff] %vm949_vm6, %v914_v45  ;;  %1971 = vrot.lane.b32.xlu0 %v1939_v35, %s3947_s10  ;;  %v1690_v35 = vshrl.u32 %v3884_v20, 16  ;;  %v3893_v45 = vld [vmem:[#allocation2 + $0xb4] sm:$0xff]   ;;  %v2739_v20 = vrot.slane %v3897_v36, 1 }
  0xf8   : > { %1973 = vrot.lane.b32.xlu1 %v1941_v38, %s3947_s10  ;;  %v1696_v48 = vrot.slane %v1694_v37, 1  ;;  %v1689_v52 = vsel %vm740_vm3, %v1684_v42, %v1688_v34  ;;  %v2477_v55 = vshll.u32 %v3893_v45, 16  ;;  %v2475_v63 = vshrl.u32 %v3893_v45, 16 }
  0xf9   : > { %v2754_v53 = vpop.permute.xlu0 %2753  ;;  %v916_v59 = vpop.permute.xlu1 %915  ;;  %v1692_v47 = vor.u32 %v1690_v35, %v1688_v34 }
  0xfa   : > { %2797 = vst.msk [vmem:[#allocation3 + $0x28] sm:$0xff] %vm2791_vm13, %v2754_v53  ;;  %v1942_v53 = vrot.slane %v3887_v43, 1 }
  0xfb   : > { %957 = vst.msk [vmem:[#allocation3 + $0x38] sm:$0xff] %vm949_vm6, %v916_v59  ;;  %2149 = vrot.lane.b32.xlu0 %v3867_v39, %s3946_s9  ;;  %v3881_v39 = vld [vmem:[#allocation2 + $0xa0] sm:$0xff]   ;;  %v1697_v57 = vsel %vm740_vm3, %v1692_v47, %v1696_v48  ;;  %v2482_v59 = vshll.u32 %v3894_v50, 16 }
  0xfc   : > { %2151 = vrot.lane.b32.xlu1 %v3868_v46, %s3946_s9  ;;  %v1944_v62 = vsel %vm1110_vm2, %v1942_v53, %v1943_v54 }
  0xfd   : > { %v1164_v0 = vpop.permute.xlu0 %1163  ;;  %v2812_v2 = vld [vmem:[#allocation3 + $0x20] sm:$0xff]  ;;  %v1166_v7 = vpop.permute.xlu1 %1165 }
  0xfe   : > { %1206 = vst.msk [vmem:[#allocation3 + $0x30] sm:$0xff] %vm1199_vm7, %v1164_v0  ;;  %3626 = vmatprep.mubr.msk.bf16.mxu0 %vm2851_vm14, %v2812_v2  ;;  %1207 = vst.msk [vmem:[#allocation3 + $0x38] sm:$0xff] %vm1199_vm7, %v1166_v7  ;;  %v1946_v2 = vsel %vm1110_vm2, %v1943_v54, %v1945_v58  ;;  %v3891_v7 = vld [vmem:[#allocation2 + $0xb4] sm:$0xff]  }
  0xff   : > { %2518 = vrot.lane.b32.xlu0 %v2465_v40, %s3952_s15  ;;  %v2479_v40 = vrot.slane %v2477_v55, 1 }
 0x100   : > { %2520 = vrot.lane.b32.xlu1 %v2473_v3, %s3952_s15  ;;  %v2484_v3 = vrot.slane %v2482_v59, 1 }
 0x101   : > { %v1342_v14 = vpop.permute.xlu0 %1341  ;;  %v2813_v16 = vld [vmem:[#allocation3 + $0x28] sm:$0xff]  ;;  %v1344_v21 = vpop.permute.xlu1 %1343  ;;  %v2480_v9 = vor.u32 %v2479_v40, %v2475_v63 }
 0x102   : > { %1384 = vst.msk [vmem:[#allocation3 + $0x30] sm:$0xff] %vm1377_vm8, %v1342_v14  ;;  %3627 = vmatmul.mubr.msk.bf16.gmra.mrb[8].mxu0 %vm2851_vm14, %v2813_v16  ;;  %1385 = vst.msk [vmem:[#allocation3 + $0x38] sm:$0xff] %vm1377_vm8, %v1344_v21  ;;  %v2488_v13 = vor.u32 %v2486_v4, %v2484_v3  ;;  %v2492_v14 = vrot.slane %v2490_v5, 1  ;;  %v3898_v16 = vld [vmem:[#allocation2 + $0xc4] ss:$0 sps:$4 sm:$0x11]  }
 0x103   : > { %2767 = vrot.lane.b32.xlu0 %v2735_v10, %s3949_s12  ;;  %v3896_v10 = vld [vmem:[#allocation2 + $0xb4] sm:$0xfe]   ;;  %v2485_v18 = vsel %vm740_vm3, %v2480_v9, %v2484_v3  ;;  %v2741_v23 = vrot.slane %v3898_v16, 1 }
 0x104   : > { %929 = vrot.lane.b32.xlu1 %v892_v17, %s3950_s13  ;;  %v2738_v19 = vrot.slane %v3896_v10, 1  ;;  %v2493_v22 = vsel %vm740_vm3, %v2488_v13, %v2492_v14 }
 0x105   : > { %v1711_v25 = vpop.permute.xlu0 %1710  ;;  %v1713_v29 = vpop.permute.xlu1 %1712  ;;  %v2742_v27 = vsel %vm1110_vm2, %v2739_v20, %v2741_v23 }
 0x106   : > { %1753 = vst.msk [vmem:[#allocation3 + $0x30] sm:$0xff] %vm1746_vm9, %v1711_v25  ;;  %1754 = vst.msk [vmem:[#allocation3 + $0x38] sm:$0xff] %vm1746_vm9, %v1713_v29  ;;  %v2740_v25 = vsel %vm1110_vm2, %v2738_v19, %v2739_v20 }
 0x107   : > { %2769 = vrot.lane.b32.xlu0 %v2737_v1, %s3949_s12 }
 0x108   : > { %931 = vrot.lane.b32.xlu1 %v900_v15, %s3950_s13 }
 0x109   : > { %v1960_v32 = vpop.permute.xlu0 %1959  ;;  %v1962_v38 = vpop.permute.xlu1 %1961 }
 0x10a   : > { %2002 = vst.msk [vmem:[#allocation3 + $0x30] sm:$0xff] %vm1995_vm10, %v1960_v32  ;;  %2003 = vst.msk [vmem:[#allocation3 + $0x38] sm:$0xff] %vm1995_vm10, %v1962_v38 }
 0x10b   : > { %1179 = vrot.lane.b32.xlu0 %v1148_v30, %s3948_s11 }
 0x10c   : > { %1181 = vrot.lane.b32.xlu1 %v1150_v33, %s3948_s11 }
 0x10d   : > { %v2138_v46 = vpop.permute.xlu0 %2137  ;;  %v2140_v51 = vpop.permute.xlu1 %2139 }
 0x10e   : > { %2180 = vst.msk [vmem:[#allocation3 + $0x30] sm:$0xff] %vm2173_vm11, %v2138_v46  ;;  %2181 = vst.msk [vmem:[#allocation3 + $0x38] sm:$0xff] %vm2173_vm11, %v2140_v51 }
 0x10f   : > { %1357 = vrot.lane.b32.xlu0 %v3881_v39, %s3945_s8 }
 0x110   : > { %1359 = vrot.lane.b32.xlu1 %v3882_v41, %s3945_s8  ;;  %s3374_s8 = sshll.u32 %s3927_s18, 5 }
 0x111   : > { %v2507_v56 = vpop.permute.xlu0 %2506  ;;  %v2509_v61 = vpop.permute.xlu1 %2508  ;;  %p332_p8 = scmp.lt.s32.totalorder %s3374_s8, 127 }
 0x112   : > { %2549 = vst.msk [vmem:[#allocation3 + $0x30] sm:$0xff] %vm2542_vm12, %v2507_v56  ;;  %2550 = vst.msk [vmem:[#allocation3 + $0x38] sm:$0xff] %vm2542_vm12, %v2509_v61 }
 0x113   : > { %1726 = vrot.lane.b32.xlu0 %v1689_v52, %s3951_s14  ;;  %s4737_s8 = smov (!%p332_p8, %s3374_s8), 127 }
 0x114   : > { %1728 = vrot.lane.b32.xlu1 %v1697_v57, %s3951_s14 }
 0x115   : > { %v2756_v0 = vpop.permute.xlu0 %2755  ;;  %v918_v6 = vpop.permute.xlu1 %917 }
 0x116   : > { %2798 = vst.msk [vmem:[#allocation3 + $0x30] sm:$0xff] %vm2791_vm13, %v2756_v0 }
 0x117   : > { %958 = vst.msk [vmem:[#allocation3 + $0x40] sm:$0xff] %vm949_vm6, %v918_v6  ;;  %1975 = vrot.lane.b32.xlu0 %v1944_v62, %s3947_s10 }
 0x118   : > { %1977 = vrot.lane.b32.xlu1 %v1946_v2, %s3947_s10 }
 0x119   : > { %v2758_v11 = vpop.permute.xlu0 %2757  ;;  %v920_v17 = vpop.permute.xlu1 %919 }
 0x11a   : > { %2799 = vst.msk [vmem:[#allocation3 + $0x38] sm:$0xff] %vm2791_vm13, %v2758_v11 }
 0x11b   : > { %959 = vst.msk [vmem:[#allocation3 + $0x48] sm:$0xff] %vm949_vm6, %v920_v17  ;;  %2153 = vrot.lane.b32.xlu0 %v3891_v7, %s3946_s9 }
 0x11c   : > { %2155 = vrot.lane.b32.xlu1 %v3892_v8, %s3946_s9  ;;  %s3375_s9 = sshll.u32 %s4733_s19, 7 }
 0x11d   : > { %v1168_v21 = vpop.permute.xlu0 %1167  ;;  %v2814_v1 = vld [vmem:[#allocation3 + $0x30] sm:$0xff]  ;;  %v1170_v24 = vpop.permute.xlu1 %1169  ;;  %s335_s18 = sadd.s32 %s3375_s9, %s4737_s8 }
 0x11e   : > { %1208 = vst.msk [vmem:[#allocation3 + $0x40] sm:$0xff] %vm1199_vm7, %v1168_v21  ;;  %3630 = vmatprep.mubr.msk.bf16.mxu0 %vm2851_vm14, %v2814_v1  ;;  %1209 = vst.msk [vmem:[#allocation3 + $0x48] sm:$0xff] %vm1199_vm7, %v1170_v24  ;;  %s3376_s10 = sshll.u32 %s335_s18, 3 }
 0x11f   : > { %2522 = vrot.lane.b32.xlu0 %v2485_v18, %s3952_s15 }
 0x120   : > { %2524 = vrot.lane.b32.xlu1 %v2493_v22, %s3952_s15  ;;  %s4626_s15 = scalar_lea.vmem %s4720_s4, %s3376_s10 }
 0x121   : > { %v1346_v15 = vpop.permute.xlu0 %1345  ;;  %v2815_v26 = vld [vmem:[#allocation3 + $0x38] sm:$0xff]  ;;  %v1348_v28 = vpop.permute.xlu1 %1347 }
 0x122   : > { %1386 = vst.msk [vmem:[#allocation3 + $0x40] sm:$0xff] %vm1377_vm8, %v1346_v15  ;;  %3631 = vmatmul.mubr.msk.bf16.gmra.mrb[12].mxu0 %vm2851_vm14, %v2815_v26  ;;  %1387 = vst.msk [vmem:[#allocation3 + $0x48] sm:$0xff] %vm1377_vm8, %v1348_v28 }
 0x123   : > { %2771 = vrot.lane.b32.xlu0 %v2740_v25, %s3949_s12 }
 0x124   : > { %2773 = vrot.lane.b32.xlu1 %v2742_v27, %s3949_s12  ;;  %v4621_v27 = vld [vmem:[%s4719_s3] ss:$0 sm:$0xff] }
 0x125   : > { %v1715_v29 = vpop.permute.xlu0 %1714  ;;  %v1717_v30 = vpop.permute.xlu1 %1716 }
 0x126   : > { %1755 = vst.msk [vmem:[#allocation3 + $0x40] sm:$0xff] %vm1746_vm9, %v1715_v29  ;;  %1756 = vst.msk [vmem:[#allocation3 + $0x48] sm:$0xff] %vm1746_vm9, %v1717_v30 }
 0x129   : > { %v1964_v31 = vpop.permute.xlu0 %1963  ;;  %v1966_v12 = vpop.permute.xlu1 %1965 }
 0x12a   : > { %2004 = vst.msk [vmem:[#allocation3 + $0x40] sm:$0xff] %vm1995_vm10, %v1964_v31  ;;  %2005 = vst.msk [vmem:[#allocation3 + $0x48] sm:$0xff] %vm1995_vm10, %v1966_v12 }
 0x12d   : > { %v2142_v32 = vpop.permute.xlu0 %2141  ;;  %v2144_v33 = vpop.permute.xlu1 %2143 }
 0x12e   : > { %2182 = vst.msk [vmem:[#allocation3 + $0x40] sm:$0xff] %vm2173_vm11, %v2142_v32  ;;  %2183 = vst.msk [vmem:[#allocation3 + $0x48] sm:$0xff] %vm2173_vm11, %v2144_v33 }
 0x131   : > { %v2511_v34 = vpop.permute.xlu0 %2510 }
 0x132   : > { %2551 = vst.msk [vmem:[#allocation3 + $0x40] sm:$0xff] %vm2542_vm12, %v2511_v34  ;;  %v2513_v35 = vpop.permute.xlu1 %2512 }
 0x133   : > { %2552 = vst.msk [vmem:[#allocation3 + $0x48] sm:$0xff] %vm2542_vm12, %v2513_v35 }
 0x135   : > { %v2760_v37 = vpop.permute.xlu0 %2759 }
 0x136   : > { %2800 = vst.msk [vmem:[#allocation3 + $0x40] sm:$0xff] %vm2791_vm13, %v2760_v37  ;;  %v922_v38 = vpop.permute.xlu1 %921 }
 0x137   : > { %960 = vst.msk [vmem:[#allocation3 + $0x50] sm:$0xff] %vm949_vm6, %v922_v38 }
 0x139   : > { %v2762_v39 = vpop.permute.xlu0 %2761 }
 0x13a   : > { %2801 = vst.msk [vmem:[#allocation3 + $0x48] sm:$0xff] %vm2791_vm13, %v2762_v39  ;;  %v924_v41 = vpop.permute.xlu1 %923 }
 0x13b   : > { %961 = vst.msk [vmem:[#allocation3 + $0x58] sm:$0xff] %vm949_vm6, %v924_v41 }
 0x13d   : > { %v1172_v42 = vpop.permute.xlu0 %1171  ;;  %v2816_v43 = vld [vmem:[#allocation3 + $0x40] sm:$0xff] }
 0x13e   : > { %1210 = vst.msk [vmem:[#allocation3 + $0x50] sm:$0xff] %vm1199_vm7, %v1172_v42  ;;  %v1174_v44 = vpop.permute.xlu1 %1173  ;;  %3634 = vmatprep.mubr.msk.bf16.mxu1 %vm2851_vm14, %v2816_v43 }
 0x13f   : > { %1211 = vst.msk [vmem:[#allocation3 + $0x58] sm:$0xff] %vm1199_vm7, %v1174_v44 }
 0x141   : > { %v1350_v45 = vpop.permute.xlu0 %1349  ;;  %v2817_v46 = vld [vmem:[#allocation3 + $0x48] sm:$0xff] }
 0x142   : > { %1388 = vst.msk [vmem:[#allocation3 + $0x50] sm:$0xff] %vm1377_vm8, %v1350_v45  ;;  %v1352_v47 = vpop.permute.xlu1 %1351  ;;  %3635 = vmatmul.mubr.msk.bf16.vlgmr.msra.gmra.mrb[0].mxu1 %vm2851_vm14, %v2817_v46 }
 0x143   : > { %1389 = vst.msk [vmem:[#allocation3 + $0x58] sm:$0xff] %vm1377_vm8, %v1352_v47 }
 0x145   : > { %v1719_v48 = vpop.permute.xlu0 %1718 }
 0x146   : > { %1757 = vst.msk [vmem:[#allocation3 + $0x50] sm:$0xff] %vm1746_vm9, %v1719_v48  ;;  %v1721_v49 = vpop.permute.xlu1 %1720 }
 0x147   : > { %1758 = vst.msk [vmem:[#allocation3 + $0x58] sm:$0xff] %vm1746_vm9, %v1721_v49 }
 0x149   : > { %v1968_v50 = vpop.permute.xlu0 %1967 }
 0x14a   : > { %2006 = vst.msk [vmem:[#allocation3 + $0x50] sm:$0xff] %vm1995_vm10, %v1968_v50  ;;  %v1970_v51 = vpop.permute.xlu1 %1969 }
 0x14b   : > { %2007 = vst.msk [vmem:[#allocation3 + $0x58] sm:$0xff] %vm1995_vm10, %v1970_v51 }
 0x14d   : > { %v2146_v52 = vpop.permute.xlu0 %2145 }
 0x14e   : > { %2184 = vst.msk [vmem:[#allocation3 + $0x50] sm:$0xff] %vm2173_vm11, %v2146_v52  ;;  %v2148_v53 = vpop.permute.xlu1 %2147 }
 0x14f   : > { %2185 = vst.msk [vmem:[#allocation3 + $0x58] sm:$0xff] %vm2173_vm11, %v2148_v53 }
 0x151   : > { %v2515_v54 = vpop.permute.xlu0 %2514 }
 0x152   : > { %2553 = vst.msk [vmem:[#allocation3 + $0x50] sm:$0xff] %vm2542_vm12, %v2515_v54  ;;  %v2517_v55 = vpop.permute.xlu1 %2516 }
 0x153   : > { %2554 = vst.msk [vmem:[#allocation3 + $0x58] sm:$0xff] %vm2542_vm12, %v2517_v55 }
 0x155   : > { %v2764_v56 = vpop.permute.xlu0 %2763 }
 0x156   : > { %2802 = vst.msk [vmem:[#allocation3 + $0x50] sm:$0xff] %vm2791_vm13, %v2764_v56  ;;  %v926_v57 = vpop.permute.xlu1 %925 }
 0x157   : > { %962 = vst.msk [vmem:[#allocation3 + $0x60] sm:$0xff] %vm949_vm6, %v926_v57 }
 0x159   : > { %v2766_v58 = vpop.permute.xlu0 %2765 }
 0x15a   : > { %2803 = vst.msk [vmem:[#allocation3 + $0x58] sm:$0xff] %vm2791_vm13, %v2766_v58  ;;  %v928_v59 = vpop.permute.xlu1 %927 }
 0x15b   : > { %963 = vst.msk [vmem:[#allocation3 + $0x68] sm:$0xff] %vm949_vm6, %v928_v59 }
 0x15d   : > { %v1176_v60 = vpop.permute.xlu0 %1175  ;;  %v2818_v61 = vld [vmem:[#allocation3 + $0x50] sm:$0xff] }
 0x15e   : > { %1212 = vst.msk [vmem:[#allocation3 + $0x60] sm:$0xff] %vm1199_vm7, %v1176_v60  ;;  %v1178_v62 = vpop.permute.xlu1 %1177  ;;  %3638 = vmatprep.mubr.msk.bf16.mxu1 %vm2851_vm14, %v2818_v61 }
 0x15f   : > { %1213 = vst.msk [vmem:[#allocation3 + $0x68] sm:$0xff] %vm1199_vm7, %v1178_v62 }
 0x161   : > { %v1354_v63 = vpop.permute.xlu0 %1353  ;;  %v2819_v40 = vld [vmem:[#allocation3 + $0x58] sm:$0xff] }
 0x162   : > { %1390 = vst.msk [vmem:[#allocation3 + $0x60] sm:$0xff] %vm1377_vm8, %v1354_v63  ;;  %v1356_v0 = vpop.permute.xlu1 %1355  ;;  %3639 = vmatmul.mubr.msk.bf16.gmra.mrb[4].mxu1 %vm2851_vm14, %v2819_v40 }
 0x163   : > { %1391 = vst.msk [vmem:[#allocation3 + $0x68] sm:$0xff] %vm1377_vm8, %v1356_v0 }
 0x165   : > { %v1723_v2 = vpop.permute.xlu0 %1722 }
 0x166   : > { %1759 = vst.msk [vmem:[#allocation3 + $0x60] sm:$0xff] %vm1746_vm9, %v1723_v2  ;;  %v1725_v3 = vpop.permute.xlu1 %1724 }
 0x167   : > { %1760 = vst.msk [vmem:[#allocation3 + $0x68] sm:$0xff] %vm1746_vm9, %v1725_v3 }
 0x169   : > { %v1972_v4 = vpop.permute.xlu0 %1971 }
 0x16a   : > { %2008 = vst.msk [vmem:[#allocation3 + $0x60] sm:$0xff] %vm1995_vm10, %v1972_v4  ;;  %v1974_v5 = vpop.permute.xlu1 %1973 }
 0x16b   : > { %2009 = vst.msk [vmem:[#allocation3 + $0x68] sm:$0xff] %vm1995_vm10, %v1974_v5 }
 0x16d   : > { %v2150_v6 = vpop.permute.xlu0 %2149 }
 0x16e   : > { %2186 = vst.msk [vmem:[#allocation3 + $0x60] sm:$0xff] %vm2173_vm11, %v2150_v6  ;;  %v2152_v7 = vpop.permute.xlu1 %2151 }
 0x16f   : > { %2187 = vst.msk [vmem:[#allocation3 + $0x68] sm:$0xff] %vm2173_vm11, %v2152_v7 }
 0x171   : > { %v2519_v8 = vpop.permute.xlu0 %2518 }
 0x172   : > { %2555 = vst.msk [vmem:[#allocation3 + $0x60] sm:$0xff] %vm2542_vm12, %v2519_v8  ;;  %v2521_v9 = vpop.permute.xlu1 %2520 }
 0x173   : > { %2556 = vst.msk [vmem:[#allocation3 + $0x68] sm:$0xff] %vm2542_vm12, %v2521_v9 }
 0x175   : > { %v2768_v10 = vpop.permute.xlu0 %2767 }
 0x176   : > { %2804 = vst.msk [vmem:[#allocation3 + $0x60] sm:$0xff] %vm2791_vm13, %v2768_v10  ;;  %v930_v36 = vpop.permute.xlu1 %929 }
 0x177   : > { %964 = vst.msk [vmem:[#allocation3 + $0x70] sm:$0xff] %vm949_vm6, %v930_v36 }
 0x179   : > { %v2770_v11 = vpop.permute.xlu0 %2769 }
 0x17a   : > { %2805 = vst.msk [vmem:[#allocation3 + $0x68] sm:$0xff] %vm2791_vm13, %v2770_v11  ;;  %v932_v13 = vpop.permute.xlu1 %931 }
 0x17b   : > { %965 = vst.msk [vmem:[#allocation3 + $0x78] sm:$0xff] %vm949_vm6, %v932_v13 }
 0x17d   : > { %v1180_v14 = vpop.permute.xlu0 %1179  ;;  %v2820_v16 = vld [vmem:[#allocation3 + $0x60] sm:$0xff] }
 0x17e   : > { %1214 = vst.msk [vmem:[#allocation3 + $0x70] sm:$0xff] %vm1199_vm7, %v1180_v14  ;;  %v1182_v17 = vpop.permute.xlu1 %1181  ;;  %3642 = vmatprep.mubr.msk.bf16.mxu1 %vm2851_vm14, %v2820_v16 }
 0x17f   : > { %1215 = vst.msk [vmem:[#allocation3 + $0x78] sm:$0xff] %vm1199_vm7, %v1182_v17 }
 0x181   : > { %v1358_v18 = vpop.permute.xlu0 %1357  ;;  %v2821_v19 = vld [vmem:[#allocation3 + $0x68] sm:$0xff] }
 0x182   : > { %1392 = vst.msk [vmem:[#allocation3 + $0x70] sm:$0xff] %vm1377_vm8, %v1358_v18  ;;  %v1360_v20 = vpop.permute.xlu1 %1359  ;;  %3643 = vmatmul.mubr.msk.bf16.gmra.mrb[8].mxu1 %vm2851_vm14, %v2821_v19 }
 0x183   : > { %1393 = vst.msk [vmem:[#allocation3 + $0x78] sm:$0xff] %vm1377_vm8, %v1360_v20 }
 0x185   : > { %v1727_v21 = vpop.permute.xlu0 %1726 }
 0x186   : > { %1761 = vst.msk [vmem:[#allocation3 + $0x70] sm:$0xff] %vm1746_vm9, %v1727_v21  ;;  %v1729_v1 = vpop.permute.xlu1 %1728 }
 0x187   : > { %1762 = vst.msk [vmem:[#allocation3 + $0x78] sm:$0xff] %vm1746_vm9, %v1729_v1 }
 0x189   : > { %v1976_v22 = vpop.permute.xlu0 %1975 }
 0x18a   : > { %2010 = vst.msk [vmem:[#allocation3 + $0x70] sm:$0xff] %vm1995_vm10, %v1976_v22  ;;  %v1978_v23 = vpop.permute.xlu1 %1977 }
 0x18b   : > { %2011 = vst.msk [vmem:[#allocation3 + $0x78] sm:$0xff] %vm1995_vm10, %v1978_v23 }
 0x18d   : > { %v2154_v24 = vpop.permute.xlu0 %2153 }
 0x18e   : > { %2188 = vst.msk [vmem:[#allocation3 + $0x70] sm:$0xff] %vm2173_vm11, %v2154_v24  ;;  %v2156_v25 = vpop.permute.xlu1 %2155 }
 0x18f   : > { %2189 = vst.msk [vmem:[#allocation3 + $0x78] sm:$0xff] %vm2173_vm11, %v2156_v25 }
 0x191   : > { %v2523_v15 = vpop.permute.xlu0 %2522 }
 0x192   : > { %2557 = vst.msk [vmem:[#allocation3 + $0x70] sm:$0xff] %vm2542_vm12, %v2523_v15  ;;  %v2525_v26 = vpop.permute.xlu1 %2524 }
 0x193   : > { %2558 = vst.msk [vmem:[#allocation3 + $0x78] sm:$0xff] %vm2542_vm12, %v2525_v26 }
 0x195   : > { %v2772_v28 = vpop.permute.xlu0 %2771  ;;  %v3620_v29 = vpop.f32.mrb[0].mxu0 }
 0x196   : > { %2806 = vst.msk [vmem:[#allocation3 + $0x70] sm:$0xff] %vm2791_vm13, %v2772_v28  ;;  %v2947_v30 = vadd.f32 %v3620_v29, %v4621_v27  ;;  %v2774_v31 = vpop.permute.xlu1 %2773  ;;  %v2938_v12 = vpop.f32.mrb[1].mxu0 }
 0x197   : > { %2807 = vst.msk [vmem:[#allocation3 + $0x78] sm:$0xff] %vm2791_vm13, %v2774_v31  ;;  %v2939_v32 = vadd.f32 %v4621_v27, %v2938_v12  ;;  %v3621_v33 = vpop.f32.mrb[2].mxu0 }
 0x198   : > { %3067 = vst [vmem:[%s4626_s15 + $0x10] sm:$0xff] %v2947_v30  ;;  %v2950_v34 = vadd.f32 %v3621_v33, %v4621_v27  ;;  %v2941_v35 = vpop.f32.mrb[3].mxu0  ;;  %v3137_v42 = vmul.f32 %v2947_v30, %v2947_v30 }
 0x199   : > { %3065 = vst [vmem:[%s4626_s15] sm:$0xff] %v2939_v32  ;;  %v2942_v37 = vadd.f32 %v4621_v27, %v2941_v35  ;;  %v3135_v38 = vmul.f32 %v2939_v32, %v2939_v32 }
 0x19a   : > { %3068 = vst [vmem:[%s4626_s15 + $0x18] sm:$0xff] %v2950_v34  ;;  %v3138_v47 = vmul.f32 %v2950_v34, %v2950_v34 }
 0x19b   : > { %3066 = vst [vmem:[%s4626_s15 + $0x8] sm:$0xff] %v2942_v37  ;;  %v3097_v39 = vadd.f32 %v2942_v37, %v2939_v32  ;;  %v3136_v41 = vmul.f32 %v2942_v37, %v2942_v37 }
 0x19d   : > { %v3098_v43 = vadd.f32 %v3097_v39, %v2947_v30  ;;  %v3167_v44 = vadd.f32 %v3136_v41, %v3135_v38  ;;  %v2822_v45 = vld [vmem:[#allocation3 + $0x70] sm:$0xff] }
 0x19e   : > { %3646 = vmatprep.mubr.msk.bf16.mxu1 %vm2851_vm14, %v2822_v45  ;;  %v2823_v46 = vld [vmem:[#allocation3 + $0x78] sm:$0xff] }
 0x19f   : > { %v3168_v48 = vadd.f32 %v3167_v44, %v3137_v42  ;;  %3647 = vmatmul.mubr.msk.bf16.gmra.mrb[12].mxu1 %vm2851_vm14, %v2823_v46  ;;  %v3099_v49 = vadd.f32 %v3098_v43, %v2950_v34 }
 0x1a1   : > { %v3169_v50 = vadd.f32 %v3168_v48, %v3138_v47 }
 0x1b5   : > { %v3624_v51 = vpop.f32.mrb[4].mxu0 }
 0x1b6   : > { %v2963_v52 = vadd.f32 %v3624_v51, %v4621_v27  ;;  %v2954_v53 = vpop.f32.mrb[5].mxu0 }
 0x1b7   : > { %v2955_v54 = vadd.f32 %v4621_v27, %v2954_v53  ;;  %v3625_v55 = vpop.f32.mrb[6].mxu0 }
 0x1b8   : > { %3071 = vst [vmem:[%s4626_s15 + $0x30] sm:$0xff] %v2963_v52  ;;  %v2966_v56 = vadd.f32 %v3625_v55, %v4621_v27  ;;  %v2957_v57 = vpop.f32.mrb[7].mxu0  ;;  %v3141_v40 = vmul.f32 %v2963_v52, %v2963_v52 }
 0x1b9   : > { %3069 = vst [vmem:[%s4626_s15 + $0x20] sm:$0xff] %v2955_v54  ;;  %v3100_v58 = vadd.f32 %v3099_v49, %v2955_v54  ;;  %v3139_v59 = vmul.f32 %v2955_v54, %v2955_v54  ;;  %v2958_v60 = vadd.f32 %v4621_v27, %v2957_v57 }
 0x1ba   : > { %3072 = vst [vmem:[%s4626_s15 + $0x38] sm:$0xff] %v2966_v56  ;;  %v3142_v3 = vmul.f32 %v2966_v56, %v2966_v56 }
 0x1bb   : > { %v3170_v61 = vadd.f32 %v3169_v50, %v3139_v59  ;;  %3070 = vst [vmem:[%s4626_s15 + $0x28] sm:$0xff] %v2958_v60  ;;  %v3101_v62 = vadd.f32 %v3100_v58, %v2958_v60  ;;  %v3140_v63 = vmul.f32 %v2958_v60, %v2958_v60 }
 0x1bd   : > { %v3102_v0 = vadd.f32 %v3101_v62, %v2963_v52  ;;  %v3171_v2 = vadd.f32 %v3170_v61, %v3140_v63 }
 0x1bf   : > { %v3172_v4 = vadd.f32 %v3171_v2, %v3141_v40  ;;  %v3103_v5 = vadd.f32 %v3102_v0, %v2966_v56 }
 0x1c1   : > { %v3173_v6 = vadd.f32 %v3172_v4, %v3142_v3 }
 0x1d5   : > { %v3628_v7 = vpop.f32.mrb[8].mxu0 }
 0x1d6   : > { %v2979_v8 = vadd.f32 %v3628_v7, %v4621_v27  ;;  %v2970_v9 = vpop.f32.mrb[9].mxu0 }
 0x1d7   : > { %v2971_v10 = vadd.f32 %v4621_v27, %v2970_v9  ;;  %v3629_v36 = vpop.f32.mrb[10].mxu0 }
 0x1d8   : > { %3075 = vst [vmem:[%s4626_s15 + $0x50] sm:$0xff] %v2979_v8  ;;  %v2982_v11 = vadd.f32 %v3629_v36, %v4621_v27  ;;  %v2973_v13 = vpop.f32.mrb[11].mxu0  ;;  %v3145_v21 = vmul.f32 %v2979_v8, %v2979_v8 }
 0x1d9   : > { %3073 = vst [vmem:[%s4626_s15 + $0x40] sm:$0xff] %v2971_v10  ;;  %v3104_v14 = vadd.f32 %v3103_v5, %v2971_v10  ;;  %v3143_v16 = vmul.f32 %v2971_v10, %v2971_v10  ;;  %v2974_v17 = vadd.f32 %v4621_v27, %v2973_v13 }
 0x1da   : > { %3076 = vst [vmem:[%s4626_s15 + $0x58] sm:$0xff] %v2982_v11  ;;  %v3146_v23 = vmul.f32 %v2982_v11, %v2982_v11 }
 0x1db   : > { %v3174_v18 = vadd.f32 %v3173_v6, %v3143_v16  ;;  %3074 = vst [vmem:[%s4626_s15 + $0x48] sm:$0xff] %v2974_v17  ;;  %v3105_v19 = vadd.f32 %v3104_v14, %v2974_v17  ;;  %v3144_v20 = vmul.f32 %v2974_v17, %v2974_v17 }
 0x1dd   : > { %v3106_v1 = vadd.f32 %v3105_v19, %v2979_v8  ;;  %v3175_v22 = vadd.f32 %v3174_v18, %v3144_v20 }
 0x1df   : > { %v3176_v24 = vadd.f32 %v3175_v22, %v3145_v21  ;;  %v3107_v25 = vadd.f32 %v3106_v1, %v2982_v11 }
 0x1e1   : > { %v3177_v15 = vadd.f32 %v3176_v24, %v3146_v23 }
 0x1f5   : > { %v3632_v26 = vpop.f32.mrb[12].mxu0 }
 0x1f6   : > { %v2995_v28 = vadd.f32 %v3632_v26, %v4621_v27  ;;  %v2986_v29 = vpop.f32.mrb[13].mxu0 }
 0x1f7   : > { %v2987_v30 = vadd.f32 %v4621_v27, %v2986_v29  ;;  %v3633_v31 = vpop.f32.mrb[14].mxu0 }
 0x1f8   : > { %3079 = vst [vmem:[%s4626_s15 + $0x70] sm:$0xff] %v2995_v28  ;;  %v2998_v12 = vadd.f32 %v3633_v31, %v4621_v27  ;;  %v2989_v32 = vpop.f32.mrb[15].mxu0  ;;  %v3149_v41 = vmul.f32 %v2995_v28, %v2995_v28 }
 0x1f9   : > { %3077 = vst [vmem:[%s4626_s15 + $0x60] sm:$0xff] %v2987_v30  ;;  %v3108_v33 = vadd.f32 %v3107_v25, %v2987_v30  ;;  %v3147_v34 = vmul.f32 %v2987_v30, %v2987_v30  ;;  %v2990_v35 = vadd.f32 %v4621_v27, %v2989_v32 }
 0x1fa   : > { %3080 = vst [vmem:[%s4626_s15 + $0x78] sm:$0xff] %v2998_v12  ;;  %v3150_v44 = vmul.f32 %v2998_v12, %v2998_v12 }
 0x1fb   : > { %v3178_v37 = vadd.f32 %v3177_v15, %v3147_v34  ;;  %3078 = vst [vmem:[%s4626_s15 + $0x68] sm:$0xff] %v2990_v35  ;;  %v3109_v38 = vadd.f32 %v3108_v33, %v2990_v35  ;;  %v3148_v39 = vmul.f32 %v2990_v35, %v2990_v35 }
 0x1fd   : > { %v3110_v42 = vadd.f32 %v3109_v38, %v2995_v28  ;;  %v3179_v43 = vadd.f32 %v3178_v37, %v3148_v39 }
 0x1ff   : > { %v3180_v45 = vadd.f32 %v3179_v43, %v3149_v41  ;;  %v3111_v46 = vadd.f32 %v3110_v42, %v2998_v12 }
 0x201   : > { %v3181_v47 = vadd.f32 %v3180_v45, %v3150_v44 }
 0x215   : > { %v3636_v48 = vpop.f32.mrb[0].mxu1 }
 0x216   : > { %v3011_v49 = vadd.f32 %v3636_v48, %v4621_v27  ;;  %v3002_v50 = vpop.f32.mrb[1].mxu1 }
 0x217   : > { %v3003_v51 = vadd.f32 %v4621_v27, %v3002_v50  ;;  %v3637_v52 = vpop.f32.mrb[2].mxu1 }
 0x218   : > { %3083 = vst [vmem:[%s4626_s15 + $0x90] sm:$0xff] %v3011_v49  ;;  %v3014_v53 = vadd.f32 %v3637_v52, %v4621_v27  ;;  %v3005_v54 = vpop.f32.mrb[3].mxu1  ;;  %v3153_v61 = vmul.f32 %v3011_v49, %v3011_v49 }
 0x219   : > { %3081 = vst [vmem:[%s4626_s15 + $0x80] sm:$0xff] %v3003_v51  ;;  %v3112_v55 = vadd.f32 %v3111_v46, %v3003_v51  ;;  %v3151_v56 = vmul.f32 %v3003_v51, %v3003_v51  ;;  %v3006_v57 = vadd.f32 %v4621_v27, %v3005_v54 }
 0x21a   : > { %3084 = vst [vmem:[%s4626_s15 + $0x98] sm:$0xff] %v3014_v53  ;;  %v3154_v40 = vmul.f32 %v3014_v53, %v3014_v53 }
 0x21b   : > { %v3182_v58 = vadd.f32 %v3181_v47, %v3151_v56  ;;  %3082 = vst [vmem:[%s4626_s15 + $0x88] sm:$0xff] %v3006_v57  ;;  %v3113_v59 = vadd.f32 %v3112_v55, %v3006_v57  ;;  %v3152_v60 = vmul.f32 %v3006_v57, %v3006_v57 }
 0x21d   : > { %v3114_v62 = vadd.f32 %v3113_v59, %v3011_v49  ;;  %v3183_v63 = vadd.f32 %v3182_v58, %v3152_v60 }
 0x21f   : > { %v3184_v0 = vadd.f32 %v3183_v63, %v3153_v61  ;;  %v3115_v2 = vadd.f32 %v3114_v62, %v3014_v53 }
 0x221   : > { %v3185_v3 = vadd.f32 %v3184_v0, %v3154_v40 }
 0x235   : > { %v3640_v4 = vpop.f32.mrb[4].mxu1 }
 0x236   : > { %v3027_v5 = vadd.f32 %v3640_v4, %v4621_v27  ;;  %v3018_v6 = vpop.f32.mrb[5].mxu1 }
 0x237   : > { %v3019_v7 = vadd.f32 %v4621_v27, %v3018_v6  ;;  %v3641_v8 = vpop.f32.mrb[6].mxu1 }
 0x238   : > { %3087 = vst [vmem:[%s4626_s15 + $0xb0] sm:$0xff] %v3027_v5  ;;  %v3030_v9 = vadd.f32 %v3641_v8, %v4621_v27  ;;  %v3021_v10 = vpop.f32.mrb[7].mxu1  ;;  %v3157_v18 = vmul.f32 %v3027_v5, %v3027_v5 }
 0x239   : > { %3085 = vst [vmem:[%s4626_s15 + $0xa0] sm:$0xff] %v3019_v7  ;;  %v3116_v36 = vadd.f32 %v3115_v2, %v3019_v7  ;;  %v3155_v11 = vmul.f32 %v3019_v7, %v3019_v7  ;;  %v3022_v13 = vadd.f32 %v4621_v27, %v3021_v10 }
 0x23a   : > { %3088 = vst [vmem:[%s4626_s15 + $0xb8] sm:$0xff] %v3030_v9  ;;  %v3158_v21 = vmul.f32 %v3030_v9, %v3030_v9 }
 0x23b   : > { %v3186_v14 = vadd.f32 %v3185_v3, %v3155_v11  ;;  %3086 = vst [vmem:[%s4626_s15 + $0xa8] sm:$0xff] %v3022_v13  ;;  %v3117_v16 = vadd.f32 %v3116_v36, %v3022_v13  ;;  %v3156_v17 = vmul.f32 %v3022_v13, %v3022_v13 }
 0x23d   : > { %v3118_v19 = vadd.f32 %v3117_v16, %v3027_v5  ;;  %v3187_v20 = vadd.f32 %v3186_v14, %v3156_v17 }
 0x23f   : > { %v3188_v1 = vadd.f32 %v3187_v20, %v3157_v18  ;;  %v3119_v22 = vadd.f32 %v3118_v19, %v3030_v9 }
 0x241   : > { %v3189_v23 = vadd.f32 %v3188_v1, %v3158_v21 }
 0x255   : > { %v3644_v24 = vpop.f32.mrb[8].mxu1 }
 0x256   : > { %v3043_v25 = vadd.f32 %v3644_v24, %v4621_v27  ;;  %v3034_v15 = vpop.f32.mrb[9].mxu1 }
 0x257   : > { %v3035_v26 = vadd.f32 %v4621_v27, %v3034_v15  ;;  %v3645_v28 = vpop.f32.mrb[10].mxu1 }
 0x258   : > { %3091 = vst [vmem:[%s4626_s15 + $0xd0] sm:$0xff] %v3043_v25  ;;  %v3046_v29 = vadd.f32 %v3645_v28, %v4621_v27  ;;  %v3037_v30 = vpop.f32.mrb[11].mxu1  ;;  %v3161_v37 = vmul.f32 %v3043_v25, %v3043_v25 }
 0x259   : > { %3089 = vst [vmem:[%s4626_s15 + $0xc0] sm:$0xff] %v3035_v26  ;;  %v3120_v31 = vadd.f32 %v3119_v22, %v3035_v26  ;;  %v3159_v12 = vmul.f32 %v3035_v26, %v3035_v26  ;;  %v3038_v32 = vadd.f32 %v4621_v27, %v3037_v30 }
 0x25a   : > { %3092 = vst [vmem:[%s4626_s15 + $0xd8] sm:$0xff] %v3046_v29  ;;  %v3162_v41 = vmul.f32 %v3046_v29, %v3046_v29 }
 0x25b   : > { %v3190_v33 = vadd.f32 %v3189_v23, %v3159_v12  ;;  %3090 = vst [vmem:[%s4626_s15 + $0xc8] sm:$0xff] %v3038_v32  ;;  %v3121_v34 = vadd.f32 %v3120_v31, %v3038_v32  ;;  %v3160_v35 = vmul.f32 %v3038_v32, %v3038_v32 }
 0x25d   : > { %v3122_v38 = vadd.f32 %v3121_v34, %v3043_v25  ;;  %v3191_v39 = vadd.f32 %v3190_v33, %v3160_v35 }
 0x25f   : > { %v3192_v42 = vadd.f32 %v3191_v39, %v3161_v37  ;;  %v3123_v43 = vadd.f32 %v3122_v38, %v3046_v29 }
 0x261   : > { %v3193_v44 = vadd.f32 %v3192_v42, %v3162_v41 }
 0x272   : > { %v3648_v45 = vpop.f32.mrb[12].mxu1 }
 0x273   : > { %v3059_v46 = vadd.f32 %v3648_v45, %v4621_v27  ;;  %v3050_v47 = vpop.f32.mrb[13].mxu1 }
 0x274   : > { %v3051_v48 = vadd.f32 %v4621_v27, %v3050_v47  ;;  %v3649_v49 = vpop.f32.mrb[14].mxu1 }
 0x275   : > { %3095 = vst [vmem:[%s4626_s15 + $0xf0] sm:$0xff] %v3059_v46  ;;  %v3062_v50 = vadd.f32 %v3649_v49, %v4621_v27  ;;  %v3053_v51 = vpop.f32.mrb[15].mxu1  ;;  %v3165_v58 = vmul.f32 %v3059_v46, %v3059_v46 }
 0x276   : > { %3093 = vst [vmem:[%s4626_s15 + $0xe0] sm:$0xff] %v3051_v48  ;;  %v3124_v52 = vadd.f32 %v3123_v43, %v3051_v48  ;;  %v3163_v53 = vmul.f32 %v3051_v48, %v3051_v48  ;;  %v3054_v54 = vadd.f32 %v4621_v27, %v3053_v51 }
 0x277   : > { %3096 = vst [vmem:[%s4626_s15 + $0xf8] sm:$0xff] %v3062_v50  ;;  %v3166_v61 = vmul.f32 %v3062_v50, %v3062_v50 }
 0x278   : > { %v3194_v55 = vadd.f32 %v3193_v44, %v3163_v53  ;;  %3094 = vst [vmem:[%s4626_s15 + $0xe8] sm:$0xff] %v3054_v54  ;;  %v3125_v56 = vadd.f32 %v3124_v52, %v3054_v54  ;;  %v3164_v57 = vmul.f32 %v3054_v54, %v3054_v54 }
 0x27a   : > { %v3126_v59 = vadd.f32 %v3125_v56, %v3059_v46  ;;  %v3195_v60 = vadd.f32 %v3194_v55, %v3164_v57 }
 0x27c   : > { %v3127_v62 = vadd.f32 %v3126_v59, %v3062_v50  ;;  %v3196_v63 = vadd.f32 %v3195_v60, %v3165_v58 }
 0x27e   : > { %v3128_v40 = vrot.slane %v3127_v62, 4  ;;  %v3197_v0 = vadd.f32 %v3196_v63, %v3166_v61 }
 0x280   : > { %v3129_v2 = vadd.f32 %v3128_v40, %v3127_v62  ;;  %v3198_v3 = vrot.slane %v3197_v0, 4 }
 0x282   : > { %v3130_v4 = vrot.slane %v3129_v2, 2  ;;  %v3199_v27 = vadd.f32 %v3198_v3, %v3197_v0 }
 0x284   : > { %v3131_v5 = vadd.f32 %v3130_v4, %v3129_v2  ;;  %v3200_v6 = vrot.slane %v3199_v27, 2 }
 0x286   : > { %v3132_v7 = vrot.slane %v3131_v5, 1  ;;  %v3201_v8 = vadd.f32 %v3200_v6, %v3199_v27 }
 0x288   : > { %v3133_v9 = vadd.f32 %v3132_v7, %v3131_v5  ;;  %v3202_v10 = vrot.slane %v3201_v8, 1 }
 0x28a   : > { %3134 = vst [vmem:[%s346_s16] sm:$0x1] %v3133_v9  ;;  %v3203_v36 = vadd.f32 %v3202_v10, %v3201_v8 }
 0x28c   : > { %3204 = vst [vmem:[%s346_s16 + $0x1] sm:$0x1] %v3203_v36 }
 0x28d PF: > { %s16_s22 = sadd.s32 1, %s3943_s22   ;;  %s4722_s18 = smov %s3935_s20 }
 0x28e   : > { %p13_p9 = scmp.ge.s32.totalorder %s16_s22, 10   ;;  %s4723_s19 = smov %s3939_s21 }
 0x28f   : > { %s4724_s20 = smov %s4727_s23  ;;  %s4725_s21 = smov %s4731_s24 }
 0x290   :  { %15 = sbr.rel (!%p13_p9) target bundleno = 3 (0x3), region = 84 }

</bundles_post_ra>
